<compile_context>
chip_gen: v6e
topology: v6e:2x2x1
jax: 0.10.0
libtpu: 0.0.40
codegen_flags: <defaults>
</compile_context>

<pallas_src>
import functools

import jax
import jax.numpy as jnp
from jax import lax
from jax.experimental import pallas as pl
from jax.experimental.pallas import tpu as pltpu

LN_EPS = 1e-5  # torch.nn.LayerNorm default


def _layernorm(x, gamma, beta):
    # One-pass statistics (mean and mean of squares); biased variance, matching
    # torch.nn.LayerNorm. Halves the cross-lane reductions vs the two-pass form.
    mean = jnp.mean(x, axis=-1, keepdims=True)
    msq = jnp.mean(x * x, axis=-1, keepdims=True)
    var = jnp.maximum(msq - mean * mean, 0.0)
    return (x - mean) * lax.rsqrt(var + LN_EPS) * gamma + beta


def block_kernel(x_ref, ln1_g_ref, ln1_b_ref, wqkv_ref, wp_ref, bp_ref,
                 ln2_g_ref, ln2_b_ref, w1_ref, w2_ref,
                 o_ref, qkv_scr, *, n_head, seq_len):
    R, C = x_ref.shape                      # R = batches_per_group * seq_len
    hs = C // n_head
    nb = R // seq_len

    x_in = x_ref[...].astype(jnp.float32)

    # ---- LN1 + fused QKV projection (1/sqrt(hs) already folded into Q cols) ----
    x1 = _layernorm(x_in, ln1_g_ref[...], ln1_b_ref[...]).astype(jnp.bfloat16)
    qkv_scr[...] = jnp.dot(
        x1, wqkv_ref[...], preferred_element_type=jnp.float32
    ).astype(jnp.bfloat16)

    # ---- causal softmax attention, batched over the batch-group per head ----
    rows = lax.broadcasted_iota(jnp.int32, (seq_len, seq_len), 0)
    cols = lax.broadcasted_iota(jnp.int32, (seq_len, seq_len), 1)
    causal = cols <= rows
    NEG = -1e30                             # large finite negative (NaN-safe vs -inf)

    head_outs = []
    for h in range(n_head):                 # static, tiny trip count (n_head)
        c0 = h * hs
        # (R, hs) column slab -> (nb, T, hs): leading/sublane split, layout-free.
        qh = qkv_scr[:, c0:c0 + hs].reshape(nb, seq_len, hs)
        kh = qkv_scr[:, C + c0:C + c0 + hs].reshape(nb, seq_len, hs)
        vh = qkv_scr[:, 2 * C + c0:2 * C + c0 + hs].reshape(nb, seq_len, hs)
        # q @ k^T with a batch dim over the batch-group (no explicit transpose).
        wei = jnp.einsum("btd,bsd->bts", qh, kh,
                         preferred_element_type=jnp.float32)
        wei = jnp.where(causal, wei, NEG)
        wei = wei - jnp.max(wei, axis=-1, keepdims=True)
        p = jnp.exp(wei)
        p = p * pl.reciprocal(jnp.sum(p, axis=-1, keepdims=True), approx=True)
        oh = jnp.einsum("bts,bsd->btd", p.astype(jnp.bfloat16), vh,
                        preferred_element_type=jnp.float32)
        head_outs.append(oh.astype(jnp.bfloat16))

    # Lane-dense head writeback: build one (R, C) value (no narrow masked stores).
    att = jnp.concatenate(head_outs, axis=-1).reshape(R, C)

    # ---- single full-K output projection + first residual ----
    sa = jnp.dot(att, wp_ref[...], preferred_element_type=jnp.float32) + bp_ref[...]
    # TODO(synk): nn.Dropout layers are treated as identity (inference mode).
    x2 = x_in + sa

    # ---- LN2 + feed-forward (hidden dim chunked) + second residual ----
    x2n = _layernorm(x2, ln2_g_ref[...], ln2_b_ref[...]).astype(jnp.bfloat16)
    H4 = w1_ref.shape[1]                    # 4 * C
    chunk = min(H4, 2048)
    ff = jnp.zeros((R, C), jnp.float32)
    for k0 in range(0, H4, chunk):          # static; single iteration at toy sizes
        k1 = min(H4, k0 + chunk)
        hmid = jnp.maximum(
            jnp.dot(x2n, w1_ref[:, k0:k1], preferred_element_type=jnp.float32),
            0.0)
        ff = ff + jnp.dot(hmid.astype(jnp.bfloat16), w2_ref[k0:k1, :],
                          preferred_element_type=jnp.float32)
    o_ref[...] = (x2 + ff).astype(o_ref.dtype)


def _const_spec(shape):
    """Spec for a grid-invariant operand (weights / LN params / bias).

    Single-buffered (pipeline_mode=pl.Buffered(1)) when the installed JAX
    supports it — the block never changes across the grid, so double-buffering
    only burns VMEM. Falls back to the default pipelining otherwise.
    """
    idx = lambda g: (0, 0)
    try:
        return pl.BlockSpec(shape, idx, pipeline_mode=pl.Buffered(1))
    except (AttributeError, TypeError, ValueError):
        return pl.BlockSpec(shape, idx)


def _vmem_estimate(rows, C):
    """Rough per-grid-step VMEM footprint (bytes) for the chosen row slab."""
    hidden_chunk = min(4 * C, 2048)
    weights = 2 * (3 * C * C + C * C + 4 * C * C + 4 * C * C) + 4 * 5 * C  # bf16, 1-buf
    acts = 2 * 2 * rows * C * 4              # in + out slabs, double-buffered f32
    qkv = rows * 3 * C * 2                   # bf16 scratch
    temps = rows * hidden_chunk * 4 + 4 * rows * C * 4   # MLP chunk + misc f32 temps
    return weights + acts + qkv + temps


def transformer_block(x, params, n_head):
    """x: (B, T, C) float32. params: dict of f32 weights (see init_params)."""
    B, T, C = x.shape
    assert C % n_head == 0
    assert T % 8 == 0, "T must be a multiple of 8 for the (8,128) block tiling"
    hs = C // n_head

    # --- wrapper-time weight prep: fuse QKV, fold attention scale, cast bf16 ---
    wqkv = jnp.concatenate(
        [params["wq"] * (hs ** -0.5), params["wk"], params["wv"]],
        axis=1).astype(jnp.bfloat16)                       # (C, 3C)
    wp = params["wp"].astype(jnp.bfloat16)                 # (C, C)
    w1 = params["w1"].astype(jnp.bfloat16)                 # (C, 4C)
    w2 = params["w2"].astype(jnp.bfloat16)                 # (4C, C)

    # --- batch-group size: VMEM-budgeted row slab (fills the 256-wide MXU on
    #     v6e/v7x and amortizes per-step overhead), while keeping >= 2 grid
    #     steps so v7x's two TensorCores both get work on the parallel axis. ---
    MAX_ROWS = 512
    VMEM_BUDGET = 24 << 20        # conservative: fits v7x's 64 MiB physical VMEM
    divisors = [d for d in range(1, B + 1) if B % d == 0]
    fitting = [d for d in divisors
               if d * T <= MAX_ROWS and _vmem_estimate(d * T, C) <= VMEM_BUDGET]
    if not fitting:
        fitting = [1]
    multi_step = [d for d in fitting if B // d >= 2]
    bpg = max(multi_step) if multi_step else max(fitting)
    R = bpg * T
    grid = (B // bpg,)
    xr = x.reshape(B * T, C)

    in_specs = [
        pl.BlockSpec((R, C), lambda g: (g, 0)),            # activation row slab
        _const_spec(params["ln1_g"].shape), _const_spec(params["ln1_b"].shape),
        _const_spec(wqkv.shape), _const_spec(wp.shape),
        _const_spec(params["bp"].shape),
        _const_spec(params["ln2_g"].shape), _const_spec(params["ln2_b"].shape),
        _const_spec(w1.shape), _const_spec(w2.shape),
    ]
    out_specs = pl.BlockSpec((R, C), lambda g: (g, 0))

    flops = int(2 * B * T * C * 3 * C            # fused QKV
                + 4 * B * n_head * T * T * hs    # scores + PV
                + 2 * B * T * C * C              # output projection
                + 4 * B * T * C * 4 * C)         # MLP
    bytes_accessed = int(xr.size * 4 * 2
                         + (wqkv.size + wp.size + w1.size + w2.size) * 2
                         + (params["ln1_g"].size + params["ln1_b"].size
                            + params["ln2_g"].size + params["ln2_b"].size
                            + params["bp"].size) * 4)
    cost = pl.CostEstimate(flops=flops,
                           transcendentals=int(B * n_head * T * T),
                           bytes_accessed=bytes_accessed)

    vmem_limit = int(min(64 << 20, max(16 << 20, 2 * _vmem_estimate(R, C))))

    out = pl.pallas_call(
        functools.partial(block_kernel, n_head=n_head, seq_len=T),
        out_shape=jax.ShapeDtypeStruct((B * T, C), x.dtype),
        grid=grid,
        in_specs=in_specs,
        out_specs=out_specs,
        scratch_shapes=[pltpu.VMEM((R, 3 * C), jnp.bfloat16)],   # q | k | v
        compiler_params=pltpu.CompilerParams(
            dimension_semantics=("parallel",),
            vmem_limit_bytes=vmem_limit),
        cost_estimate=cost,
    )(xr, params["ln1_g"], params["ln1_b"], wqkv, wp, params["bp"],
      params["ln2_g"], params["ln2_b"], w1, w2)
    return out.reshape(B, T, C)


def init_params(key, C):
    ks = jax.random.split(key, 6)
    s = 0.02
    return {
        "ln1_g": jnp.ones((1, C), jnp.float32),
        "ln1_b": jnp.zeros((1, C), jnp.float32),
        "wq": jax.random.normal(ks[0], (C, C), jnp.float32) * s,
        "wk": jax.random.normal(ks[1], (C, C), jnp.float32) * s,
        "wv": jax.random.normal(ks[2], (C, C), jnp.float32) * s,
        "wp": jax.random.normal(ks[3], (C, C), jnp.float32) * s,
        "bp": jnp.zeros((1, C), jnp.float32),
        "ln2_g": jnp.ones((1, C), jnp.float32),
        "ln2_b": jnp.zeros((1, C), jnp.float32),
        "w1": jax.random.normal(ks[4], (C, 4 * C), jnp.float32) * s,
        "w2": jax.random.normal(ks[5], (4 * C, C), jnp.float32) * s,
    }


def block_reference(x, p, n_head):
    """Pure-JAX f32 reference matching the PyTorch forward (dropout = identity)."""
    B, T, C = x.shape
    hs = C // n_head

    def ln(z, g, b):
        m = z.mean(-1, keepdims=True)
        v = ((z - m) ** 2).mean(-1, keepdims=True)
        return (z - m) / jnp.sqrt(v + LN_EPS) * g + b

    x1 = ln(x, p["ln1_g"][0], p["ln1_b"][0])
    q = (x1 @ p["wq"]).reshape(B, T, n_head, hs)
    k = (x1 @ p["wk"]).reshape(B, T, n_head, hs)
    v = (x1 @ p["wv"]).reshape(B, T, n_head, hs)
    wei = jnp.einsum("bthd,bshd->bhts", q, k) * hs ** (-0.5)
    mask = jnp.tril(jnp.ones((T, T), bool))
    wei = jnp.where(mask, wei, -jnp.inf)
    wei = jax.nn.softmax(wei, axis=-1)
    out = jnp.einsum("bhts,bshd->bthd", wei, v).reshape(B, T, C)
    sa = out @ p["wp"] + p["bp"][0]
    x2 = x + sa
    x2n = ln(x2, p["ln2_g"][0], p["ln2_b"][0])
    ff = jnp.maximum(x2n @ p["w1"], 0.0) @ p["w2"]
    return x2 + ff


if __name__ == "__main__":
    B, T, C, H = 2, 64, 128, 4   # small shapes: batch=2, seq=64, n_embd=128, n_head=4

    key = jax.random.PRNGKey(0)
    kx, kp = jax.random.split(key)
    x = jax.random.normal(kx, (B, T, C), jnp.float32)
    params = init_params(kp, C)

    out = jax.block_until_ready(transformer_block(x, params, H))
    ref = block_reference(x, params, H)

    err = float(jnp.max(jnp.abs(out - ref)))
    assert out.shape == (B, T, C) and out.dtype == jnp.float32
    # bf16 matmul operands + approx reciprocal vs f32 reference -> loose tol
    assert err < 2e-2, f"mismatch vs reference, max abs err={err}"
    print("KERNEL_OK")
</pallas_src>

<mosaic_0001>
module attributes {stable_mosaic.version = 11 : i64} {
  func.func @block_kernel(%arg0: i32, %arg1: memref<64x128xf32, #tpu.memory_space<vmem>>, %arg2: memref<1x128xf32, #tpu.memory_space<vmem>>, %arg3: memref<1x128xf32, #tpu.memory_space<vmem>>, %arg4: memref<128x384xbf16, #tpu.memory_space<vmem>>, %arg5: memref<128x128xbf16, #tpu.memory_space<vmem>>, %arg6: memref<1x128xf32, #tpu.memory_space<vmem>>, %arg7: memref<1x128xf32, #tpu.memory_space<vmem>>, %arg8: memref<1x128xf32, #tpu.memory_space<vmem>>, %arg9: memref<128x512xbf16, #tpu.memory_space<vmem>>, %arg10: memref<512x128xbf16, #tpu.memory_space<vmem>>, %arg11: memref<64x128xf32, #tpu.memory_space<vmem>>, %arg12: memref<64x384xbf16, #tpu.memory_space<vmem>>) attributes {dimension_semantics = [#tpu.dimension_semantics<parallel>], iteration_bounds = array<i64: 2>, scalar_prefetch = 0 : i64, scratch_operands = 1 : i64, tpu.core_type = #tpu.core_type<tc>, window_params = [{transform_indices = @transform_0, window_bounds = array<i64: 64, 128>}, {pipeline_mode = #tpu.pipeline_mode<synchronous>, transform_indices = @transform_1, window_bounds = array<i64: 1, 128>}, {pipeline_mode = #tpu.pipeline_mode<synchronous>, transform_indices = @transform_2, window_bounds = array<i64: 1, 128>}, {pipeline_mode = #tpu.pipeline_mode<synchronous>, transform_indices = @transform_3, window_bounds = array<i64: 128, 384>}, {pipeline_mode = #tpu.pipeline_mode<synchronous>, transform_indices = @transform_4, window_bounds = array<i64: 128, 128>}, {pipeline_mode = #tpu.pipeline_mode<synchronous>, transform_indices = @transform_5, window_bounds = array<i64: 1, 128>}, {pipeline_mode = #tpu.pipeline_mode<synchronous>, transform_indices = @transform_6, window_bounds = array<i64: 1, 128>}, {pipeline_mode = #tpu.pipeline_mode<synchronous>, transform_indices = @transform_7, window_bounds = array<i64: 1, 128>}, {pipeline_mode = #tpu.pipeline_mode<synchronous>, transform_indices = @transform_8, window_bounds = array<i64: 128, 512>}, {pipeline_mode = #tpu.pipeline_mode<synchronous>, transform_indices = @transform_9, window_bounds = array<i64: 512, 128>}, {transform_indices = @transform_10, window_bounds = array<i64: 64, 128>}]} {
    %c0 = arith.constant 0 : index
    %c0_0 = arith.constant 0 : index
    %0 = vector.load %arg1[%c0, %c0_0] : memref<64x128xf32, #tpu.memory_space<vmem>>, vector<64x128xf32>
    %c0_1 = arith.constant 0 : index
    %c0_2 = arith.constant 0 : index
    %1 = vector.load %arg2[%c0_1, %c0_2] : memref<1x128xf32, #tpu.memory_space<vmem>>, vector<1x128xf32>
    %c0_3 = arith.constant 0 : index
    %c0_4 = arith.constant 0 : index
    %2 = vector.load %arg3[%c0_3, %c0_4] : memref<1x128xf32, #tpu.memory_space<vmem>>, vector<1x128xf32>
    %cst = arith.constant dense<0.000000e+00> : vector<64xf32>
    %3 = vector.multi_reduction <add>, %0, %cst [1] : vector<64x128xf32> to vector<64xf32>
    %4 = vector.shape_cast %3 : vector<64xf32> to vector<64x1xf32>
    %cst_5 = arith.constant 1.280000e+02 : f32
    %5 = vector.broadcast %cst_5 : f32 to vector<64x1xf32>
    %6 = arith.divf %4, %5 : vector<64x1xf32>
    %7 = arith.mulf %0, %0 : vector<64x128xf32>
    %cst_6 = arith.constant dense<0.000000e+00> : vector<64xf32>
    %8 = vector.multi_reduction <add>, %7, %cst_6 [1] : vector<64x128xf32> to vector<64xf32>
    %9 = vector.shape_cast %8 : vector<64xf32> to vector<64x1xf32>
    %cst_7 = arith.constant 1.280000e+02 : f32
    %10 = vector.broadcast %cst_7 : f32 to vector<64x1xf32>
    %11 = arith.divf %9, %10 : vector<64x1xf32>
    %12 = arith.mulf %6, %6 : vector<64x1xf32>
    %13 = arith.subf %11, %12 : vector<64x1xf32>
    %cst_8 = arith.constant 0.000000e+00 : f32
    %14 = vector.broadcast %cst_8 : f32 to vector<64x1xf32>
    %15 = arith.maximumf %13, %14 : vector<64x1xf32>
    %16 = vector.broadcast %6 : vector<64x1xf32> to vector<64x128xf32>
    %17 = arith.subf %0, %16 : vector<64x128xf32>
    %cst_9 = arith.constant 9.99999974E-6 : f32
    %18 = vector.broadcast %cst_9 : f32 to vector<64x1xf32>
    %19 = arith.addf %15, %18 : vector<64x1xf32>
    %20 = math.rsqrt %19 : vector<64x1xf32>
    %21 = vector.broadcast %20 : vector<64x1xf32> to vector<64x128xf32>
    %22 = arith.mulf %17, %21 : vector<64x128xf32>
    %23 = vector.broadcast %1 : vector<1x128xf32> to vector<64x128xf32>
    %24 = arith.mulf %22, %23 : vector<64x128xf32>
    %25 = vector.broadcast %2 : vector<1x128xf32> to vector<64x128xf32>
    %26 = arith.addf %24, %25 : vector<64x128xf32>
    %27 = arith.truncf %26 : vector<64x128xf32> to vector<64x128xbf16>
    %c0_10 = arith.constant 0 : index
    %c0_11 = arith.constant 0 : index
    %28 = vector.load %arg4[%c0_10, %c0_11] : memref<128x384xbf16, #tpu.memory_space<vmem>>, vector<128x384xbf16>
    %cst_12 = arith.constant dense<0.000000e+00> : vector<64x384xf32>
    %29 = tpu.matmul %27, %28, %cst_12 {dimension_numbers = #tpu.dot_dimension_numbers<[1], [0], [0], [1], [0, 0, 1, 1], [], []>} : vector<64x128xbf16>, vector<128x384xbf16>, vector<64x384xf32> -> vector<64x384xf32>
    %30 = arith.truncf %29 : vector<64x384xf32> to vector<64x384xbf16>
    %c0_13 = arith.constant 0 : index
    %c0_14 = arith.constant 0 : index
    %31 = vector.load %arg12[%c0_13, %c0_14] : memref<64x384xbf16, #tpu.memory_space<vmem>>, vector<64x384xbf16>
    tpu.vector_store %arg12[%c0_13, %c0_14], %30 {strides = array<i32>} : memref<64x384xbf16, #tpu.memory_space<vmem>>, vector<64x384xbf16>,
    %32 = tpu.iota {dimensions = array<i32: 0>} : vector<64x64xi32>
    %33 = tpu.iota {dimensions = array<i32: 1>} : vector<64x64xi32>
    %34 = arith.cmpi sle, %33, %32 : vector<64x64xi32>
    %c0_15 = arith.constant 0 : index
    %c0_16 = arith.constant 0 : index
    %35 = vector.load %arg12[%c0_15, %c0_16] : memref<64x384xbf16, #tpu.memory_space<vmem>>, vector<64x32xbf16>
    %36 = vector.shape_cast %35 : vector<64x32xbf16> to vector<1x64x32xbf16>
    %c0_17 = arith.constant 0 : index
    %c128 = arith.constant 128 : index
    %37 = vector.load %arg12[%c0_17, %c128] : memref<64x384xbf16, #tpu.memory_space<vmem>>, vector<64x32xbf16>
    %38 = vector.shape_cast %37 : vector<64x32xbf16> to vector<1x64x32xbf16>
    %c0_18 = arith.constant 0 : index
    %c256 = arith.constant 256 : index
    %39 = vector.load %arg12[%c0_18, %c256] : memref<64x384xbf16, #tpu.memory_space<vmem>>, vector<64x32xbf16>
    %40 = vector.shape_cast %39 : vector<64x32xbf16> to vector<1x64x32xbf16>
    "tpu.trace_start"() <{level = 10 : i32, message = "btd,bsd->bts"}> : () -> ()
    %cst_19 = arith.constant dense<0.000000e+00> : vector<1x64x64xf32>
    %41 = tpu.matmul %36, %38, %cst_19 {dimension_numbers = #tpu.dot_dimension_numbers<[2], [2], [1], [1], [0, 0, 0, 1, 1, 1], [0], [0]>} : vector<1x64x32xbf16>, vector<1x64x32xbf16>, vector<1x64x64xf32> -> vector<1x64x64xf32>
    %cst_20 = arith.constant -1.000000e+30 : f32
    "tpu.trace_stop"() : () -> ()
    %42 = vector.shape_cast %34 : vector<64x64xi1> to vector<1x64x64xi1>
    %43 = vector.broadcast %cst_20 : f32 to vector<1x64x64xf32>
    %44 = arith.select %42, %41, %43 : vector<1x64x64xi1>, vector<1x64x64xf32>
    %cst_21 = arith.constant dense<0xFF800000> : vector<1x64xf32>
    %45 = vector.multi_reduction <maximumf>, %44, %cst_21 [2] : vector<1x64x64xf32> to vector<1x64xf32>
    %46 = vector.shape_cast %45 : vector<1x64xf32> to vector<1x64x1xf32>
    %47 = vector.broadcast %46 : vector<1x64x1xf32> to vector<1x64x64xf32>
    %48 = arith.subf %44, %47 : vector<1x64x64xf32>
    %49 = math.exp %48 : vector<1x64x64xf32>
    %cst_22 = arith.constant dense<0.000000e+00> : vector<1x64xf32>
    %50 = vector.multi_reduction <add>, %49, %cst_22 [2] : vector<1x64x64xf32> to vector<1x64xf32>
    %51 = vector.shape_cast %50 : vector<1x64xf32> to vector<1x64x1xf32>
    %52 = tpu.reciprocal %51 {approx = true} : vector<1x64x1xf32> -> vector<1x64x1xf32>
    %53 = vector.broadcast %52 : vector<1x64x1xf32> to vector<1x64x64xf32>
    %54 = arith.mulf %49, %53 : vector<1x64x64xf32>
    %55 = arith.truncf %54 : vector<1x64x64xf32> to vector<1x64x64xbf16>
    "tpu.trace_start"() <{level = 10 : i32, message = "bts,bsd->btd"}> : () -> ()
    %cst_23 = arith.constant dense<0.000000e+00> : vector<1x64x32xf32>
    %56 = tpu.matmul %55, %40, %cst_23 {dimension_numbers = #tpu.dot_dimension_numbers<[2], [1], [1], [2], [0, 0, 0, 1, 1, 2], [0], [0]>} : vector<1x64x64xbf16>, vector<1x64x32xbf16>, vector<1x64x32xf32> -> vector<1x64x32xf32>
    "tpu.trace_stop"() : () -> ()
    %57 = arith.truncf %56 : vector<1x64x32xf32> to vector<1x64x32xbf16>
    %c0_24 = arith.constant 0 : index
    %c32 = arith.constant 32 : index
    %58 = vector.load %arg12[%c0_24, %c32] : memref<64x384xbf16, #tpu.memory_space<vmem>>, vector<64x32xbf16>
    %59 = vector.shape_cast %58 : vector<64x32xbf16> to vector<1x64x32xbf16>
    %c0_25 = arith.constant 0 : index
    %c160 = arith.constant 160 : index
    %60 = vector.load %arg12[%c0_25, %c160] : memref<64x384xbf16, #tpu.memory_space<vmem>>, vector<64x32xbf16>
    %61 = vector.shape_cast %60 : vector<64x32xbf16> to vector<1x64x32xbf16>
    %c0_26 = arith.constant 0 : index
    %c288 = arith.constant 288 : index
    %62 = vector.load %arg12[%c0_26, %c288] : memref<64x384xbf16, #tpu.memory_space<vmem>>, vector<64x32xbf16>
    %63 = vector.shape_cast %62 : vector<64x32xbf16> to vector<1x64x32xbf16>
    "tpu.trace_start"() <{level = 10 : i32, message = "btd,bsd->bts"}> : () -> ()
    %cst_27 = arith.constant dense<0.000000e+00> : vector<1x64x64xf32>
    %64 = tpu.matmul %59, %61, %cst_27 {dimension_numbers = #tpu.dot_dimension_numbers<[2], [2], [1], [1], [0, 0, 0, 1, 1, 1], [0], [0]>} : vector<1x64x32xbf16>, vector<1x64x32xbf16>, vector<1x64x64xf32> -> vector<1x64x64xf32>
    %cst_28 = arith.constant -1.000000e+30 : f32
    "tpu.trace_stop"() : () -> ()
    %65 = vector.shape_cast %34 : vector<64x64xi1> to vector<1x64x64xi1>
    %66 = vector.broadcast %cst_28 : f32 to vector<1x64x64xf32>
    %67 = arith.select %65, %64, %66 : vector<1x64x64xi1>, vector<1x64x64xf32>
    %cst_29 = arith.constant dense<0xFF800000> : vector<1x64xf32>
    %68 = vector.multi_reduction <maximumf>, %67, %cst_29 [2] : vector<1x64x64xf32> to vector<1x64xf32>
    %69 = vector.shape_cast %68 : vector<1x64xf32> to vector<1x64x1xf32>
    %70 = vector.broadcast %69 : vector<1x64x1xf32> to vector<1x64x64xf32>
    %71 = arith.subf %67, %70 : vector<1x64x64xf32>
    %72 = math.exp %71 : vector<1x64x64xf32>
    %cst_30 = arith.constant dense<0.000000e+00> : vector<1x64xf32>
    %73 = vector.multi_reduction <add>, %72, %cst_30 [2] : vector<1x64x64xf32> to vector<1x64xf32>
    %74 = vector.shape_cast %73 : vector<1x64xf32> to vector<1x64x1xf32>
    %75 = tpu.reciprocal %74 {approx = true} : vector<1x64x1xf32> -> vector<1x64x1xf32>
    %76 = vector.broadcast %75 : vector<1x64x1xf32> to vector<1x64x64xf32>
    %77 = arith.mulf %72, %76 : vector<1x64x64xf32>
    %78 = arith.truncf %77 : vector<1x64x64xf32> to vector<1x64x64xbf16>
    "tpu.trace_start"() <{level = 10 : i32, message = "bts,bsd->btd"}> : () -> ()
    %cst_31 = arith.constant dense<0.000000e+00> : vector<1x64x32xf32>
    %79 = tpu.matmul %78, %63, %cst_31 {dimension_numbers = #tpu.dot_dimension_numbers<[2], [1], [1], [2], [0, 0, 0, 1, 1, 2], [0], [0]>} : vector<1x64x64xbf16>, vector<1x64x32xbf16>, vector<1x64x32xf32> -> vector<1x64x32xf32>
    "tpu.trace_stop"() : () -> ()
    %80 = arith.truncf %79 : vector<1x64x32xf32> to vector<1x64x32xbf16>
    %c0_32 = arith.constant 0 : index
    %c64 = arith.constant 64 : index
    %81 = vector.load %arg12[%c0_32, %c64] : memref<64x384xbf16, #tpu.memory_space<vmem>>, vector<64x32xbf16>
    %82 = vector.shape_cast %81 : vector<64x32xbf16> to vector<1x64x32xbf16>
    %c0_33 = arith.constant 0 : index
    %c192 = arith.constant 192 : index
    %83 = vector.load %arg12[%c0_33, %c192] : memref<64x384xbf16, #tpu.memory_space<vmem>>, vector<64x32xbf16>
    %84 = vector.shape_cast %83 : vector<64x32xbf16> to vector<1x64x32xbf16>
    %c0_34 = arith.constant 0 : index
    %c320 = arith.constant 320 : index
    %85 = vector.load %arg12[%c0_34, %c320] : memref<64x384xbf16, #tpu.memory_space<vmem>>, vector<64x32xbf16>
    %86 = vector.shape_cast %85 : vector<64x32xbf16> to vector<1x64x32xbf16>
    "tpu.trace_start"() <{level = 10 : i32, message = "btd,bsd->bts"}> : () -> ()
    %cst_35 = arith.constant dense<0.000000e+00> : vector<1x64x64xf32>
    %87 = tpu.matmul %82, %84, %cst_35 {dimension_numbers = #tpu.dot_dimension_numbers<[2], [2], [1], [1], [0, 0, 0, 1, 1, 1], [0], [0]>} : vector<1x64x32xbf16>, vector<1x64x32xbf16>, vector<1x64x64xf32> -> vector<1x64x64xf32>
    %cst_36 = arith.constant -1.000000e+30 : f32
    "tpu.trace_stop"() : () -> ()
    %88 = vector.shape_cast %34 : vector<64x64xi1> to vector<1x64x64xi1>
    %89 = vector.broadcast %cst_36 : f32 to vector<1x64x64xf32>
    %90 = arith.select %88, %87, %89 : vector<1x64x64xi1>, vector<1x64x64xf32>
    %cst_37 = arith.constant dense<0xFF800000> : vector<1x64xf32>
    %91 = vector.multi_reduction <maximumf>, %90, %cst_37 [2] : vector<1x64x64xf32> to vector<1x64xf32>
    %92 = vector.shape_cast %91 : vector<1x64xf32> to vector<1x64x1xf32>
    %93 = vector.broadcast %92 : vector<1x64x1xf32> to vector<1x64x64xf32>
    %94 = arith.subf %90, %93 : vector<1x64x64xf32>
    %95 = math.exp %94 : vector<1x64x64xf32>
    %cst_38 = arith.constant dense<0.000000e+00> : vector<1x64xf32>
    %96 = vector.multi_reduction <add>, %95, %cst_38 [2] : vector<1x64x64xf32> to vector<1x64xf32>
    %97 = vector.shape_cast %96 : vector<1x64xf32> to vector<1x64x1xf32>
    %98 = tpu.reciprocal %97 {approx = true} : vector<1x64x1xf32> -> vector<1x64x1xf32>
    %99 = vector.broadcast %98 : vector<1x64x1xf32> to vector<1x64x64xf32>
    %100 = arith.mulf %95, %99 : vector<1x64x64xf32>
    %101 = arith.truncf %100 : vector<1x64x64xf32> to vector<1x64x64xbf16>
    "tpu.trace_start"() <{level = 10 : i32, message = "bts,bsd->btd"}> : () -> ()
    %cst_39 = arith.constant dense<0.000000e+00> : vector<1x64x32xf32>
    %102 = tpu.matmul %101, %86, %cst_39 {dimension_numbers = #tpu.dot_dimension_numbers<[2], [1], [1], [2], [0, 0, 0, 1, 1, 2], [0], [0]>} : vector<1x64x64xbf16>, vector<1x64x32xbf16>, vector<1x64x32xf32> -> vector<1x64x32xf32>
    "tpu.trace_stop"() : () -> ()
    %103 = arith.truncf %102 : vector<1x64x32xf32> to vector<1x64x32xbf16>
    %c0_40 = arith.constant 0 : index
    %c96 = arith.constant 96 : index
    %104 = vector.load %arg12[%c0_40, %c96] : memref<64x384xbf16, #tpu.memory_space<vmem>>, vector<64x32xbf16>
    %105 = vector.shape_cast %104 : vector<64x32xbf16> to vector<1x64x32xbf16>
    %c0_41 = arith.constant 0 : index
    %c224 = arith.constant 224 : index
    %106 = vector.load %arg12[%c0_41, %c224] : memref<64x384xbf16, #tpu.memory_space<vmem>>, vector<64x32xbf16>
    %107 = vector.shape_cast %106 : vector<64x32xbf16> to vector<1x64x32xbf16>
    %c0_42 = arith.constant 0 : index
    %c352 = arith.constant 352 : index
    %108 = vector.load %arg12[%c0_42, %c352] : memref<64x384xbf16, #tpu.memory_space<vmem>>, vector<64x32xbf16>
    %109 = vector.shape_cast %108 : vector<64x32xbf16> to vector<1x64x32xbf16>
    "tpu.trace_start"() <{level = 10 : i32, message = "btd,bsd->bts"}> : () -> ()
    %cst_43 = arith.constant dense<0.000000e+00> : vector<1x64x64xf32>
    %110 = tpu.matmul %105, %107, %cst_43 {dimension_numbers = #tpu.dot_dimension_numbers<[2], [2], [1], [1], [0, 0, 0, 1, 1, 1], [0], [0]>} : vector<1x64x32xbf16>, vector<1x64x32xbf16>, vector<1x64x64xf32> -> vector<1x64x64xf32>
    %cst_44 = arith.constant -1.000000e+30 : f32
    "tpu.trace_stop"() : () -> ()
    %111 = vector.shape_cast %34 : vector<64x64xi1> to vector<1x64x64xi1>
    %112 = vector.broadcast %cst_44 : f32 to vector<1x64x64xf32>
    %113 = arith.select %111, %110, %112 : vector<1x64x64xi1>, vector<1x64x64xf32>
    %cst_45 = arith.constant dense<0xFF800000> : vector<1x64xf32>
    %114 = vector.multi_reduction <maximumf>, %113, %cst_45 [2] : vector<1x64x64xf32> to vector<1x64xf32>
    %115 = vector.shape_cast %114 : vector<1x64xf32> to vector<1x64x1xf32>
    %116 = vector.broadcast %115 : vector<1x64x1xf32> to vector<1x64x64xf32>
    %117 = arith.subf %113, %116 : vector<1x64x64xf32>
    %118 = math.exp %117 : vector<1x64x64xf32>
    %cst_46 = arith.constant dense<0.000000e+00> : vector<1x64xf32>
    %119 = vector.multi_reduction <add>, %118, %cst_46 [2] : vector<1x64x64xf32> to vector<1x64xf32>
    %120 = vector.shape_cast %119 : vector<1x64xf32> to vector<1x64x1xf32>
    %121 = tpu.reciprocal %120 {approx = true} : vector<1x64x1xf32> -> vector<1x64x1xf32>
    %122 = vector.broadcast %121 : vector<1x64x1xf32> to vector<1x64x64xf32>
    %123 = arith.mulf %118, %122 : vector<1x64x64xf32>
    %124 = arith.truncf %123 : vector<1x64x64xf32> to vector<1x64x64xbf16>
    "tpu.trace_start"() <{level = 10 : i32, message = "bts,bsd->btd"}> : () -> ()
    %cst_47 = arith.constant dense<0.000000e+00> : vector<1x64x32xf32>
    %125 = tpu.matmul %124, %109, %cst_47 {dimension_numbers = #tpu.dot_dimension_numbers<[2], [1], [1], [2], [0, 0, 0, 1, 1, 2], [0], [0]>} : vector<1x64x64xbf16>, vector<1x64x32xbf16>, vector<1x64x32xf32> -> vector<1x64x32xf32>
    "tpu.trace_stop"() : () -> ()
    %126 = arith.truncf %125 : vector<1x64x32xf32> to vector<1x64x32xbf16>
    %127 = tpu.concatenate %57, %80, %103, %126 in 2 : vector<1x64x32xbf16>, vector<1x64x32xbf16>, vector<1x64x32xbf16>, vector<1x64x32xbf16> -> vector<1x64x128xbf16>
    %128 = vector.shape_cast %127 : vector<1x64x128xbf16> to vector<64x128xbf16>
    %c0_48 = arith.constant 0 : index
    %c0_49 = arith.constant 0 : index
    %129 = vector.load %arg5[%c0_48, %c0_49] : memref<128x128xbf16, #tpu.memory_space<vmem>>, vector<128x128xbf16>
    %cst_50 = arith.constant dense<0.000000e+00> : vector<64x128xf32>
    %130 = tpu.matmul %128, %129, %cst_50 {dimension_numbers = #tpu.dot_dimension_numbers<[1], [0], [0], [1], [0, 0, 1, 1], [], []>} : vector<64x128xbf16>, vector<128x128xbf16>, vector<64x128xf32> -> vector<64x128xf32>
    %c0_51 = arith.constant 0 : index
    %c0_52 = arith.constant 0 : index
    %131 = vector.load %arg6[%c0_51, %c0_52] : memref<1x128xf32, #tpu.memory_space<vmem>>, vector<1x128xf32>
    %132 = vector.broadcast %131 : vector<1x128xf32> to vector<64x128xf32>
    %133 = arith.addf %130, %132 : vector<64x128xf32>
    %134 = arith.addf %0, %133 : vector<64x128xf32>
    %c0_53 = arith.constant 0 : index
    %c0_54 = arith.constant 0 : index
    %135 = vector.load %arg7[%c0_53, %c0_54] : memref<1x128xf32, #tpu.memory_space<vmem>>, vector<1x128xf32>
    %c0_55 = arith.constant 0 : index
    %c0_56 = arith.constant 0 : index
    %136 = vector.load %arg8[%c0_55, %c0_56] : memref<1x128xf32, #tpu.memory_space<vmem>>, vector<1x128xf32>
    %cst_57 = arith.constant dense<0.000000e+00> : vector<64xf32>
    %137 = vector.multi_reduction <add>, %134, %cst_57 [1] : vector<64x128xf32> to vector<64xf32>
    %138 = vector.shape_cast %137 : vector<64xf32> to vector<64x1xf32>
    %cst_58 = arith.constant 1.280000e+02 : f32
    %139 = vector.broadcast %cst_58 : f32 to vector<64x1xf32>
    %140 = arith.divf %138, %139 : vector<64x1xf32>
    %141 = arith.mulf %134, %134 : vector<64x128xf32>
    %cst_59 = arith.constant dense<0.000000e+00> : vector<64xf32>
    %142 = vector.multi_reduction <add>, %141, %cst_59 [1] : vector<64x128xf32> to vector<64xf32>
    %143 = vector.shape_cast %142 : vector<64xf32> to vector<64x1xf32>
    %cst_60 = arith.constant 1.280000e+02 : f32
    %144 = vector.broadcast %cst_60 : f32 to vector<64x1xf32>
    %145 = arith.divf %143, %144 : vector<64x1xf32>
    %146 = arith.mulf %140, %140 : vector<64x1xf32>
    %147 = arith.subf %145, %146 : vector<64x1xf32>
    %cst_61 = arith.constant 0.000000e+00 : f32
    %148 = vector.broadcast %cst_61 : f32 to vector<64x1xf32>
    %149 = arith.maximumf %147, %148 : vector<64x1xf32>
    %150 = vector.broadcast %140 : vector<64x1xf32> to vector<64x128xf32>
    %151 = arith.subf %134, %150 : vector<64x128xf32>
    %cst_62 = arith.constant 9.99999974E-6 : f32
    %152 = vector.broadcast %cst_62 : f32 to vector<64x1xf32>
    %153 = arith.addf %149, %152 : vector<64x1xf32>
    %154 = math.rsqrt %153 : vector<64x1xf32>
    %155 = vector.broadcast %154 : vector<64x1xf32> to vector<64x128xf32>
    %156 = arith.mulf %151, %155 : vector<64x128xf32>
    %157 = vector.broadcast %135 : vector<1x128xf32> to vector<64x128xf32>
    %158 = arith.mulf %156, %157 : vector<64x128xf32>
    %159 = vector.broadcast %136 : vector<1x128xf32> to vector<64x128xf32>
    %160 = arith.addf %158, %159 : vector<64x128xf32>
    %161 = arith.truncf %160 : vector<64x128xf32> to vector<64x128xbf16>
    %cst_63 = arith.constant 0.000000e+00 : f32
    %162 = vector.broadcast %cst_63 : f32 to vector<64x128xf32>
    %c0_64 = arith.constant 0 : index
    %c0_65 = arith.constant 0 : index
    %163 = vector.load %arg9[%c0_64, %c0_65] : memref<128x512xbf16, #tpu.memory_space<vmem>>, vector<128x512xbf16>
    %cst_66 = arith.constant dense<0.000000e+00> : vector<64x512xf32>
    %164 = tpu.matmul %161, %163, %cst_66 {dimension_numbers = #tpu.dot_dimension_numbers<[1], [0], [0], [1], [0, 0, 1, 1], [], []>} : vector<64x128xbf16>, vector<128x512xbf16>, vector<64x512xf32> -> vector<64x512xf32>
    %cst_67 = arith.constant 0.000000e+00 : f32
    %165 = vector.broadcast %cst_67 : f32 to vector<64x512xf32>
    %166 = arith.maximumf %164, %165 : vector<64x512xf32>
    %167 = arith.truncf %166 : vector<64x512xf32> to vector<64x512xbf16>
    %c0_68 = arith.constant 0 : index
    %c0_69 = arith.constant 0 : index
    %168 = vector.load %arg10[%c0_68, %c0_69] : memref<512x128xbf16, #tpu.memory_space<vmem>>, vector<512x128xbf16>
    %cst_70 = arith.constant dense<0.000000e+00> : vector<64x128xf32>
    %169 = tpu.matmul %167, %168, %cst_70 {dimension_numbers = #tpu.dot_dimension_numbers<[1], [0], [0], [1], [0, 0, 1, 1], [], []>} : vector<64x512xbf16>, vector<512x128xbf16>, vector<64x128xf32> -> vector<64x128xf32>
    %170 = arith.addf %162, %169 : vector<64x128xf32>
    %171 = arith.addf %134, %170 : vector<64x128xf32>
    %c0_71 = arith.constant 0 : index
    %c0_72 = arith.constant 0 : index
    %172 = vector.load %arg11[%c0_71, %c0_72] : memref<64x128xf32, #tpu.memory_space<vmem>>, vector<64x128xf32>
    tpu.vector_store %arg11[%c0_71, %c0_72], %171 {strides = array<i32>} : memref<64x128xf32, #tpu.memory_space<vmem>>, vector<64x128xf32>,
    return
  }
  func.func @transform_0(%arg0: i32) -> (i32, i32) {
    %c0_i32 = arith.constant 0 : i32
    %c0_i32_0 = arith.constant 0 : i32
    return %arg0, %c0_i32 : i32, i32
  }
  func.func @transform_1(%arg0: i32) -> (i32, i32) {
    %c0_i32 = arith.constant 0 : i32
    %c0_i32_0 = arith.constant 0 : i32
    %c0_i32_1 = arith.constant 0 : i32
    return %c0_i32, %c0_i32_0 : i32, i32
  }
  func.func @transform_2(%arg0: i32) -> (i32, i32) {
    %c0_i32 = arith.constant 0 : i32
    %c0_i32_0 = arith.constant 0 : i32
    %c0_i32_1 = arith.constant 0 : i32
    return %c0_i32, %c0_i32_0 : i32, i32
  }
  func.func @transform_3(%arg0: i32) -> (i32, i32) {
    %c0_i32 = arith.constant 0 : i32
    %c0_i32_0 = arith.constant 0 : i32
    %c0_i32_1 = arith.constant 0 : i32
    return %c0_i32, %c0_i32_0 : i32, i32
  }
  func.func @transform_4(%arg0: i32) -> (i32, i32) {
    %c0_i32 = arith.constant 0 : i32
    %c0_i32_0 = arith.constant 0 : i32
    %c0_i32_1 = arith.constant 0 : i32
    return %c0_i32, %c0_i32_0 : i32, i32
  }
  func.func @transform_5(%arg0: i32) -> (i32, i32) {
    %c0_i32 = arith.constant 0 : i32
    %c0_i32_0 = arith.constant 0 : i32
    %c0_i32_1 = arith.constant 0 : i32
    return %c0_i32, %c0_i32_0 : i32, i32
  }
  func.func @transform_6(%arg0: i32) -> (i32, i32) {
    %c0_i32 = arith.constant 0 : i32
    %c0_i32_0 = arith.constant 0 : i32
    %c0_i32_1 = arith.constant 0 : i32
    return %c0_i32, %c0_i32_0 : i32, i32
  }
  func.func @transform_7(%arg0: i32) -> (i32, i32) {
    %c0_i32 = arith.constant 0 : i32
    %c0_i32_0 = arith.constant 0 : i32
    %c0_i32_1 = arith.constant 0 : i32
    return %c0_i32, %c0_i32_0 : i32, i32
  }
  func.func @transform_8(%arg0: i32) -> (i32, i32) {
    %c0_i32 = arith.constant 0 : i32
    %c0_i32_0 = arith.constant 0 : i32
    %c0_i32_1 = arith.constant 0 : i32
    return %c0_i32, %c0_i32_0 : i32, i32
  }
  func.func @transform_9(%arg0: i32) -> (i32, i32) {
    %c0_i32 = arith.constant 0 : i32
    %c0_i32_0 = arith.constant 0 : i32
    %c0_i32_1 = arith.constant 0 : i32
    return %c0_i32, %c0_i32_0 : i32, i32
  }
  func.func @transform_10(%arg0: i32) -> (i32, i32) {
    %c0_i32 = arith.constant 0 : i32
    %c0_i32_0 = arith.constant 0 : i32
    return %arg0, %c0_i32 : i32, i32
  }
}

</mosaic_0001>

<bundles_post_ra>
// kernel: tpu_custom_call.1
= control target key start
LH: loop header
LB: loop body
LE: loop exit
PB: predicated region body
PF: predicated region fallthrough
CT: control target
= control target key end

     0   :  { %s6195_s0 = inlined_call_operand.hbm [shape: f32[128,128], index: 0, kind: input, shape index: {}]   ;;  %s6196_s1 = inlined_call_operand.vmem [shape: f32[1,128], index: 1, kind: input, shape index: {}]   ;;  %s6197_s2 = inlined_call_operand.vmem [shape: f32[1,128], index: 2, kind: input, shape index: {}]   ;;  %s6198_s3 = inlined_call_operand.hbm [shape: bf16[128,384], index: 3, kind: input, shape index: {}]   ;;  %s6199_s4 = inlined_call_operand.hbm [shape: bf16[128,128], index: 4, kind: input, shape index: {}]   ;;  %s6200_s5 = inlined_call_operand.vmem [shape: f32[1,128], index: 5, kind: input, shape index: {}]   ;;  %s6201_s6 = inlined_call_operand.vmem [shape: f32[1,128], index: 6, kind: input, shape index: {}]   ;;  %s6202_s7 = inlined_call_operand.vmem [shape: f32[1,128], index: 7, kind: input, shape index: {}]   ;;  %s6203_s8 = inlined_call_operand.hbm [shape: bf16[128,512], index: 8, kind: input, shape index: {}]   ;;  %s6204_s9 = inlined_call_operand.hbm [shape: bf16[512,128], index: 9, kind: input, shape index: {}]   ;;  %s6205_s10 = inlined_call_operand.hbm [shape: f32[128,128], index: 10, kind: output, shape index: {}]  }
   0x1   :  { %6210 = sst [smem:[#allocation17_spill]] %s6198_s3 }
   0x2   :  { %6211 = sst [smem:[#allocation18_spill]] %s6199_s4 }
   0x3   :  { %6212 = sst [smem:[#allocation19_spill]] %s6203_s8 }
   0x4   :  { %6213 = sst [smem:[#allocation20_spill]] %s6204_s9 }
   0x5   :  { %15 = vsyncpa [#allocation4], 0 }
   0x6   :  { %17 = vsyncpa [#allocation4 + $0x1], 0 }
   0x7   :  { %18 = vsyncpa [#allocation7], 0 }
   0x8   :  { %19 = vsyncpa [#allocation10], 0 }
   0x9   :  { %20 = vsyncpa [#allocation5], 0 }
   0xa   :  { %22 = vsyncpa [#allocation5 + $0x1], 0  ;;  %s5100_s13 = smov 0   ;;  %s5102_s14 = smov 0  }
   0xb   :  { %s5104_s15 = smov 0   ;;  %s5106_s16 = smov 0  }
   0xc LB: > { %s5121_s17 = sadd.s32 4294967295, %s5023_s16   ;;  %s3785_s18 = sadd.s32 4294967294, %s5023_s16   ;;  %s5023_s16 = sphi %s5106_s16, %s6237_s16   ;;  %s5019_s15 = sphi %s5104_s15, %s6236_s15   ;;  %s5015_s14 = sphi %s5102_s14, %s6235_s14   ;;  %s5011_s13 = sphi %s5100_s13, %s6234_s13  }
   0xd   : > { %p48_p0 = scmp.ne.s32.totalorder %s5015_s14, %s5011_s13  ;;  %p6206_p1 = scmp.eq.s32.totalorder %s5121_s17, 0 }
   0xe   : > { %p267_p3 = scmp.eq.s32.totalorder %s3785_s18, 1  ;;  %p3786_p5 = scmp.ge.s32.totalorder %s5023_s16, 1 }
   0xf   : > { %p5130_p4 = por %p6206_p1, %p48_p0  ;;  %p274_p7 = scmp.lt.s32.totalorder %s5023_s16, 3 }
  0x10   : > { %p5135_p6 = por %p267_p3, %p48_p0  ;;  %s5025_s22 = smov [#allocation6]  }
  0x11   : > { %s6214_s19 = scalar_select %p5130_p4, 1, 0 }
  0x12   : > { %s6215_s20 = scalar_select %p5135_p6, 1, 0 }
  0x13   : > { %p5140_p8 = pnand %p3786_p5, %p274_p7  ;;  %s292_s23 = sshll.u32 %s5025_s22, 4  ;;  %s293_s23 = int_to_ptr.vmem [resolvable:$true] %s292_s23 }
  0x14   : > { %s5026_s25 = smov [#allocation9]   ;;  %s4830_s27 = scalar_lea.vmem %s293_s23, 3072 }
  0x15   : > { %s6216_s21 = scalar_select %p5140_p8, 1, 0 }
  0x16   : > { %p4402_p9 = pneg %p5140_p8  ;;  %s327_s26 = sshll.u32 %s5026_s25, 4  ;;  %s328_s26 = int_to_ptr.vmem [resolvable:$true] %s327_s26 }
  0x17   : > { %p4831_p13 = scmp.ne.s32.totalorder %s293_s23, %s4830_s27  ;;  %p4838_p5 = scmp.lt.s32.totalorder %s293_s23, %s293_s23 }
  0x18   : > { %p5149_p11 = pnand %p4402_p9, %p6206_p1  ;;  %p4839_p7 = scmp.lt.s32.totalorder %s4830_s27, %s4830_s27 }
  0x1a   : > { %p4821_p12 = pneg %p5149_p11  ;;  %p4840_p10 = por %p4839_p7, %p4838_p5 }
  0x1c   : > { %p4833_p0 = pnand %p4831_p13, %p4821_p12 }
  0x1e   : > { %p4834_p3 = pneg %p4833_p0 }
  0x20   : > { %p4841_p9 = pnand %p4840_p10, %p4834_p3 }
  0x22   : > { %4844 = shalt.err (!%p4841_p9)
}
  0x23   : > { %s5027_s28 = smov 192   ;;  %s5028_s29 = smov 12  }
  0x24   : > { %s6218_s3 = sld [smem:[#allocation17_spill]]  ;;  %s4856_s12 = scalar_lea.vmem %s328_s26, 4096 }
  0x25   : > { %p4857_p1 = scmp.ne.s32.totalorder %s328_s26, %s4856_s12  ;;  %p4864_p2 = scmp.lt.s32.totalorder %s328_s26, %s328_s26 }
  0x26   : > { %p4865_p6 = scmp.lt.s32.totalorder %s4856_s12, %s4856_s12 }
  0x27   : > { %p4859_p13 = pnand %p4857_p1, %p4821_p12 }
  0x28   : > { %p4866_p5 = por %p4865_p6, %p4864_p2 }
  0x29   : > { %p4860_p0 = pneg %p4859_p13 }
  0x2a   : > { %4405 = dma.hbm_to_vmem [thread:$0]  (!%p5149_p11), %s6218_s3, 3072, %s293_s23, [#allocation7], %s5027_s28, %s5027_s28, %s5028_s29  }
  0x2b   : > { %p4867_p10 = pnand %p4866_p5, %p4860_p0 }
  0x2d   : > { %4870 = shalt.err (!%p4867_p10)
}
  0x2e   : > { %s5029_s18 = smov 256   ;;  %s5030_s22 = smov 16  }
  0x2f   : > { %s6219_s8 = sld [smem:[#allocation19_spill]]  ;;  %s5031_s23 = smov [#allocation8]  }
  0x30   : > { %s305_s28 = sshll.u32 %s5031_s23, 4  ;;  %s306_s28 = int_to_ptr.vmem [resolvable:$true] %s305_s28 }
  0x31   : > { %s4882_s29 = scalar_lea.vmem %s306_s28, 1024  ;;  %p4890_p6 = scmp.lt.s32.totalorder %s306_s28, %s306_s28 }
  0x32   : > { %p4883_p1 = scmp.ne.s32.totalorder %s306_s28, %s4882_s29  ;;  %p4891_p7 = scmp.lt.s32.totalorder %s4882_s29, %s4882_s29 }
  0x34   : > { %p4885_p3 = pnand %p4883_p1, %p4821_p12  ;;  %p4892_p9 = por %p4891_p7, %p4890_p6 }
  0x35   : > { %4411 = dma.hbm_to_vmem [thread:$0]  (!%p5149_p11), %s6219_s8, 4096, %s328_s26, [#allocation10], %s5029_s18, %s5029_s18, %s5030_s22  }
  0x36   : > { %p4886_p2 = pneg %p4885_p3 }
  0x38   : > { %p4893_p13 = pnand %p4892_p9, %p4886_p2 }
  0x3a   : > { %4896 = shalt.err (!%p4893_p13)
}
  0x3b   : > { %s5032_s30 = smov 64   ;;  %s5033_s11 = smov 4  }
  0x3c   : > { %s6220_s4 = sld [smem:[#allocation18_spill]]  ;;  %s5034_s18 = smov [#allocation11]  }
  0x3d   : > { %s340_s22 = sshll.u32 %s5034_s18, 4  ;;  %s341_s22 = int_to_ptr.vmem [resolvable:$true] %s340_s22 }
  0x3e   : > { %s4908_s25 = scalar_lea.vmem %s341_s22, 4096  ;;  %p4916_p1 = scmp.lt.s32.totalorder %s341_s22, %s341_s22 }
  0x3f   : > { %p4909_p0 = scmp.ne.s32.totalorder %s341_s22, %s4908_s25  ;;  %p4917_p3 = scmp.lt.s32.totalorder %s4908_s25, %s4908_s25 }
  0x41   : > { %p4911_p5 = pnand %p4909_p0, %p4821_p12  ;;  %p4918_p2 = por %p4917_p3, %p4916_p1 }
  0x42   : > { %4408 = dma.hbm_to_vmem [thread:$0]  (!%p5149_p11), %s6220_s4, 1024, %s306_s28, [#allocation7], %s5032_s30, %s5032_s30, %s5033_s11  }
  0x43   : > { %p4912_p10 = pneg %p4911_p5 }
  0x45   : > { %p4919_p6 = pnand %p4918_p2, %p4912_p10 }
  0x47   : > { %4922 = shalt.err (!%p4919_p6)
}
  0x48   : > { %s6221_s9 = sld [smem:[#allocation20_spill]]  ;;  %s5188_s28 = sadd.s32 1, %s5023_s16  }
  0x49   : > { %s35_s29 = sadd.s32 1, %s5019_s15  ;;  %s32_s24 = ssub.s32 %s5023_s16, %s5188_s28 }
  0x4a   : > { %p42_p12 = scmp.ne.s32.totalorder %s5019_s15, %s5015_s14  ;;  %p33_p7 = scmp.eq.s32.totalorder %s32_s24, 0 }
  0x4b   : > { %p43_p9 = scmp.eq.s32.totalorder %s5023_s16, 0  ;;  %p6222_p13 = scmp.eq.s32.totalorder %s5121_s17, 1 }
  0x4c   : > { %p4427_p5 = scmp.lt.s32.totalorder %s5023_s16, 2  ;;  %s354_s18 = sand.u32 1, %s5019_s15  }
  0x4d   : > { %p5198_p0 = por %p6222_p13, %p42_p12  ;;  %p44_p10 = por %p43_p9, %p42_p12 }
  0x4e   : > { %4414 = dma.hbm_to_vmem [thread:$0]  (!%p5149_p11), %s6221_s9, 4096, %s341_s22, [#allocation10], %s5032_s30, %s5032_s30, %s5033_s11  }
  0x4f   : > { %s6223_s26 = scalar_select %p5198_p0, 1, 0 }
  0x50   : > { %s5204_s12 = scalar_select %p33_p7, %s5019_s15, %s35_s29  }
  0x51   : > { %s3792_s25 = sshll.u32 %s354_s18, 6  ;;  %s4004_s30 = sshll.u32 %s5023_s16, 10 }
  0x52   : > { %s5211_s27 = scalar_lea.hbm %s6195_s0, %s4004_s30  ;;  %s358_s23 = scalar_lea.vmem [#allocation3], %s3792_s25 }
  0x53   : > { %s365_s24 = sshll.u32 %s358_s23, 4  ;;  %p5215_p11 = pnand %p4427_p5, %p44_p10  ;;  %s5213_s24 = int_to_ptr.vmem [resolvable:$true] %s365_s24 }
  0x54   : > { %s5219_s29 = scalar_lea.sflag [#allocation4], %s354_s18  ;;  %s4923_s4 = scalar_lea.hbm %s5211_s27, 1024 }
  0x55   : > { %p4924_p1 = scmp.ne.s32.totalorder %s5211_s27, %s4923_s4  ;;  %p4925_p3 = pneg %p5215_p11 }
  0x56   : > { %s4928_s25 = scalar_lea.hbm %s6195_s0, 2048  ;;  %p4929_p12 = scmp.lt.s32.totalorder %s5211_s27, %s6195_s0 }
  0x57   : > { %p4926_p2 = pnand %p4925_p3, %p4924_p1  ;;  %p4930_p7 = scmp.lt.s32.totalorder %s4928_s25, %s4923_s4 }
  0x59   : > { %p4927_p6 = pneg %p4926_p2  ;;  %p4931_p9 = por %p4930_p7, %p4929_p12 }
  0x5b   : > { %p4932_p13 = pnand %p4931_p9, %p4927_p6 }
  0x5d   : > { %4935 = shalt.err (!%p4932_p13)
}
  0x5e   : > { %s4936_s18 = scalar_lea.vmem %s5213_s24, 1024  ;;  %s5035_s8 = smov [#allocation3]  }
  0x5f   : > { %p4937_p5 = scmp.ne.s32.totalorder %s5213_s24, %s4936_s18  ;;  %s4941_s9 = sshll.u32 %s5035_s8, 4  ;;  %s4942_s9 = int_to_ptr.vmem [resolvable:$false] %s4941_s9 }
  0x60   : > { %s4943_s30 = scalar_lea.vmem %s4942_s9, 2048  ;;  %p4944_p2 = scmp.lt.s32.totalorder %s5213_s24, %s4942_s9 }
  0x61   : > { %p4939_p10 = pnand %p4937_p5, %p4925_p3  ;;  %p4945_p0 = scmp.lt.s32.totalorder %s4943_s30, %s4936_s18 }
  0x63   : > { %p4940_p1 = pneg %p4939_p10  ;;  %p4946_p4 = por %p4945_p0, %p4944_p2 }
  0x65   : > { %p4947_p8 = pnand %p4946_p4, %p4940_p1 }
  0x67   : > { %4950 = shalt.err (!%p4947_p8)
}
  0x68   : > { %s5036_s4 = smov 128   ;;  %s5037_s11 = smov 8  }
  0x69   : > { %4418 = dma.hbm_to_vmem [thread:$0]  (!%p5215_p11), %s5211_s27, 1024, %s5213_s24, %s5219_s29, %s5036_s4, %s5036_s4, %s5037_s11  }
  0x6a   : > { %p6225_p3 = scmp.ne.s32.totalorder %s6216_s21, 0 }
  0x6b   : > { %s5243_s8 = sand.u32 (!%p6225_p3), 1, %s5015_s14   ;;  %p6226_p4 = scmp.ne.s32.totalorder (!%p6225_p3), %s6214_s19, 0 }
  0x6c   : > { %377 = sbr.rel (%p6225_p3) target bundleno = 3458 (0xd82), region = 60  ;;  %s3796_s9 = sshll.u32 (!%p6225_p3), %s5243_s8, 6 }
  0x6d   : > { %s380_s25 = scalar_lea.sflag (!%p6225_p3), [#allocation4], %s5243_s8  ;;  %s5249_s22 = scalar_lea.vmem (!%p6225_p3), [#allocation3], %s3796_s9 }
  0x71   : > { %4994 = dma.done.wait (%p6226_p4), %s380_s25, 1024  }
  0x72   : > { %4996 = vsyncadd (%p6226_p4), %s380_s25, 4294966272  ;;  %p6227_p8 = scmp.eq.s32.totalorder %s5121_s17, 0 }
  0x74   : > { %4998 = dma.done.wait (%p6227_p8), [#allocation7], 4096   ;;  %p6228_p0 = pmov %p6227_p8 }
  0x76   : > { %5000 = vsyncadd (%p6228_p0), [#allocation7], 4294963200  ;;  %p6229_p11 = pmov %p6228_p0 }
  0x77   : > { %p6230_p6 = pmov %p6228_p0 }
  0x78   : > { %5002 = dma.done.wait (%p6229_p11), [#allocation10], 8192  }
  0x79   : > { %5004 = vsyncadd (%p6230_p6), [#allocation10], 4294959104  ;;  %v5264_v0 = vld [vmem:[%s5249_s22] sm:$0xff]  ;;  %v5267_v1 = vld [vmem:[%s5249_s22 + $0x8] sm:$0xff]  ;;  %v5038_v39 = vmov 0   ;;  %vm1071_vm0 = vcmask 261120  }
  0x7a   : > { %449 = vadd.xlane.f32.xlu0 %v5264_v0  ;;  %v474_v2 = vmul.f32 %v5264_v0, %v5264_v0  ;;  %v475_v3 = vmul.f32 %v5267_v1, %v5267_v1  ;;  %v5275_v4 = vld [vmem:[%s5249_s22 + $0x10] sm:$0xff]  ;;  %v5279_v5 = vld [vmem:[%s5249_s22 + $0x18] sm:$0xff]  ;;  %v5288_v8 = vld [vmem:[%s5249_s22 + $0x20] sm:$0xff]  ;;  %786 = vmatprep.mubr.bf16.mxu0 %v5038_v39  ;;  %vm1169_vm4 = vcmask 523264   ;;  %s5039_s24 = smov 96   ;;  %s5040_s29 = smov 64  }
  0x7b   : > { %v476_v6 = vmul.f32 %v5275_v4, %v5275_v4  ;;  %v477_v7 = vmul.f32 %v5279_v5, %v5279_v5  ;;  %v4483_v9 = vld [vmem:[#allocation6 + $0xac] ss:$12 sps:$4 sm:$0xff]   ;;  %v4485_v11 = vld [vmem:[#allocation6 + $0xa8] ss:$12 sps:$4 sm:$0xff]   ;;  %v478_v12 = vmul.f32 %v5288_v8, %v5288_v8  ;;  %v4488_v14 = vld [vmem:[#allocation6 + $0x90] ss:$12 sps:$4 sm:$0xff]  }
  0x7c   : > { %482 = vadd.xlane.f32.xlu1 %v474_v2  ;;  %v5291_v10 = vld [vmem:[%s5249_s22 + $0x28] sm:$0xff]  ;;  %754 = vmatprep.subr.bf16.mxu0 %v4483_v9  ;;  %v4486_v13 = vld [vmem:[#allocation6 + $0x94] ss:$12 sps:$4 sm:$0xff]   ;;  %v5303_v17 = vld [vmem:[%s5249_s22 + $0x38] sm:$0xff]  ;;  %s5041_s23 = smov 32   ;;  %vm2569_vm10 = vcmask 785408  }
  0x7d   : > { %755 = vmatpush1.bf16.msra.mxu0 %v4485_v11  ;;  %v479_v15 = vmul.f32 %v5291_v10, %v5291_v10  ;;  %v5300_v16 = vld [vmem:[%s5249_s22 + $0x30] sm:$0xff]  ;;  %v4489_v18 = vld [vmem:[#allocation6 + $0x7c] ss:$12 sps:$4 sm:$0xff]   ;;  %v4492_v20 = vld [vmem:[#allocation6 + $0x78] ss:$12 sps:$4 sm:$0xff]   ;;  %v481_v24 = vmul.f32 %v5303_v17, %v5303_v17  ;;  %s6128_s3 = scalar_lea.vmem [#allocation12], %s3796_s9 }
  0x7e   : > { %451 = vadd.xlane.f32.xlu0 %v5267_v1  ;;  %756 = vmatprep.subr.bf16.mxu0 %v4486_v13  ;;  %v4491_v19 = vld [vmem:[#allocation6 + $0xb0] ss:$12 sps:$4 sm:$0xff]   ;;  %v480_v21 = vmul.f32 %v5300_v16, %v5300_v16  ;;  %v4495_v23 = vld [vmem:[#allocation6 + $0x98] ss:$12 sps:$4 sm:$0xff]   ;;  %v4496_v25 = vld [vmem:[#allocation6 + $0x60] ss:$12 sps:$4 sm:$0xff]  }
  0x7f   : > { %4190 = vmatprep.subr.bf16.mxu1 %v4491_v19  ;;  %v4493_v22 = vld [vmem:[#allocation6 + $0x64] ss:$12 sps:$4 sm:$0xff]   ;;  %v4497_v26 = vld [vmem:[#allocation6 + $0x4c] ss:$12 sps:$4 sm:$0xff]   ;;  %v4500_v28 = vld [vmem:[#allocation6 + $0x48] ss:$12 sps:$4 sm:$0xff]  }
  0x80   : > { %484 = vadd.xlane.f32.xlu1 %v475_v3  ;;  %4191 = vmatpush3.bf16.msra.mxu1 %v4491_v19  ;;  %v4499_v27 = vld [vmem:[#allocation6 + $0x80] ss:$12 sps:$4 sm:$0xff]   ;;  %v4503_v30 = vld [vmem:[#allocation6 + $0x68] ss:$12 sps:$4 sm:$0xff]   ;;  %v4504_v31 = vld [vmem:[#allocation6 + $0x30] ss:$12 sps:$4 sm:$0xff]  }
  0x81   : > { %757 = vmatpush1.bf16.msra.mxu0 %v4488_v14  ;;  %4192 = vmatprep.subr.bf16.mxu1 %v4495_v23  ;;  %v4501_v29 = vld [vmem:[#allocation6 + $0x34] ss:$12 sps:$4 sm:$0xff]   ;;  %v4505_v32 = vld [vmem:[#allocation6 + $0x1c] ss:$12 sps:$4 sm:$0xff]   ;;  %v4508_v34 = vld [vmem:[#allocation6 + $0x18] ss:$12 sps:$4 sm:$0xff]  }
  0x82   : > { %453 = vadd.xlane.f32.xlu0 %v5275_v4  ;;  %758 = vmatprep.subr.bf16.mxu0 %v4489_v18  ;;  %v4507_v33 = vld [vmem:[#allocation6 + $0x50] ss:$12 sps:$4 sm:$0xff]   ;;  %v4511_v36 = vld [vmem:[#allocation6 + $0x38] ss:$12 sps:$4 sm:$0xff]   ;;  %v4512_v37 = vld [vmem:[#allocation6] ss:$12 sps:$4 sm:$0xff]  }
  0x83   : > { %v4509_v35 = vld [vmem:[#allocation6 + $0x4] ss:$12 sps:$4 sm:$0xff]   ;;  %v4513_v38 = vld [vmem:[#allocation6 + $0x20] ss:$12 sps:$4 sm:$0xff]   ;;  %v4514_v40 = vld [vmem:[#allocation6 + $0x8] ss:$12 sps:$4 sm:$0xff]  }
  0x84   : > { %455 = vadd.xlane.f32.xlu1 %v5279_v5  ;;  %4193 = vmatpush3.bf16.msra.mxu1 %v4495_v23  ;;  %s4021_s9 = sshll.u32 %s5121_s17, 10  ;;  %s3674_s19 = sshll.u32 %s6128_s3, 4  ;;  %s6150_s19 = int_to_ptr.vmem [resolvable:$true] %s3674_s19 }
  0x85   : > { %759 = vmatpush1.bf16.msra.mxu0 %v4492_v20  ;;  %4194 = vmatprep.subr.bf16.mxu1 %v4499_v27  ;;  %p6231_p7 = scmp.ne.s32.totalorder %s6223_s26, 0  ;;  %s5042_s17 = smov [#allocation12]  }
  0x86   : > { %486 = vadd.xlane.f32.xlu0 %v476_v6  ;;  %760 = vmatprep.subr.bf16.mxu0 %v4493_v22  ;;  %s4955_s18 = sshll.u32 %s5042_s17, 4  ;;  %s4956_s18 = int_to_ptr.vmem [resolvable:$false] %s4955_s18 }
  0x87   : > { %s4957_s30 = scalar_lea.vmem %s4956_s18, 2048  ;;  %p4958_p5 = scmp.lt.s32.totalorder %s6150_s19, %s4956_s18 }
  0x88   : > { %488 = vadd.xlane.f32.xlu1 %v477_v7  ;;  %4195 = vmatpush3.bf16.msra.mxu1 %v4499_v27 }
  0x89   : > { %761 = vmatpush1.bf16.msra.mxu0 %v4496_v25  ;;  %4196 = vmatprep.subr.bf16.mxu1 %v4503_v30 }
  0x8a   : > { %457 = vadd.xlane.f32.xlu0 %v5288_v8  ;;  %762 = vmatprep.subr.bf16.mxu0 %v4497_v26 }
  0x8c   : > { %459 = vadd.xlane.f32.xlu1 %v5291_v10  ;;  %4197 = vmatpush3.bf16.msra.mxu1 %v4503_v30 }
  0x8d   : > { %763 = vmatpush1.bf16.msra.mxu0 %v4500_v28  ;;  %4198 = vmatprep.subr.bf16.mxu1 %v4507_v33 }
  0x8e   : > { %490 = vadd.xlane.f32.xlu0 %v478_v12  ;;  %764 = vmatprep.subr.bf16.mxu0 %v4501_v29 }
  0x90   : > { %492 = vadd.xlane.f32.xlu1 %v479_v15  ;;  %4199 = vmatpush3.bf16.msra.mxu1 %v4507_v33 }
  0x91   : > { %765 = vmatpush1.bf16.msra.mxu0 %v4504_v31  ;;  %4200 = vmatprep.subr.bf16.mxu1 %v4511_v36 }
  0x92   : > { %461 = vadd.xlane.f32.xlu0 %v5300_v16  ;;  %766 = vmatprep.subr.bf16.mxu0 %v4505_v32 }
  0x94   : > { %463 = vadd.xlane.f32.xlu1 %v5303_v17  ;;  %4201 = vmatpush3.bf16.msra.mxu1 %v4511_v36 }
  0x95   : > { %767 = vmatpush1.bf16.msra.mxu0 %v4508_v34  ;;  %4202 = vmatprep.subr.bf16.mxu1 %v4513_v38  ;;  %v5334_v34 = vld [vmem:[%s6196_s1] ss:$0 sm:$0xff] }
  0x96   : > { %494 = vadd.xlane.f32.xlu0 %v480_v21  ;;  %768 = vmatprep.subr.bf16.mxu0 %v4509_v35 }
  0x98   : > { %496 = vadd.xlane.f32.xlu1 %v481_v24  ;;  %4203 = vmatpush3.bf16.msra.mxu1 %v4513_v38 }
  0x99   : > { %769 = vmatpush1.bf16.msra.mxu0 %v4512_v37  ;;  %4204 = vmatprep.subr.bf16.mxu1 %v4514_v40 }
  0x9c   : > { %4205 = vmatpush3.bf16.msra.mxu1 %v4514_v40 }
 0x103   : > { %v450_v41 = vpop.xlane.xlu0 %449 }
 0x104   : > { %v466_v42 = vmul.f32 0.0078125, %v450_v41 }
 0x105   : > { %v483_v43 = vpop.xlane.xlu1 %482 }
 0x106   : > { %v506_v44 = vmul.f32 %v466_v42, %v466_v42  ;;  %v498_v45 = vmul.f32 0.0078125, %v483_v43  ;;  %v530_v24 = vsub.f32 %v5264_v0, %v466_v42 }
 0x107   : > { %v452_v46 = vpop.xlane.xlu0 %451 }
 0x108   : > { %v514_v47 = vsub.f32 %v498_v45, %v506_v44  ;;  %v467_v48 = vmul.f32 0.0078125, %v452_v46 }
 0x109   : > { %v485_v49 = vpop.xlane.xlu1 %484 }
 0x10a   : > { %v522_v50 = vmax.f32 %v514_v47, 0.0  ;;  %v507_v51 = vmul.f32 %v467_v48, %v467_v48  ;;  %v499_v52 = vmul.f32 0.0078125, %v485_v49  ;;  %v531_v36 = vsub.f32 %v5267_v1, %v467_v48  ;;  %v3803_v1 = vld [vmem:[%s6197_s2] ss:$0 sm:$0xff] }
 0x10b   : > { %v454_v53 = vpop.xlane.xlu0 %453 }
 0x10c   : > { %v538_v54 = vadd.f32 1e-05, %v522_v50  ;;  %v515_v55 = vsub.f32 %v499_v52, %v507_v51  ;;  %v5312_v56 = vmul.f32 0.0078125, %v454_v53 }
 0x10d   : > { %v456_v57 = vpop.xlane.xlu1 %455 }
 0x10e   : > { %4651 = vrsqrt.f32 %v538_v54  ;;  %v523_v58 = vmax.f32 %v515_v55, 0.0  ;;  %v508_v59 = vmul.f32 %v5312_v56, %v5312_v56  ;;  %v5316_v60 = vmul.f32 0.0078125, %v456_v57 }
 0x10f   : > { %v487_v61 = vpop.xlane.xlu0 %486  ;;  %v532_v53 = vsub.f32 %v5275_v4, %v5312_v56 }
 0x110   : > { %v539_v62 = vadd.f32 1e-05, %v523_v58  ;;  %v500_v63 = vmul.f32 0.0078125, %v487_v61  ;;  %v509_v3 = vmul.f32 %v5316_v60, %v5316_v60  ;;  %v533_v61 = vsub.f32 %v5279_v5, %v5316_v60 }
 0x111   : > { %v489_v2 = vpop.xlane.xlu1 %488 }
 0x112   : > { %4653 = vrsqrt.f32 %v539_v62  ;;  %v516_v6 = vsub.f32 %v500_v63, %v508_v59  ;;  %v501_v7 = vmul.f32 0.0078125, %v489_v2 }
 0x113   : > { %v458_v9 = vpop.xlane.xlu0 %457 }
 0x114   : > { %v524_v11 = vmax.f32 %v516_v6, 0.0  ;;  %v517_v12 = vsub.f32 %v501_v7, %v509_v3  ;;  %v5320_v13 = vmul.f32 0.0078125, %v458_v9 }
 0x115   : > { %v460_v14 = vpop.xlane.xlu1 %459 }
 0x116   : > { %v540_v15 = vadd.f32 1e-05, %v524_v11  ;;  %v525_v18 = vmax.f32 %v517_v12, 0.0  ;;  %v510_v19 = vmul.f32 %v5320_v13, %v5320_v13  ;;  %v5324_v20 = vmul.f32 0.0078125, %v460_v14 }
 0x117   : > { %v491_v21 = vpop.xlane.xlu0 %490  ;;  %v534_v5 = vsub.f32 %v5288_v8, %v5320_v13 }
 0x118   : > { %4655 = vrsqrt.f32 %v540_v15  ;;  %v541_v22 = vadd.f32 1e-05, %v525_v18  ;;  %v502_v23 = vmul.f32 0.0078125, %v491_v21  ;;  %v511_v26 = vmul.f32 %v5324_v20, %v5324_v20 }
 0x119   : > { %v493_v25 = vpop.xlane.xlu1 %492  ;;  %v535_v14 = vsub.f32 %v5291_v10, %v5324_v20 }
 0x11a   : > { %4657 = vrsqrt.f32 %v541_v22  ;;  %v518_v27 = vsub.f32 %v502_v23, %v510_v19  ;;  %v503_v28 = vmul.f32 0.0078125, %v493_v25 }
 0x11b   : > { %v4652_v29 = vpop.eup %4651  ;;  %v462_v30 = vpop.xlane.xlu0 %461 }
 0x11c   : > { %v526_v31 = vmax.f32 %v518_v27, 0.0  ;;  %v519_v32 = vsub.f32 %v503_v28, %v511_v26  ;;  %v5329_v33 = vmul.f32 0.0078125, %v462_v30  ;;  %v554_v35 = vmul.f32 %v4652_v29, %v530_v24 }
 0x11d   : > { %v464_v0 = vpop.xlane.xlu1 %463 }
 0x11e   : > { %v542_v37 = vadd.f32 1e-05, %v526_v31  ;;  %v527_v38 = vmax.f32 %v519_v32, 0.0  ;;  %v512_v40 = vmul.f32 %v5329_v33, %v5329_v33  ;;  %v473_v42 = vmul.f32 0.0078125, %v464_v0 }
 0x11f   : > { %v4654_v41 = vpop.eup %4653  ;;  %v495_v43 = vpop.xlane.xlu0 %494  ;;  %v568_v44 = vmul.f32 %v5334_v34, %v554_v35  ;;  %v536_v8 = vsub.f32 %v5300_v16, %v5329_v33 }
 0x120   : > { %4659 = vrsqrt.f32 %v542_v37  ;;  %v543_v45 = vadd.f32 1e-05, %v527_v38  ;;  %v504_v46 = vmul.f32 0.0078125, %v495_v43  ;;  %v555_v47 = vmul.f32 %v4654_v41, %v531_v36 }
 0x121   : > { %v513_v49 = vmul.f32 %v473_v42, %v473_v42  ;;  %v497_v50 = vpop.xlane.xlu1 %496  ;;  %v582_v57 = vadd.f32 %v3803_v1, %v568_v44  ;;  %v537_v10 = vsub.f32 %v5303_v17, %v473_v42 }
 0x122   : > { %4661 = vrsqrt.f32 %v543_v45  ;;  %v520_v48 = vsub.f32 %v504_v46, %v512_v40  ;;  %v505_v51 = vmul.f32 0.0078125, %v497_v50  ;;  %v569_v52 = vmul.f32 %v5334_v34, %v555_v47 }
 0x124   : > { %v528_v54 = vmax.f32 %v520_v48, 0.0  ;;  %v521_v55 = vsub.f32 %v505_v51, %v513_v49  ;;  %v583_v58 = vadd.f32 %v3803_v1, %v569_v52 }
 0x125   : > { %v4656_v59 = vpop.eup %4655 }
 0x126   : > { %v544_v62 = vadd.f32 1e-05, %v528_v54  ;;  %v529_v63 = vmax.f32 %v521_v55, 0.0  ;;  %v590_v2 = vpack.c.bf16 %v583_v58, %v582_v57  ;;  %v556_v3 = vmul.f32 %v4656_v59, %v532_v53 }
 0x127   : > { %v4658_v6 = vpop.eup %4657 }
 0x128   : > { %4663 = vrsqrt.f32 %v544_v62  ;;  %v545_v7 = vadd.f32 1e-05, %v529_v63  ;;  %787 = vmatmul.mubr.bf16.vlgmr.msra.gmra.mxu0 %v590_v2  ;;  %4206 = vmatprep.mubr.bf16.mxu1 %v590_v2  ;;  %v557_v9 = vmul.f32 %v4658_v6, %v533_v61  ;;  %v570_v4 = vmul.f32 %v5334_v34, %v556_v3 }
 0x129   : > { %796 = vmatprep.mubr.bf16.mxu0 %v5038_v39 }
 0x12a   : > { %4665 = vrsqrt.f32 %v545_v7  ;;  %v571_v56 = vmul.f32 %v5334_v34, %v557_v9  ;;  %v584_v60 = vadd.f32 %v3803_v1, %v570_v4 }
 0x12c   : > { %v585_v11 = vadd.f32 %v3803_v1, %v571_v56 }
 0x12d   : > { %v4660_v12 = vpop.eup %4659 }
 0x12e   : > { %v591_v15 = vpack.c.bf16 %v585_v11, %v584_v60  ;;  %v558_v18 = vmul.f32 %v4660_v12, %v534_v5 }
 0x12f   : > { %v4662_v19 = vpop.eup %4661 }
 0x130   : > { %797 = vmatmul.mubr.bf16.gmra.mxu0 %v591_v15  ;;  %4207 = vmatmul.mubr.bf16.vlgmr.msra.gmra.mxu1 %v591_v15  ;;  %v559_v21 = vmul.f32 %v4662_v19, %v535_v14  ;;  %v572_v22 = vmul.f32 %v5334_v34, %v558_v18 }
 0x131   : > { %806 = vmatprep.mubr.bf16.mxu0 %v5038_v39 }
 0x132   : > { %v573_v23 = vmul.f32 %v5334_v34, %v559_v21  ;;  %v586_v13 = vadd.f32 %v3803_v1, %v572_v22 }
 0x134   : > { %v587_v24 = vadd.f32 %v3803_v1, %v573_v23 }
 0x135   : > { %v4664_v25 = vpop.eup %4663 }
 0x136   : > { %v592_v20 = vpack.c.bf16 %v587_v24, %v586_v13  ;;  %v560_v26 = vmul.f32 %v4664_v25, %v536_v8 }
 0x137   : > { %v4666_v27 = vpop.eup %4665 }
 0x138   : > { %807 = vmatmul.mubr.bf16.gmra.mxu0 %v592_v20  ;;  %4210 = vmatprep.mubr.bf16.mxu1 %v592_v20  ;;  %v561_v28 = vmul.f32 %v4666_v27, %v537_v10  ;;  %v574_v29 = vmul.f32 %v5334_v34, %v560_v26  ;;  %v988_v27 = vlaneseq }
 0x139   : > { %816 = vmatprep.mubr.bf16.mxu0 %v5038_v39 }
 0x13a   : > { %v575_v30 = vmul.f32 %v5334_v34, %v561_v28  ;;  %v588_v31 = vadd.f32 %v3803_v1, %v574_v29  ;;  %v5376_v28 = vshrl.u32 %v988_v27, 7 }
 0x13c   : > { %v589_v32 = vadd.f32 %v3803_v1, %v575_v30  ;;  %v5379_v29 = vadd.s32 16, %v5376_v28  ;;  %v5381_v30 = vand.u32 127, %v988_v27 }
 0x13e   : > { %v593_v16 = vpack.c.bf16 %v589_v32, %v588_v31  ;;  %v5384_v31 = vadd.s32 24, %v5376_v28  ;;  %vm999_vm1 = vcmp.le.s32.totalorder %v5381_v30, %v5376_v28  ;;  %vm1001_vm2 = vcmp.le.s32.totalorder %v5381_v30, %v5379_v29 }
 0x140   : > { %817 = vmatmul.mubr.bf16.gmra.mxu0 %v593_v16  ;;  %4211 = vmatmul.mubr.bf16.gmra.mxu1 %v593_v16  ;;  %v5389_v16 = vadd.s32 8, %v5376_v28  ;;  %vm1002_vm3 = vcmp.le.s32.totalorder %v5381_v30, %v5384_v31 }
 0x142   : > { %vm1000_vm5 = vcmp.le.s32.totalorder %v5381_v30, %v5389_v16 }
 0x1e8   : > { %v788_v33 = vpop.f32.mrf.mxu0 }
 0x1ea   : > { %v790_v35 = vpop.f32.mrf.mxu0 }
 0x1eb   : > { %v4005_v17 = vpack.c.bf16 %v790_v35, %v788_v33 }
 0x1ec   : > { %v792_v0 = vpop.f32.mrf.mxu0 }
 0x1ed   : > { %972 = vst [vmem:[#allocation2] sm:$0xff] %v4005_v17 }
 0x1ee   : > { %v794_v36 = vpop.f32.mrf.mxu0 }
 0x1ef   : > { %v4007_v37 = vpack.c.bf16 %v794_v36, %v792_v0  ;;  %v5402_v36 = vadd.s32 32, %v5376_v28 }
 0x1f0   : > { %v798_v38 = vpop.f32.mrf.mxu0  ;;  %v4208_v40 = vpop.f32.mrf.mxu1 }
 0x1f1   : > { %974 = vst [vmem:[#allocation2 + $0xc] sm:$0xff] %v4007_v37  ;;  %v4010_v41 = vpack.c.bf16 %v4208_v40, %v4208_v40  ;;  %vm1003_vm6 = vcmp.le.s32.totalorder %v5381_v30, %v5402_v36 }
 0x1f2   : > { %v800_v42 = vpop.f32.mrf.mxu0  ;;  %v861_v43 = vpop.f32.mrf.mxu1 }
 0x1f3   : > { %977 = vst [vmem:[#allocation2 + $0x20] sm:$0xf] %v4010_v41  ;;  %v4009_v34 = vpack.c.bf16 %v800_v42, %v798_v38  ;;  %v4006_v44 = vpack.c.bf16 %v861_v43, %v861_v43  ;;  %v5412_v42 = vadd.s32 48, %v5376_v28  ;;  %v5415_v43 = vadd.s32 56, %v5376_v28 }
 0x1f4   : > { %v802_v45 = vpop.f32.mrf.mxu0  ;;  %v4209_v46 = vpop.f32.mrf.mxu1 }
 0x1f5   : > { %976 = vst [vmem:[#allocation2 + $0x18] sm:$0xff] %v4009_v34  ;;  %973 = vst [vmem:[#allocation2 + $0x8] sm:$0xf] %v4006_v44  ;;  %v4012_v47 = vpack.c.bf16 %v4209_v46, %v4209_v46  ;;  %v5424_v46 = vadd.s32 40, %v5376_v28  ;;  %vm1005_vm7 = vcmp.le.s32.totalorder %v5381_v30, %v5412_v42  ;;  %vm1006_vm8 = vcmp.le.s32.totalorder %v5381_v30, %v5415_v43 }
 0x1f6   : > { %v804_v49 = vpop.f32.mrf.mxu0  ;;  %v864_v50 = vpop.f32.mrf.mxu1 }
 0x1f7   : > { %979 = vst [vmem:[#allocation2 + $0x2c] sm:$0xf] %v4012_v47  ;;  %v4011_v1 = vpack.c.bf16 %v804_v49, %v802_v45  ;;  %v4008_v48 = vpack.c.bf16 %v864_v50, %v864_v50  ;;  %vm1004_vm9 = vcmp.le.s32.totalorder %v5381_v30, %v5424_v46 }
 0x1f8   : > { %v808_v51 = vpop.f32.mrf.mxu0  ;;  %v4515_v52 = vld [vmem:[#allocation2] ss:$12 sps:$4 sm:$0xff]   ;;  %v4523_v13 = vld [vmem:[#allocation2 + $0x4] ss:$12 sps:$4 sm:$0xff]  }
 0x1f9   : > { %978 = vst [vmem:[#allocation2 + $0x24] sm:$0xff] %v4011_v1  ;;  %975 = vst [vmem:[#allocation2 + $0x14] sm:$0xf] %v4008_v48  ;;  %4222 = vmatprep.mubr.msk.bf16.mxu0 %vm1071_vm0, %v4515_v52  ;;  %v1085_v25 = vsel %vm1071_vm0, %v4523_v13, 0 }
 0x1fa   : > { %v810_v53 = vpop.f32.mrf.mxu0 }
 0x1fb   : > { %v4013_v54 = vpack.c.bf16 %v810_v53, %v808_v51 }
 0x1fc   : > { %v812_v55 = vpop.f32.mrf.mxu0 }
 0x1fd   : > { %980 = vst [vmem:[#allocation2 + $0x30] sm:$0xff] %v4013_v54 }
 0x1fe   : > { %v814_v57 = vpop.f32.mrf.mxu0  ;;  %v4520_v21 = vld [vmem:[#allocation2 + $0x20] ss:$12 sps:$4 sm:$0xff]  }
 0x1ff   : > { %v4015_v58 = vpack.c.bf16 %v814_v57, %v812_v55 }
 0x200   : > { %v818_v59 = vpop.f32.mrf.mxu0  ;;  %v4212_v61 = vpop.f32.mrf.mxu1  ;;  %v4521_v22 = vld [vmem:[#allocation2 + $0x8] ss:$12 sps:$4 sm:$0xff]   ;;  %v4524_v10 = vld [vmem:[#allocation2 + $0x18] ss:$12 sps:$4 sm:$0xff]  }
 0x201   : > { %982 = vst [vmem:[#allocation2 + $0x3c] sm:$0xff] %v4015_v58  ;;  %v4018_v62 = vpack.c.bf16 %v4212_v61, %v4212_v61  ;;  %v4522_v23 = vld [vmem:[#allocation2 + $0x1c] ss:$12 sps:$4 sm:$0xff]  }
 0x202   : > { %v820_v63 = vpop.f32.mrf.mxu0  ;;  %v877_v2 = vpop.f32.mrf.mxu1  ;;  %v1088_v24 = vsel %vm1071_vm0, %v4522_v23, 0  ;;  %v4528_v61 = vld [vmem:[#allocation2 + $0x1c] ss:$12 sps:$4 sm:$0xff]  }
 0x203   : > { %985 = vst [vmem:[#allocation2 + $0x50] sm:$0xf] %v4018_v62  ;;  %v4017_v3 = vpack.c.bf16 %v820_v63, %v818_v59  ;;  %v4014_v6 = vpack.c.bf16 %v877_v2, %v877_v2 }
 0x204   : > { %v822_v7 = vpop.f32.mrf.mxu0  ;;  %v4213_v9 = vpop.f32.mrf.mxu1 }
 0x205   : > { %984 = vst [vmem:[#allocation2 + $0x48] sm:$0xff] %v4017_v3  ;;  %981 = vst [vmem:[#allocation2 + $0x38] sm:$0xf] %v4014_v6  ;;  %v4020_v4 = vpack.c.bf16 %v4213_v9, %v4213_v9 }
 0x206   : > { %v824_v56 = vpop.f32.mrf.mxu0  ;;  %v880_v5 = vpop.f32.mrf.mxu1 }
 0x207   : > { %987 = vst [vmem:[#allocation2 + $0x5c] sm:$0xf] %v4020_v4  ;;  %v4019_v60 = vpack.c.bf16 %v824_v56, %v822_v7  ;;  %v4016_v11 = vpack.c.bf16 %v880_v5, %v880_v5 }
 0x208   : > { %v4519_v19 = vld [vmem:[#allocation2 + $0x34] ss:$12 sps:$4 sm:$0xff]   ;;  %v4525_v20 = vld [vmem:[#allocation2 + $0x30] ss:$12 sps:$4 sm:$0xff]  }
 0x209   : > { %986 = vst [vmem:[#allocation2 + $0x54] sm:$0xff] %v4019_v60  ;;  %983 = vst [vmem:[#allocation2 + $0x44] sm:$0xf] %v4016_v11  ;;  %v1091_v8 = vsel %vm1071_vm0, %v4519_v19, 0  ;;  %v4527_v59 = vld [vmem:[#allocation2 + $0x34] ss:$12 sps:$4 sm:$0xff]  }
 0x20e   : > { %v4516_v12 = vld [vmem:[#allocation2 + $0x50] ss:$12 sps:$4 sm:$0xff]  }
 0x20f   : > { %4230 = vmatprep.subr.bf16.mxu1 %v4516_v12  ;;  %v4559_v46 = vld [vmem:[#allocation2 + $0x50] ss:$12 sps:$4 sm:$0xff]  }
 0x210   : > { %v4517_v14 = vld [vmem:[#allocation2 + $0x4c] ss:$12 sps:$4 sm:$0xff]   ;;  %4231 = vmatpush3.bf16.msra.mxu1 %v4516_v12  ;;  %v4526_v26 = vld [vmem:[#allocation2 + $0x48] ss:$12 sps:$4 sm:$0xff]  }
 0x211   : > { %v4518_v15 = vld [vmem:[#allocation2 + $0x38] ss:$12 sps:$4 sm:$0xff]   ;;  %4366 = vmatprep.subr.msk.bf16.mxu0 %vm1071_vm0, %v4517_v14  ;;  %v1094_v18 = vsel %vm1071_vm0, %v4517_v14, 0 }
 0x212   : > { %4232 = vmatprep.subr.bf16.mxu1 %v4518_v15  ;;  %4215 = vmatpush3.bf16.xpose.msra.mxu0 %v1094_v18 }
 0x213   : > { %4367 = vmatprep.subr.msk.bf16.mxu0 %vm1071_vm0, %v4519_v19 }
 0x214   : > { %4233 = vmatpush3.bf16.msra.mxu1 %v4518_v15 }
 0x215   : > { %4234 = vmatprep.subr.bf16.mxu1 %v4520_v21 }
 0x218   : > { %4235 = vmatpush3.bf16.msra.mxu1 %v4520_v21 }
 0x219   : > { %4236 = vmatprep.subr.bf16.mxu1 %v4521_v22 }
 0x21a   : > { %4217 = vmatpush3.bf16.xpose.msra.mxu0 %v1091_v8  ;;  %v4529_v8 = vld [vmem:[#allocation2 + $0x4c] ss:$12 sps:$4 sm:$0xff]  }
 0x21b   : > { %4368 = vmatprep.subr.msk.bf16.mxu0 %vm1071_vm0, %v4522_v23 }
 0x21c   : > { %4237 = vmatpush3.bf16.msra.mxu1 %v4521_v22 }
 0x222   : > { %4219 = vmatpush3.bf16.xpose.msra.mxu0 %v1088_v24  ;;  %v4530_v24 = vld [vmem:[#allocation2 + $0x4c] ss:$12 sps:$4 sm:$0xff]  }
 0x223   : > { %4369 = vmatprep.subr.msk.bf16.mxu0 %vm1071_vm0, %v4523_v13 }
 0x22a   : > { %4221 = vmatpush3.bf16.xpose.msra.mxu0 %v1085_v25 }
 0x231   : > { %4223 = vmatmul.mubr.msk.bf16.vlgmr.msra.gmra.mxu0 %vm1071_vm0, %v4524_v10 }
 0x232   : > { %4226 = vmatprep.mubr.msk.bf16.mxu0 %vm1071_vm0, %v4525_v20 }
 0x239   : > { %4227 = vmatmul.mubr.msk.bf16.gmra.mxu0 %vm1071_vm0, %v4526_v26 }
 0x2f1   : > { %v4224_v32 = vpop.f32.mrf.mxu0 }
 0x2f2   : > { %v1163_v37 = vsel %vm1001_vm2, %v4224_v32, -1e+30 }
 0x2f3   : > { %v1130_v33 = vpop.f32.mrf.mxu0  ;;  %v1176_v45 = vsel %vm1169_vm4, %v1163_v37, -inf }
 0x2f4   : > { %v1161_v35 = vsel %vm999_vm1, %v1130_v33, -1e+30 }
 0x2f5   : > { %v4225_v17 = vpop.f32.mrf.mxu0  ;;  %v1170_v0 = vsel %vm1169_vm4, %v1161_v35, -inf }
 0x2f6   : > { %v1164_v38 = vsel %vm1002_vm3, %v4225_v17, -1e+30  ;;  %1171 = vmax.xlane.f32.xlu0 %v1170_v0 }
 0x2f7   : > { %v1133_v40 = vpop.f32.mrf.mxu0  ;;  %v1179_v41 = vsel %vm1169_vm4, %v1164_v38, -inf }
 0x2f8   : > { %v1162_v34 = vsel %vm1000_vm5, %v1133_v40, -1e+30  ;;  %1180 = vmax.xlane.f32.xlu1 %v1179_v41 }
 0x2f9   : > { %v4228_v44 = vpop.f32.mrf.mxu0  ;;  %v1173_v49 = vsel %vm1169_vm4, %v1162_v34, -inf }
 0x2fa   : > { %1177 = vmax.xlane.f32.xlu0 %v1176_v45  ;;  %v1167_v51 = vsel %vm1005_vm7, %v4228_v44, -1e+30 }
 0x2fb   : > { %v1146_v47 = vpop.f32.mrf.mxu0  ;;  %v1188_v57 = vsel %vm1169_vm4, %v1167_v51, -inf }
 0x2fc   : > { %v5434_v50 = vsel %vm1003_vm6, %v1146_v47, -1e+30  ;;  %1174 = vmax.xlane.f32.xlu1 %v1173_v49 }
 0x2fd   : > { %v4229_v1 = vpop.f32.mrf.mxu0  ;;  %v1182_v48 = vsel %vm1169_vm4, %v5434_v50, -inf }
 0x2fe   : > { %v1168_v52 = vsel %vm1006_vm8, %v4229_v1, -1e+30  ;;  %1183 = vmax.xlane.f32.xlu0 %v1182_v48  ;;  %v4532_v1 = vld [vmem:[#allocation2 + $0x18] ss:$12 sps:$4 sm:$0xff]  }
 0x2ff   : > { %v1149_v53 = vpop.f32.mrf.mxu0  ;;  %v1191_v54 = vsel %vm1169_vm4, %v1168_v52, -inf  ;;  %v4533_v48 = vld [vmem:[#allocation2 + $0x4] ss:$12 sps:$4 sm:$0xff]  }
 0x300   : > { %v1166_v55 = vsel %vm1004_vm9, %v1149_v53, -1e+30  ;;  %1192 = vmax.xlane.f32.xlu1 %v1191_v54  ;;  %v4536_v53 = vld [vmem:[#allocation2 + $0x4] ss:$12 sps:$4 sm:$0xff]   ;;  %v4537_v54 = vld [vmem:[#allocation2 + $0x1c] ss:$12 sps:$4 sm:$0xff]  }
 0x301   : > { %v1185_v58 = vsel %vm1169_vm4, %v1166_v55, -inf }
 0x302   : > { %1189 = vmax.xlane.f32.xlu0 %v1188_v57  ;;  %v4539_v57 = vld [vmem:[#allocation2 + $0x48] ss:$12 sps:$4 sm:$0xff]  }
 0x304   : > { %1186 = vmax.xlane.f32.xlu1 %v1185_v58  ;;  %v4540_v58 = vld [vmem:[#allocation2 + $0x48] ss:$12 sps:$4 sm:$0xff]  }
 0x315   : > { %1443 = vrot.lane.b32.xlu1 %v4527_v59, %s5039_s24  ;;  %v4541_v59 = vld [vmem:[#allocation2] ss:$12 sps:$4 sm:$0xff]  }
 0x319   : > { %1441 = vrot.lane.b32.xlu1 %v4528_v61, %s5039_s24  ;;  %v4542_v61 = vld [vmem:[#allocation2 + $0x30] ss:$12 sps:$4 sm:$0xff]  }
 0x37f   : > { %v1172_v62 = vpop.xlane.xlu0 %1171 }
 0x380   : > { %v1194_v63 = vsub.f32 %v1161_v35, %v1172_v62 }
 0x381   : > { %v1181_v2 = vpop.xlane.xlu1 %1180 }
 0x382   : > { %v1197_v3 = vsub.f32 %v1164_v38, %v1181_v2  ;;  %v1202_v4 = vmul.f32 1.442695, %v1194_v63 }
 0x383   : > { %v1178_v6 = vpop.xlane.xlu0 %1177 }
 0x384   : > { %v1208_v7 = vmul.f32 1.442695, %v1197_v3  ;;  %v1196_v9 = vsub.f32 %v1163_v37, %v1178_v6 }
 0x385   : > { %v1175_v56 = vpop.xlane.xlu1 %1174 }
 0x386   : > { %4667 = vpow2.f32 %v1208_v7  ;;  %v1206_v5 = vmul.f32 1.442695, %v1196_v9  ;;  %v1195_v60 = vsub.f32 %v1162_v34, %v1175_v56 }
 0x387   : > { %v1184_v13 = vpop.xlane.xlu0 %1183 }
 0x388   : > { %4669 = vpow2.f32 %v1206_v5  ;;  %v1204_v11 = vmul.f32 1.442695, %v1195_v60  ;;  %v1198_v35 = vsub.f32 %v5434_v50, %v1184_v13  ;;  %v4531_v50 = vld [vmem:[#allocation2 + $0x34] ss:$12 sps:$4 sm:$0xff]  }
 0x389   : > { %4671 = vpow2.f32 %v1202_v4  ;;  %v1193_v25 = vpop.xlane.xlu1 %1192 }
 0x38a   : > { %4673 = vpow2.f32 %v1204_v11  ;;  %v1201_v20 = vsub.f32 %v1168_v52, %v1193_v25  ;;  %v1210_v37 = vmul.f32 1.442695, %v1198_v35  ;;  %v4535_v52 = vld [vmem:[#allocation2] ss:$12 sps:$4 sm:$0xff]  }
 0x38b   : > { %v1190_v10 = vpop.xlane.xlu0 %1189 }
 0x38c   : > { %v1200_v27 = vsub.f32 %v1167_v51, %v1190_v10  ;;  %v1216_v32 = vmul.f32 1.442695, %v1201_v20  ;;  %v4534_v51 = vld [vmem:[#allocation2 + $0x30] ss:$12 sps:$4 sm:$0xff]  }
 0x38d   : > { %v1187_v26 = vpop.xlane.xlu1 %1186 }
 0x38e   : > { %v1199_v33 = vsub.f32 %v1166_v55, %v1187_v26  ;;  %v1214_v17 = vmul.f32 1.442695, %v1200_v27  ;;  %4675 = vpow2.f32 %v1216_v32  ;;  %v4538_v55 = vld [vmem:[#allocation2 + $0x18] ss:$12 sps:$4 sm:$0xff]  }
 0x390   : > { %v1212_v0 = vmul.f32 1.442695, %v1199_v33  ;;  %4677 = vpow2.f32 %v1214_v17 }
 0x391   : > { %v1444_v62 = vpop.permute.xlu1 %1443 }
 0x392   : > { %4679 = vpow2.f32 %v1212_v0  ;;  %v1466_v10 = vsel %vm1071_vm0, %v1444_v62, 0 }
 0x393   : > { %v5454_v12 = vpop.eup %4667  ;;  %4681 = vpow2.f32 %v1210_v37 }
 0x394   : > { %v1227_v14 = vsel %vm1169_vm4, %v5454_v12, 0.0 }
 0x395   : > { %v5458_v15 = vpop.eup %4669  ;;  %1228 = vadd.xlane.f32.xlu1 %v1227_v14  ;;  %v1442_v63 = vpop.permute.xlu1 %1441 }
 0x396   : > { %v5460_v18 = vpop.eup %4671  ;;  %v1224_v19 = vsel %vm1169_vm4, %v5458_v15, 0.0 }
 0x397   : > { %v5464_v21 = vpop.eup %4673  ;;  %1225 = vadd.xlane.f32.xlu0 %v1224_v19  ;;  %v1218_v23 = vsel %vm1169_vm4, %v5460_v18, 0.0 }
 0x398   : > { %v1221_v22 = vsel %vm1169_vm4, %v5464_v21, 0.0 }
 0x399   : > { %1222 = vadd.xlane.f32.xlu1 %v1221_v22 }
 0x39b   : > { %1219 = vadd.xlane.f32.xlu0 %v1218_v23  ;;  %v5473_v38 = vpop.eup %4675 }
 0x39c   : > { %v1239_v41 = vsel %vm1169_vm4, %v5473_v38, 0.0 }
 0x39d   : > { %v5475_v40 = vpop.eup %4677 }
 0x39e   : > { %v1236_v44 = vsel %vm1169_vm4, %v5475_v40, 0.0 }
 0x39f   : > { %v5479_v34 = vpop.eup %4679 }
 0x3a0   : > { %v5483_v45 = vpop.eup %4681  ;;  %v1233_v47 = vsel %vm1169_vm4, %v5479_v34, 0.0 }
 0x3a1   : > { %v1230_v49 = vsel %vm1169_vm4, %v5483_v45, 0.0 }
 0x3aa   : > { %1827 = vrot.lane.b32.xlu1 %v4529_v8, %s5040_s29 }
 0x3b1   : > { %1445 = vrot.lane.b32.xlu0 %v4530_v24, %s5039_s24 }
 0x3ce   : > { %1240 = vadd.xlane.f32.xlu1 %v1239_v41 }
 0x3d0   : > { %1237 = vadd.xlane.f32.xlu0 %v1236_v44 }
 0x3d2   : > { %1234 = vadd.xlane.f32.xlu1 %v1233_v47 }
 0x3d4   : > { %1231 = vadd.xlane.f32.xlu0 %v1230_v49 }
 0x3e3   : > { %1825 = vrot.lane.b32.xlu1 %v4531_v50, %s5040_s29 }
 0x3e7   : > { %1413 = vrot.lane.b32.xlu1 %v4532_v1, %s5039_s24 }
 0x3ea   : > { %1439 = vrot.lane.b32.xlu0 %v4533_v48, %s5039_s24 }
 0x3eb   : > { %1415 = vrot.lane.b32.xlu1 %v4534_v51, %s5039_s24 }
 0x3ee   : > { %1411 = vrot.lane.b32.xlu0 %v4535_v52, %s5039_s24 }
 0x3ef   : > { %1821 = vrot.lane.b32.xlu1 %v4536_v53, %s5040_s29 }
 0x3f2   : > { %1823 = vrot.lane.b32.xlu0 %v4537_v54, %s5040_s29 }
 0x3f3   : > { %1795 = vrot.lane.b32.xlu1 %v4538_v55, %s5040_s29 }
 0x3f6   : > { %1417 = vrot.lane.b32.xlu0 %v4539_v57, %s5039_s24 }
 0x3f7   : > { %1799 = vrot.lane.b32.xlu1 %v4540_v58, %s5040_s29 }
 0x3fa   : > { %1793 = vrot.lane.b32.xlu0 %v4541_v59, %s5040_s29 }
 0x3fe   : > { %1797 = vrot.lane.b32.xlu0 %v4542_v61, %s5040_s29 }
 0x41e   : > { %v1229_v2 = vpop.xlane.xlu1 %1228 }
 0x420   : > { %v1226_v3 = vpop.xlane.xlu0 %1225 }
 0x421   : > { %4683 = vrcp.f32 %v1226_v3 }
 0x422   : > { %v1223_v6 = vpop.xlane.xlu1 %1222 }
 0x423   : > { %4685 = vrcp.f32 %v1223_v6 }
 0x424   : > { %4687 = vrcp.f32 %v1229_v2  ;;  %v1220_v7 = vpop.xlane.xlu0 %1219 }
 0x425   : > { %4689 = vrcp.f32 %v1220_v7 }
 0x426   : > { %v1828_v9 = vpop.permute.xlu1 %1827 }
 0x427   : > { %4374 = vmatprep.subr.msk.bf16.mxu0 %vm1071_vm0, %v1828_v9  ;;  %v1851_v4 = vsel %vm1071_vm0, %v1828_v9, 0 }
 0x428   : > { %v1446_v56 = vpop.permute.xlu0 %1445  ;;  %4279 = vmatpush3.bf16.xpose.msra.mxu0 %v1851_v4 }
 0x429   : > { %4370 = vmatprep.subr.msk.bf16.mxu1 %vm1071_vm0, %v1446_v56  ;;  %v1469_v25 = vsel %vm1071_vm0, %v1446_v56, 0 }
 0x42e   : > { %v4684_v5 = vpop.eup %4683 }
 0x42f   : > { %v1252_v19 = vmul.f32 %v4684_v5, %v5458_v15  ;;  %v1463_v15 = vsel %vm1071_vm0, %v1442_v63, 0 }
 0x430   : > { %v4686_v60 = vpop.eup %4685 }
 0x431   : > { %v4688_v11 = vpop.eup %4687  ;;  %v1251_v23 = vmul.f32 %v4686_v60, %v5464_v21 }
 0x432   : > { %v4690_v14 = vpop.eup %4689  ;;  %v1253_v8 = vmul.f32 %v4688_v11, %v5454_v12 }
 0x433   : > { %v1250_v22 = vmul.f32 %v4690_v14, %v5460_v18 }
 0x434   : > { %v1259_v24 = vpack.c.bf16 %v1253_v8, %v1252_v19 }
 0x435   : > { %v1258_v13 = vpack.c.bf16 %v1251_v23, %v1250_v22 }
 0x437   : > { %4238 = vmatprep.mubr.msk.bf16.mxu1 %vm1169_vm4, %v1258_v13 }
 0x438   : > { %4239 = vmatmul.mubr.msk.bf16.vlgmr.msra.gmra.mxu1 %vm1169_vm4, %v1259_v24 }
 0x439   : > { %4247 = vmatpush3.bf16.xpose.msra.mxu1 %v1469_v25 }
 0x43a   : > { %4371 = vmatprep.subr.msk.bf16.mxu1 %vm1071_vm0, %v1444_v62 }
 0x441   : > { %4249 = vmatpush3.bf16.xpose.msra.mxu1 %v1466_v10 }
 0x442   : > { %4372 = vmatprep.subr.msk.bf16.mxu1 %vm1071_vm0, %v1442_v63 }
 0x449   : > { %4251 = vmatpush3.bf16.xpose.msra.mxu1 %v1463_v15 }
 0x457   : > { %v1241_v12 = vpop.xlane.xlu1 %1240 }
 0x459   : > { %v1238_v18 = vpop.xlane.xlu0 %1237 }
 0x45a   : > { %4691 = vrcp.f32 %v1238_v18 }
 0x45b   : > { %v1235_v21 = vpop.xlane.xlu1 %1234 }
 0x45c   : > { %4693 = vrcp.f32 %v1235_v21 }
 0x45d   : > { %4695 = vrcp.f32 %v1241_v12  ;;  %v1232_v20 = vpop.xlane.xlu0 %1231 }
 0x45e   : > { %4697 = vrcp.f32 %v1232_v20 }
 0x45f   : > { %v1826_v26 = vpop.permute.xlu1 %1825 }
 0x460   : > { %4375 = vmatprep.subr.msk.bf16.mxu0 %vm1071_vm0, %v1826_v26  ;;  %v1848_v27 = vsel %vm1071_vm0, %v1826_v26, 0 }
 0x461   : > { %v1440_v32 = vpop.permute.xlu0 %1439  ;;  %4281 = vmatpush3.bf16.xpose.msra.mxu0 %v1848_v27 }
 0x462   : > { %4373 = vmatprep.subr.msk.bf16.mxu1 %vm1071_vm0, %v1440_v32  ;;  %v1460_v33 = vsel %vm1071_vm0, %v1440_v32, 0 }
 0x463   : > { %4253 = vmatpush3.bf16.xpose.msra.mxu1 %v1460_v33  ;;  %v1414_v35 = vpop.permute.xlu1 %1413 }
 0x465   : > { %v1412_v17 = vpop.permute.xlu0 %1411 }
 0x467   : > { %v1416_v0 = vpop.permute.xlu1 %1415  ;;  %v4692_v37 = vpop.eup %4691 }
 0x468   : > { %v1256_v48 = vmul.f32 %v4692_v37, %v5475_v40 }
 0x469   : > { %v4694_v41 = vpop.eup %4693  ;;  %v1824_v44 = vpop.permute.xlu0 %1823 }
 0x46a   : > { %v4696_v47 = vpop.eup %4695  ;;  %4376 = vmatprep.subr.msk.bf16.mxu0 %vm1071_vm0, %v1824_v44  ;;  %v1845_v49 = vsel %vm1071_vm0, %v1824_v44, 0  ;;  %v1255_v52 = vmul.f32 %v4694_v41, %v5479_v34 }
 0x46b   : > { %v4698_v50 = vpop.eup %4697  ;;  %4283 = vmatpush3.bf16.xpose.msra.mxu0 %v1845_v49  ;;  %v1822_v1 = vpop.permute.xlu1 %1821  ;;  %v1257_v54 = vmul.f32 %v4696_v47, %v5473_v38 }
 0x46c   : > { %4377 = vmatprep.subr.msk.bf16.mxu0 %vm1071_vm0, %v1822_v1  ;;  %v1254_v51 = vmul.f32 %v4698_v50, %v5483_v45  ;;  %v1842_v40 = vsel %vm1071_vm0, %v1822_v1, 0 }
 0x46d   : > { %v1418_v53 = vpop.permute.xlu0 %1417  ;;  %v1261_v57 = vpack.c.bf16 %v1257_v54, %v1256_v48 }
 0x46e   : > { %v1260_v55 = vpack.c.bf16 %v1255_v52, %v1254_v51 }
 0x46f   : > { %v1796_v45 = vpop.permute.xlu1 %1795 }
 0x470   : > { %4242 = vmatprep.mubr.msk.bf16.mxu1 %vm1169_vm4, %v1260_v55 }
 0x471   : > { %v1794_v58 = vpop.permute.xlu0 %1793  ;;  %4243 = vmatmul.mubr.msk.bf16.gmra.mxu1 %vm1169_vm4, %v1261_v57 }
 0x472   : > { %4254 = vmatprep.mubr.msk.bf16.mxu1 %vm1071_vm0, %v1412_v17  ;;  %4286 = vmatprep.mubr.msk.bf16.mxu0 %vm1071_vm0, %v1794_v58 }
 0x473   : > { %4285 = vmatpush3.bf16.xpose.msra.mxu0 %v1842_v40  ;;  %v1800_v38 = vpop.permute.xlu1 %1799 }
 0x475   : > { %v1798_v34 = vpop.permute.xlu0 %1797 }
 0x479   : > { %4255 = vmatmul.mubr.msk.bf16.vlgmr.msra.gmra.mxu1 %vm1071_vm0, %v1414_v35 }
 0x47a   : > { %4258 = vmatprep.mubr.msk.bf16.mxu1 %vm1071_vm0, %v1416_v0  ;;  %4287 = vmatmul.mubr.msk.bf16.vlgmr.msra.gmra.mxu0 %vm1071_vm0, %v1796_v45 }
 0x47b   : > { %4290 = vmatprep.mubr.msk.bf16.mxu0 %vm1071_vm0, %v1798_v34 }
 0x481   : > { %4259 = vmatmul.mubr.msk.bf16.gmra.mxu1 %vm1071_vm0, %v1418_v53 }
 0x482   : > { %4291 = vmatmul.mubr.msk.bf16.gmra.mxu0 %vm1071_vm0, %v1800_v38 }
 0x4f8   : > { %v5537_v59 = vpop.f32.mrf.mxu1 }
 0x4fa   : > { %v5539_v61 = vpop.f32.mrf.mxu1 }
 0x4fc   : > { %v5541_v62 = vpop.f32.mrf.mxu1 }
 0x4fd   : > { %v1364_v63 = vpack.c.bf16 %v5541_v62, %v5537_v59 }
 0x4fe   : > { %v5545_v2 = vpop.f32.mrf.mxu1 }
 0x4ff   : > { %v1363_v3 = vpack.c.bf16 %v5545_v2, %v5539_v61 }
 0x531   : > { %v5549_v6 = vpop.f32.mrf.mxu1 }
 0x533   : > { %v5551_v7 = vpop.f32.mrf.mxu1 }
 0x535   : > { %v5553_v9 = vpop.f32.mrf.mxu1 }
 0x536   : > { %v1366_v4 = vpack.c.bf16 %v5553_v9, %v5549_v6  ;;  %v3924_v6 = vld [vmem:[%s6200_s5] ss:$0 sm:$0xff] }
 0x537   : > { %v5557_v56 = vpop.f32.mrf.mxu1 }
 0x538   : > { %v1365_v5 = vpack.c.bf16 %v5557_v56, %v5551_v7 }
 0x539   : > { %v4256_v60 = vpop.f32.mrf.mxu1 }
 0x53a   : > { %v4288_v11 = vpop.f32.mrf.mxu0  ;;  %v5599_v17 = vsel %vm1001_vm2, %v4256_v60, -1e+30 }
 0x53b   : > { %v1505_v14 = vpop.f32.mrf.mxu1  ;;  %v5571_v13 = vsel %vm1001_vm2, %v4288_v11, -1e+30  ;;  %v1550_v44 = vsel %vm1169_vm4, %v5599_v17, -inf }
 0x53c   : > { %v1887_v19 = vpop.f32.mrf.mxu0  ;;  %v1932_v12 = vsel %vm1169_vm4, %v5571_v13, -inf  ;;  %v5613_v49 = vsel %vm999_vm1, %v1505_v14, -1e+30 }
 0x53d   : > { %v5564_v22 = vsel %vm999_vm1, %v1887_v19, -1e+30  ;;  %v4257_v24 = vpop.f32.mrf.mxu1  ;;  %v1544_v48 = vsel %vm1169_vm4, %v5613_v49, -inf }
 0x53e   : > { %v4289_v23 = vpop.f32.mrf.mxu0  ;;  %v1926_v8 = vsel %vm1169_vm4, %v5564_v22, -inf  ;;  %v5627_v52 = vsel %vm1002_vm3, %v4257_v24, -1e+30  ;;  %v4543_v24 = vld [vmem:[#allocation2 + $0x50] ss:$12 sps:$4 sm:$0xff]  }
 0x53f   : > { %1927 = vmax.xlane.f32.xlu0 %v1926_v8  ;;  %v5585_v21 = vsel %vm1002_vm3, %v4289_v23, -1e+30  ;;  %v1508_v20 = vpop.f32.mrf.mxu1  ;;  %v1553_v55 = vsel %vm1169_vm4, %v5627_v52, -inf }
 0x540   : > { %v1890_v25 = vpop.f32.mrf.mxu0  ;;  %v1935_v33 = vsel %vm1169_vm4, %v5585_v21, -inf  ;;  %v5618_v50 = vsel %vm1000_vm5, %v1508_v20, -1e+30 }
 0x541   : > { %v5576_v10 = vsel %vm1000_vm5, %v1890_v25, -1e+30  ;;  %v4260_v0 = vpop.f32.mrf.mxu1  ;;  %v1547_v51 = vsel %vm1169_vm4, %v5618_v50, -inf  ;;  %v4544_v25 = vld [vmem:[#allocation2 + $0x20] ss:$12 sps:$4 sm:$0xff]  }
 0x542   : > { %v4292_v15 = vpop.f32.mrf.mxu0  ;;  %v1929_v18 = vsel %vm1169_vm4, %v5576_v10, -inf  ;;  %v5641_v58 = vsel %vm1005_vm7, %v4260_v0, -1e+30 }
 0x543   : > { %1933 = vmax.xlane.f32.xlu0 %v1932_v12  ;;  %1930 = vmax.xlane.f32.xlu1 %v1929_v18  ;;  %v1521_v1 = vpop.f32.mrf.mxu1  ;;  %v1562_v34 = vsel %vm1169_vm4, %v5641_v58, -inf  ;;  %v5669_v23 = vsel %vm1005_vm7, %v4292_v15, -1e+30  ;;  %v4545_v12 = vld [vmem:[#allocation2 + $0x8] ss:$12 sps:$4 sm:$0xff]  }
 0x544   : > { %v1903_v26 = vpop.f32.mrf.mxu0  ;;  %v5655_v60 = vsel %vm1003_vm6, %v1521_v1, -1e+30  ;;  %v1944_v8 = vsel %vm1169_vm4, %v5669_v23, -inf  ;;  %v4546_v18 = vld [vmem:[#allocation2 + $0x50] ss:$12 sps:$4 sm:$0xff]  }
 0x545   : > { %v5590_v27 = vsel %vm1003_vm6, %v1903_v26, -1e+30  ;;  %v4261_v54 = vpop.f32.mrf.mxu1  ;;  %v1556_v14 = vsel %vm1169_vm4, %v5655_v60, -inf  ;;  %v4547_v15 = vld [vmem:[#allocation2 + $0x20] ss:$12 sps:$4 sm:$0xff]  }
 0x546   : > { %v4293_v32 = vpop.f32.mrf.mxu0  ;;  %v1938_v35 = vsel %vm1169_vm4, %v5590_v27, -inf  ;;  %v5646_v40 = vsel %vm1006_vm8, %v4261_v54, -1e+30 }
 0x547   : > { %1936 = vmax.xlane.f32.xlu1 %v1935_v33  ;;  %1939 = vmax.xlane.f32.xlu0 %v1938_v35  ;;  %v5632_v53 = vsel %vm1006_vm8, %v4293_v32, -1e+30  ;;  %v1524_v45 = vpop.f32.mrf.mxu1  ;;  %v1565_v38 = vsel %vm1169_vm4, %v5646_v40, -inf }
 0x548   : > { %v1906_v37 = vpop.f32.mrf.mxu0  ;;  %v1947_v57 = vsel %vm1169_vm4, %v5632_v53, -inf  ;;  %v5660_v11 = vsel %vm1004_vm9, %v1524_v45, -1e+30 }
 0x549   : > { %v5604_v41 = vsel %vm1004_vm9, %v1906_v37, -1e+30  ;;  %v1559_v19 = vsel %vm1169_vm4, %v5660_v11, -inf }
 0x54a   : > { %v1941_v47 = vsel %vm1169_vm4, %v5604_v41, -inf }
 0x54b   : > { %1551 = vmax.xlane.f32.xlu0 %v1550_v44  ;;  %1942 = vmax.xlane.f32.xlu1 %v1941_v47 }
 0x54f   : > { %1545 = vmax.xlane.f32.xlu0 %v1544_v48  ;;  %1548 = vmax.xlane.f32.xlu1 %v1547_v51 }
 0x553   : > { %1554 = vmax.xlane.f32.xlu0 %v1553_v55  ;;  %1948 = vmax.xlane.f32.xlu1 %v1947_v57 }
 0x557   : > { %1563 = vmax.xlane.f32.xlu0 %v1562_v34  ;;  %1566 = vmax.xlane.f32.xlu1 %v1565_v38 }
 0x55b   : > { %1557 = vmax.xlane.f32.xlu0 %v1556_v14  ;;  %1560 = vmax.xlane.f32.xlu1 %v1559_v19 }
 0x55f   : > { %1945 = vmax.xlane.f32.xlu0 %v1944_v8 }
 0x575   : > { %1662 = vrot.lane.b32.xlu0 %v4543_v24, %s5039_s24 }
 0x579   : > { %1658 = vrot.lane.b32.xlu0 %v4544_v25, %s5039_s24 }
 0x57d   : > { %1656 = vrot.lane.b32.xlu0 %v4545_v12, %s5039_s24 }
 0x581   : > { %2044 = vrot.lane.b32.xlu0 %v4546_v18, %s5040_s29 }
 0x585   : > { %2040 = vrot.lane.b32.xlu0 %v4547_v15, %s5040_s29 }
 0x5c8   : > { %v1928_v20 = vpop.xlane.xlu0 %1927 }
 0x5c9   : > { %v1950_v26 = vsub.f32 %v5564_v22, %v1928_v20 }
 0x5cb   : > { %v1958_v32 = vmul.f32 1.442695, %v1950_v26 }
 0x5cc   : > { %v1934_v33 = vpop.xlane.xlu0 %1933  ;;  %v1931_v35 = vpop.xlane.xlu1 %1930 }
 0x5cd   : > { %4699 = vpow2.f32 %v1958_v32  ;;  %v1952_v0 = vsub.f32 %v5571_v13, %v1934_v33  ;;  %v1951_v37 = vsub.f32 %v5576_v10, %v1931_v35 }
 0x5cf   : > { %v1960_v44 = vmul.f32 1.442695, %v1951_v37  ;;  %v1962_v47 = vmul.f32 1.442695, %v1952_v0 }
 0x5d0   : > { %v5681_v1 = vpop.xlane.xlu0 %1939  ;;  %v1937_v48 = vpop.xlane.xlu1 %1936 }
 0x5d1   : > { %v1953_v51 = vsub.f32 %v5585_v21, %v1937_v48  ;;  %4701 = vpow2.f32 %v1960_v44 }
 0x5d2   : > { %4703 = vpow2.f32 %v1962_v47 }
 0x5d3   : > { %v1964_v54 = vmul.f32 1.442695, %v1953_v51 }
 0x5d4   : > { %v1552_v55 = vpop.xlane.xlu0 %1551  ;;  %v1943_v22 = vpop.xlane.xlu1 %1942 }
 0x5d5   : > { %v1570_v57 = vsub.f32 %v5599_v17, %v1552_v55  ;;  %v1955_v45 = vsub.f32 %v5604_v41, %v1943_v22  ;;  %4705 = vpow2.f32 %v1964_v54 }
 0x5d7   : > { %v1968_v34 = vmul.f32 1.442695, %v1955_v45  ;;  %v1580_v13 = vmul.f32 1.442695, %v1570_v57 }
 0x5d8   : > { %v1546_v10 = vpop.xlane.xlu0 %1545  ;;  %v1549_v41 = vpop.xlane.xlu1 %1548 }
 0x5d9   : > { %v1568_v38 = vsub.f32 %v5613_v49, %v1546_v10  ;;  %4707 = vpow2.f32 %v1968_v34  ;;  %v4548_v10 = vld [vmem:[#allocation2 + $0x38] ss:$12 sps:$4 sm:$0xff]  }
 0x5da   : > { %v5687_v14 = vpop.eup %4699  ;;  %4709 = vpow2.f32 %v1580_v13 }
 0x5db   : > { %v1974_v21 = vsel %vm1169_vm4, %v5687_v14, 0.0  ;;  %v1576_v19 = vmul.f32 1.442695, %v1568_v38 }
 0x5dc   : > { %v5691_v8 = vpop.xlane.xlu0 %1554  ;;  %1975 = vadd.xlane.f32.xlu1 %v1974_v21  ;;  %v1949_v32 = vpop.xlane.xlu1 %1948 }
 0x5dd   : > { %4711 = vpow2.f32 %v1576_v19  ;;  %v1957_v37 = vsub.f32 %v5632_v53, %v1949_v32  ;;  %v4549_v19 = vld [vmem:[#allocation2 + $0x38] ss:$12 sps:$4 sm:$0xff]   ;;  %v1569_v32 = vsub.f32 %v5618_v50, %v1549_v41  ;;  %v4552_v50 = vld [vmem:[#allocation2 + $0x30] ss:$12 sps:$4 sm:$0xff]  }
 0x5de   : > { %v5693_v17 = vpop.eup %4701 }
 0x5df   : > { %v1977_v25 = vsel %vm1169_vm4, %v5693_v17, 0.0  ;;  %v5697_v49 = vpop.eup %4703  ;;  %v1972_v54 = vmul.f32 1.442695, %v1957_v37 }
 0x5e0   : > { %v1564_v24 = vpop.xlane.xlu0 %1563  ;;  %1978 = vadd.xlane.f32.xlu1 %v1977_v25  ;;  %v1980_v20 = vsel %vm1169_vm4, %v5697_v49, 0.0 }
 0x5e1   : > { %v1574_v12 = vsub.f32 %v5641_v58, %v1564_v24 }
 0x5e2   : > { %v5702_v26 = vpop.eup %4705 }
 0x5e3   : > { %v1588_v18 = vmul.f32 1.442695, %v1574_v12  ;;  %v1983_v58 = vsel %vm1169_vm4, %v5702_v26, 0.0  ;;  %v1954_v12 = vsub.f32 %v5590_v27, %v5681_v1 }
 0x5e4   : > { %v1558_v15 = vpop.xlane.xlu0 %1557  ;;  %1981 = vadd.xlane.f32.xlu1 %v1980_v20  ;;  %v1567_v20 = vpop.xlane.xlu1 %1566 }
 0x5e5   : > { %4713 = vpow2.f32 %v1588_v18  ;;  %v1572_v33 = vsub.f32 %v5655_v60, %v1558_v15  ;;  %v1966_v18 = vmul.f32 1.442695, %v1954_v12  ;;  %v1571_v15 = vsub.f32 %v5627_v52, %v5691_v8 }
 0x5e6   : > { %v5705_v35 = vpop.eup %4707  ;;  %v1575_v37 = vsub.f32 %v5646_v40, %v1567_v20 }
 0x5e7   : > { %v1584_v0 = vmul.f32 1.442695, %v1572_v33  ;;  %v1989_v47 = vsel %vm1169_vm4, %v5705_v35, 0.0  ;;  %v5712_v48 = vpop.eup %4709  ;;  %v1582_v33 = vmul.f32 1.442695, %v1571_v15 }
 0x5e8   : > { %v1946_v44 = vpop.xlane.xlu0 %1945  ;;  %1984 = vadd.xlane.f32.xlu1 %v1983_v58  ;;  %1990 = vadd.xlane.f32.xlu0 %v1989_v47  ;;  %v1598_v53 = vsel %vm1169_vm4, %v5712_v48, 0.0  ;;  %v1561_v58 = vpop.xlane.xlu1 %1560  ;;  %v1590_v27 = vmul.f32 1.442695, %v1575_v37  ;;  %v4551_v47 = vld [vmem:[#allocation2] ss:$12 sps:$4 sm:$0xff]  }
 0x5e9   : > { %4715 = vpow2.f32 %v1584_v0  ;;  %v1956_v51 = vsub.f32 %v5669_v23, %v1946_v44  ;;  %v1578_v0 = vmul.f32 1.442695, %v1569_v32  ;;  %v4550_v44 = vld [vmem:[#allocation2 + $0x4c] ss:$12 sps:$4 sm:$0xff]   ;;  %v1573_v1 = vsub.f32 %v5660_v11, %v1561_v58 }
 0x5ea   : > { %v5717_v22 = vpop.eup %4711 }
 0x5eb   : > { %v1970_v60 = vmul.f32 1.442695, %v1956_v51  ;;  %v1592_v57 = vsel %vm1169_vm4, %v5717_v22, 0.0  ;;  %v1586_v52 = vmul.f32 1.442695, %v1573_v1 }
 0x5ec   : > { %v1663_v55 = vpop.permute.xlu0 %1662  ;;  %1599 = vadd.xlane.f32.xlu0 %v1598_v53 }
 0x5ed   : > { %4717 = vpow2.f32 %v1970_v60  ;;  %4262 = vmatprep.subr.bf16.mxu1 %v1663_v55 }
 0x5ee   : > { %4263 = vmatpush3.bf16.msra.mxu1 %v1663_v55  ;;  %4719 = vpow2.f32 %v1972_v54 }
 0x5ef   : > { %4721 = vpow2.f32 %v1966_v18 }
 0x5f0   : > { %1593 = vadd.xlane.f32.xlu0 %v1592_v57  ;;  %4723 = vpow2.f32 %v1582_v33  ;;  %v1659_v32 = vpop.permute.xlu0 %1658 }
 0x5f1   : > { %4725 = vpow2.f32 %v1578_v0 }
 0x5f2   : > { %v5721_v23 = vpop.eup %4713  ;;  %4727 = vpow2.f32 %v1590_v27 }
 0x5f3   : > { %v1610_v45 = vsel %vm1169_vm4, %v5721_v23, 0.0  ;;  %4729 = vpow2.f32 %v1586_v52 }
 0x5f4   : > { %1611 = vadd.xlane.f32.xlu0 %v1610_v45  ;;  %v4553_v45 = vld [vmem:[#allocation2 + $0x8] ss:$12 sps:$4 sm:$0xff]   ;;  %v1657_v27 = vpop.permute.xlu0 %1656 }
 0x5f6   : > { %v5725_v34 = vpop.eup %4715 }
 0x5f7   : > { %v1604_v13 = vsel %vm1169_vm4, %v5725_v34, 0.0 }
 0x5f8   : > { %1605 = vadd.xlane.f32.xlu0 %v1604_v13  ;;  %v4554_v13 = vld [vmem:[#allocation2 + $0x34] ss:$12 sps:$4 sm:$0xff]   ;;  %v2045_v52 = vpop.permute.xlu0 %2044 }
 0x5f9   : > { %1660 = vrot.lane.b32.xlu1 %v4548_v10, %s5039_s24  ;;  %v4555_v10 = vld [vmem:[#allocation2 + $0x1c] ss:$12 sps:$4 sm:$0xff]  }
 0x5fa   : > { %v5729_v38 = vpop.eup %4717 }
 0x5fb   : > { %v1992_v21 = vsel %vm1169_vm4, %v5729_v38, 0.0  ;;  %v5734_v24 = vpop.eup %4719 }
 0x5fc   : > { %1993 = vadd.xlane.f32.xlu0 %v1992_v21  ;;  %v1995_v25 = vsel %vm1169_vm4, %v5734_v24, 0.0  ;;  %v5748_v8 = vpop.eup %4721  ;;  %v4556_v21 = vld [vmem:[#allocation2 + $0x4] ss:$12 sps:$4 sm:$0xff]  }
 0x5fd   : > { %2042 = vrot.lane.b32.xlu1 %v4549_v19, %s5040_s29  ;;  %v1986_v40 = vsel %vm1169_vm4, %v5748_v8, 0.0  ;;  %v5753_v41 = vpop.eup %4723  ;;  %v4557_v19 = vld [vmem:[#allocation2 + $0x18] ss:$12 sps:$4 sm:$0xff]  }
 0x5fe   : > { %v1601_v11 = vsel %vm1169_vm4, %v5753_v41, 0.0  ;;  %v5757_v51 = vpop.eup %4725 }
 0x5ff   : > { %v1595_v60 = vsel %vm1169_vm4, %v5757_v51, 0.0  ;;  %v5761_v54 = vpop.eup %4727 }
 0x600   : > { %1996 = vadd.xlane.f32.xlu0 %v1995_v25  ;;  %v1613_v55 = vsel %vm1169_vm4, %v5761_v54, 0.0  ;;  %v5765_v53 = vpop.eup %4729  ;;  %v4558_v25 = vld [vmem:[#allocation2 + $0x48] ss:$12 sps:$4 sm:$0xff]  }
 0x601   : > { %v1607_v57 = vsel %vm1169_vm4, %v5765_v53, 0.0 }
 0x616   : > { %2209 = vrot.lane.b32.xlu0 %v4550_v44, %s5041_s23 }
 0x61a   : > { %2175 = vrot.lane.b32.xlu0 %v4551_v47, %s5041_s23 }
 0x61e   : > { %2179 = vrot.lane.b32.xlu0 %v4552_v50, %s5041_s23 }
 0x621   : > { %1987 = vadd.xlane.f32.xlu1 %v1986_v40 }
 0x625   : > { %1602 = vadd.xlane.f32.xlu1 %v1601_v11  ;;  %v2041_v11 = vpop.permute.xlu0 %2040 }
 0x629   : > { %1596 = vadd.xlane.f32.xlu1 %v1595_v60 }
 0x62d   : > { %1614 = vadd.xlane.f32.xlu1 %v1613_v55 }
 0x631   : > { %1608 = vadd.xlane.f32.xlu1 %v1607_v57 }
 0x642   : > { %2038 = vrot.lane.b32.xlu1 %v4553_v45, %s5040_s29 }
 0x646   : > { %2207 = vrot.lane.b32.xlu1 %v4554_v13, %s5041_s23 }
 0x64a   : > { %2205 = vrot.lane.b32.xlu1 %v4555_v10, %s5041_s23 }
 0x64e   : > { %2203 = vrot.lane.b32.xlu1 %v4556_v21, %s5041_s23 }
 0x652   : > { %2177 = vrot.lane.b32.xlu1 %v4557_v19, %s5041_s23 }
 0x656   : > { %2181 = vrot.lane.b32.xlu1 %v4558_v25, %s5041_s23 }
 0x665   : > { %v1976_v12 = vpop.xlane.xlu1 %1975 }
 0x666   : > { %4731 = vrcp.f32 %v1976_v12 }
 0x669   : > { %v1979_v18 = vpop.xlane.xlu1 %1978 }
 0x66a   : > { %4733 = vrcp.f32 %v1979_v18 }
 0x66d   : > { %v1982_v15 = vpop.xlane.xlu1 %1981 }
 0x66e   : > { %4735 = vrcp.f32 %v1982_v15 }
 0x671   : > { %v1985_v20 = vpop.xlane.xlu1 %1984  ;;  %v1991_v60 = vpop.xlane.xlu0 %1990 }
 0x672   : > { %4737 = vrcp.f32 %v1985_v20 }
 0x673   : > { %v4732_v33 = vpop.eup %4731 }
 0x674   : > { %v5776_v44 = vmul.f32 %v4732_v33, %v5687_v14 }
 0x675   : > { %v1661_v0 = vpop.permute.xlu1 %1660  ;;  %v1600_v55 = vpop.xlane.xlu0 %1599 }
 0x676   : > { %4264 = vmatprep.subr.bf16.mxu1 %v1661_v0 }
 0x677   : > { %v4734_v37 = vpop.eup %4733  ;;  %4265 = vmatpush3.bf16.msra.mxu1 %v1661_v0 }
 0x678   : > { %4266 = vmatprep.subr.bf16.mxu1 %v1659_v32  ;;  %v5779_v58 = vmul.f32 %v4734_v37, %v5693_v17 }
 0x679   : > { %v2043_v57 = vpop.permute.xlu1 %2042  ;;  %v1594_v45 = vpop.xlane.xlu0 %1593 }
 0x67a   : > { %v2014_v1 = vpack.c.bf16 %v5779_v58, %v5776_v44 }
 0x67b   : > { %4267 = vmatpush3.bf16.msra.mxu1 %v1659_v32  ;;  %v4736_v47 = vpop.eup %4735 }
 0x67c   : > { %4268 = vmatprep.subr.bf16.mxu1 %v1657_v27  ;;  %v5784_v40 = vmul.f32 %v4736_v47, %v5697_v49 }
 0x67d   : > { %v1612_v21 = vpop.xlane.xlu0 %1611 }
 0x67f   : > { %4269 = vmatpush3.bf16.msra.mxu1 %v1657_v27  ;;  %v4738_v50 = vpop.eup %4737 }
 0x680   : > { %4294 = vmatprep.subr.bf16.mxu1 %v2045_v52  ;;  %v5787_v14 = vmul.f32 %v4738_v50, %v5702_v26 }
 0x681   : > { %v1606_v49 = vpop.xlane.xlu0 %1605 }
 0x682   : > { %v2015_v17 = vpack.c.bf16 %v5787_v14, %v5784_v40 }
 0x685   : > { %v1994_v20 = vpop.xlane.xlu0 %1993 }
 0x6aa   : > { %v1988_v13 = vpop.xlane.xlu1 %1987 }
 0x6ae   : > { %v1603_v10 = vpop.xlane.xlu1 %1602 }
 0x6af   : > { %4739 = vrcp.f32 %v1603_v10 }
 0x6b0   : > { %4741 = vrcp.f32 %v1594_v45  ;;  %v1997_v45 = vpop.xlane.xlu0 %1996 }
 0x6b1   : > { %4743 = vrcp.f32 %v1600_v55 }
 0x6b2   : > { %v1597_v19 = vpop.xlane.xlu1 %1596 }
 0x6b3   : > { %4745 = vrcp.f32 %v1597_v19 }
 0x6b6   : > { %v1615_v25 = vpop.xlane.xlu1 %1614 }
 0x6b7   : > { %4747 = vrcp.f32 %v1615_v25 }
 0x6b8   : > { %4749 = vrcp.f32 %v1606_v49 }
 0x6b9   : > { %4751 = vrcp.f32 %v1612_v21 }
 0x6ba   : > { %v1609_v26 = vpop.xlane.xlu1 %1608 }
 0x6bb   : > { %4753 = vrcp.f32 %v1609_v26 }
 0x6bc   : > { %v4740_v12 = vpop.eup %4739  ;;  %4755 = vrcp.f32 %v1988_v13 }
 0x6bd   : > { %v4742_v18 = vpop.eup %4741  ;;  %v1627_v33 = vmul.f32 %v4740_v12, %v5753_v41  ;;  %4757 = vrcp.f32 %v1991_v60 }
 0x6be   : > { %v4744_v15 = vpop.eup %4743  ;;  %v1624_v0 = vmul.f32 %v4742_v18, %v5717_v22  ;;  %4759 = vrcp.f32 %v1997_v45 }
 0x6bf   : > { %v1626_v27 = vmul.f32 %v4744_v15, %v5712_v48  ;;  %4761 = vrcp.f32 %v1994_v20 }
 0x6c0   : > { %v4746_v32 = vpop.eup %4745 }
 0x6c1   : > { %v1625_v37 = vmul.f32 %v4746_v32, %v5757_v51  ;;  %v1633_v50 = vpack.c.bf16 %v1627_v33, %v1626_v27 }
 0x6c3   : > { %v1632_v47 = vpack.c.bf16 %v1625_v37, %v1624_v0 }
 0x6c4   : > { %v4748_v55 = vpop.eup %4747 }
 0x6c5   : > { %4270 = vmatprep.mubr.msk.bf16.mxu1 %vm1169_vm4, %v1632_v47  ;;  %v4750_v10 = vpop.eup %4749  ;;  %v1631_v22 = vmul.f32 %v4748_v55, %v5761_v54  ;;  %v2210_v54 = vpop.permute.xlu0 %2209 }
 0x6c6   : > { %4271 = vmatmul.mubr.msk.bf16.vlgmr.msra.gmra.mxu1 %vm1169_vm4, %v1633_v50  ;;  %v4752_v21 = vpop.eup %4751  ;;  %v1628_v51 = vmul.f32 %v4750_v10, %v5725_v34  ;;  %v2233_v26 = vsel %vm1071_vm0, %v2210_v54, 0 }
 0x6c7   : > { %4295 = vmatpush3.bf16.msra.mxu1 %v2045_v52  ;;  %v1630_v60 = vmul.f32 %v4752_v21, %v5721_v23  ;;  %v2039_v52 = vpop.permute.xlu1 %2038 }
 0x6c8   : > { %v4754_v41 = vpop.eup %4753  ;;  %4296 = vmatprep.subr.bf16.mxu1 %v2043_v57 }
 0x6c9   : > { %v1629_v48 = vmul.f32 %v4754_v41, %v5765_v53  ;;  %v1635_v19 = vpack.c.bf16 %v1631_v22, %v1630_v60  ;;  %v4756_v49 = vpop.eup %4755 }
 0x6ca   : > { %v4758_v34 = vpop.eup %4757  ;;  %v2010_v23 = vmul.f32 %v4756_v49, %v5748_v8 }
 0x6cb   : > { %4297 = vmatpush3.bf16.msra.mxu1 %v2043_v57  ;;  %v1634_v13 = vpack.c.bf16 %v1629_v48, %v1628_v51  ;;  %v2011_v53 = vmul.f32 %v4758_v34, %v5705_v35  ;;  %v4760_v57 = vpop.eup %4759  ;;  %v2208_v58 = vpop.permute.xlu1 %2207 }
 0x6cc   : > { %4298 = vmatprep.subr.bf16.mxu1 %v2041_v11  ;;  %v4762_v44 = vpop.eup %4761  ;;  %v2013_v35 = vmul.f32 %v4760_v57, %v5734_v24  ;;  %v2230_v12 = vsel %vm1071_vm0, %v2208_v58, 0 }
 0x6cd   : > { %4274 = vmatprep.mubr.msk.bf16.mxu1 %vm1169_vm4, %v1634_v13  ;;  %v2016_v25 = vpack.c.bf16 %v2011_v53, %v2010_v23  ;;  %v2012_v8 = vmul.f32 %v4762_v44, %v5729_v38 }
 0x6ce   : > { %4275 = vmatmul.mubr.msk.bf16.gmra.mxu1 %vm1169_vm4, %v1635_v19 }
 0x6cf   : > { %4299 = vmatpush3.bf16.msra.mxu1 %v2041_v11  ;;  %4302 = vmatprep.mubr.msk.bf16.mxu1 %vm1169_vm4, %v2014_v1  ;;  %v2017_v1 = vpack.c.bf16 %v2013_v35, %v2012_v8  ;;  %v2176_v11 = vpop.permute.xlu0 %2175  ;;  %v2206_v40 = vpop.permute.xlu1 %2205 }
 0x6d0   : > { %4300 = vmatprep.subr.bf16.mxu1 %v2039_v52  ;;  %v2227_v14 = vsel %vm1071_vm0, %v2206_v40, 0 }
 0x6d3   : > { %4301 = vmatpush3.bf16.msra.mxu1 %v2039_v52  ;;  %v2180_v18 = vpop.permute.xlu0 %2179 }
 0x6d4   : > { %4378 = vmatprep.subr.msk.bf16.mxu1 %vm1071_vm0, %v2210_v54 }
 0x6d6   : > { %4303 = vmatmul.mubr.msk.bf16.vlgmr.msra.gmra.mxu1 %vm1169_vm4, %v2015_v17  ;;  %v2204_v17 = vpop.permute.xlu1 %2203 }
 0x6d7   : > { %4311 = vmatpush3.bf16.xpose.msra.mxu1 %v2233_v26  ;;  %4306 = vmatprep.mubr.msk.bf16.mxu1 %vm1169_vm4, %v2016_v25  ;;  %v2224_v38 = vsel %vm1071_vm0, %v2204_v17, 0 }
 0x6d8   : > { %4379 = vmatprep.subr.msk.bf16.mxu1 %vm1071_vm0, %v2208_v58 }
 0x6da   : > { %v2178_v24 = vpop.permute.xlu1 %2177 }
 0x6de   : > { %4307 = vmatmul.mubr.msk.bf16.gmra.mxu1 %vm1169_vm4, %v2017_v1  ;;  %v2182_v15 = vpop.permute.xlu1 %2181 }
 0x6df   : > { %4313 = vmatpush3.bf16.xpose.msra.mxu1 %v2230_v12  ;;  %4318 = vmatprep.mubr.msk.bf16.mxu1 %vm1071_vm0, %v2176_v11 }
 0x6e0   : > { %4380 = vmatprep.subr.msk.bf16.mxu1 %vm1071_vm0, %v2206_v40 }
 0x6e7   : > { %4315 = vmatpush3.bf16.xpose.msra.mxu1 %v2227_v14 }
 0x6e8   : > { %4381 = vmatprep.subr.msk.bf16.mxu1 %vm1071_vm0, %v2204_v17 }
 0x6ef   : > { %4317 = vmatpush3.bf16.xpose.msra.mxu1 %v2224_v38 }
 0x6f6   : > { %4319 = vmatmul.mubr.msk.bf16.vlgmr.msra.gmra.mxu1 %vm1071_vm0, %v2178_v24 }
 0x6f7   : > { %4322 = vmatprep.mubr.msk.bf16.mxu1 %vm1071_vm0, %v2180_v18 }
 0x6fe   : > { %4323 = vmatmul.mubr.msk.bf16.gmra.mxu1 %vm1071_vm0, %v2182_v15 }
 0x6ff   : > { %3096 = vmatprep.mubr.bf16.mxu1 %v5038_v39 }
 0x786   : > { %v5830_v20 = vpop.f32.mrf.mxu1 }
 0x788   : > { %v5832_v32 = vpop.f32.mrf.mxu1 }
 0x78a   : > { %v5834_v33 = vpop.f32.mrf.mxu1 }
 0x78b   : > { %v1746_v0 = vpack.c.bf16 %v5834_v33, %v5830_v20 }
 0x78c   : > { %v5838_v37 = vpop.f32.mrf.mxu1 }
 0x78d   : > { %v1745_v27 = vpack.c.bf16 %v5838_v37, %v5832_v32 }
 0x78e   : > { %v5842_v47 = vpop.f32.mrf.mxu1 }
 0x790   : > { %v5844_v50 = vpop.f32.mrf.mxu1 }
 0x792   : > { %v5846_v55 = vpop.f32.mrf.mxu1 }
 0x793   : > { %v1748_v45 = vpack.c.bf16 %v5846_v55, %v5842_v47 }
 0x794   : > { %v5850_v10 = vpop.f32.mrf.mxu1 }
 0x795   : > { %v1747_v21 = vpack.c.bf16 %v5850_v10, %v5844_v50 }
 0x796   : > { %v5854_v41 = vpop.f32.mrf.mxu1 }
 0x798   : > { %v5856_v22 = vpop.f32.mrf.mxu1 }
 0x79a   : > { %v5858_v51 = vpop.f32.mrf.mxu1 }
 0x79b   : > { %v2128_v48 = vpack.c.bf16 %v5858_v51, %v5854_v41 }
 0x79c   : > { %v5862_v60 = vpop.f32.mrf.mxu1 }
 0x79d   : > { %v2127_v13 = vpack.c.bf16 %v5862_v60, %v5856_v22 }
 0x79e   : > { %v5866_v19 = vpop.f32.mrf.mxu1 }
 0x7a0   : > { %v5868_v49 = vpop.f32.mrf.mxu1 }
 0x7a2   : > { %v5870_v52 = vpop.f32.mrf.mxu1 }
 0x7a3   : > { %v2130_v34 = vpack.c.bf16 %v5870_v52, %v5866_v19 }
 0x7a4   : > { %v5874_v23 = vpop.f32.mrf.mxu1 }
 0x7a5   : > { %v2129_v54 = vpack.c.bf16 %v5874_v23, %v5868_v49 }
 0x7b6   : > { %v4320_v53 = vpop.f32.mrf.mxu1 }
 0x7b7   : > { %v2302_v58 = vsel %vm1001_vm2, %v4320_v53, -1e+30 }
 0x7b8   : > { %v2269_v57 = vpop.f32.mrf.mxu1  ;;  %v2314_v12 = vsel %vm1169_vm4, %v2302_v58, -inf }
 0x7b9   : > { %v2300_v25 = vsel %vm999_vm1, %v2269_v57, -1e+30 }
 0x7ba   : > { %v4321_v26 = vpop.f32.mrf.mxu1  ;;  %v2308_v44 = vsel %vm1169_vm4, %v2300_v25, -inf }
 0x7bb   : > { %2309 = vmax.xlane.f32.xlu0 %v2308_v44  ;;  %v2303_v28 = vsel %vm1002_vm3, %v4321_v26, -1e+30 }
 0x7bc   : > { %v2272_v35 = vpop.f32.mrf.mxu1  ;;  %v2317_v29 = vsel %vm1169_vm4, %v2303_v28, -inf }
 0x7bd   : > { %v2301_v8 = vsel %vm1000_vm5, %v2272_v35, -1e+30 }
 0x7be   : > { %v2311_v1 = vsel %vm1169_vm4, %v2301_v8, -inf  ;;  %v4324_v11 = vpop.f32.mrf.mxu1 }
 0x7bf   : > { %2315 = vmax.xlane.f32.xlu0 %v2314_v12  ;;  %2312 = vmax.xlane.f32.xlu1 %v2311_v1  ;;  %v2306_v18 = vsel %vm1005_vm7, %v4324_v11, -1e+30 }
 0x7c0   : > { %v2285_v40 = vpop.f32.mrf.mxu1  ;;  %v2326_v36 = vsel %vm1169_vm4, %v2306_v18, -inf }
 0x7c1   : > { %v2304_v16 = vsel %vm1003_vm6, %v2285_v40, -1e+30 }
 0x7c2   : > { %v4325_v14 = vpop.f32.mrf.mxu1  ;;  %v2320_v24 = vsel %vm1169_vm4, %v2304_v16, -inf }
 0x7c3   : > { %2318 = vmax.xlane.f32.xlu0 %v2317_v29  ;;  %v2307_v15 = vsel %vm1006_vm8, %v4325_v14, -1e+30 }
 0x7c4   : > { %v2288_v17 = vpop.f32.mrf.mxu1  ;;  %v2329_v53 = vsel %vm1169_vm4, %v2307_v15, -inf }
 0x7c5   : > { %v2305_v38 = vsel %vm1004_vm9, %v2288_v17, -1e+30 }
 0x7c6   : > { %v2323_v31 = vsel %vm1169_vm4, %v2305_v38, -inf }
 0x7c7   : > { %2321 = vmax.xlane.f32.xlu0 %v2320_v24  ;;  %2324 = vmax.xlane.f32.xlu1 %v2323_v31 }
 0x7cb   : > { %2327 = vmax.xlane.f32.xlu0 %v2326_v36  ;;  %2330 = vmax.xlane.f32.xlu1 %v2329_v53 }
 0x7e1   : > { %2426 = vrot.lane.b32.xlu0 %v4559_v46, %s5041_s23 }
 0x844   : > { %v2310_v57 = vpop.xlane.xlu0 %2309 }
 0x845   : > { %v2332_v26 = vsub.f32 %v2300_v25, %v2310_v57 }
 0x847   : > { %v2340_v1 = vmul.f32 1.442695, %v2332_v26 }
 0x848   : > { %v2316_v44 = vpop.xlane.xlu0 %2315  ;;  %v2313_v42 = vpop.xlane.xlu1 %2312 }
 0x849   : > { %v2334_v35 = vsub.f32 %v2302_v58, %v2316_v44  ;;  %v2333_v30 = vsub.f32 %v2301_v8, %v2313_v42 }
 0x84b   : > { %v2344_v11 = vmul.f32 1.442695, %v2334_v35  ;;  %v2342_v40 = vmul.f32 1.442695, %v2333_v30 }
 0x84c   : > { %v2319_v43 = vpop.xlane.xlu0 %2318 }
 0x84d   : > { %4763 = vpow2.f32 %v2344_v11  ;;  %v2335_v12 = vsub.f32 %v2303_v28, %v2319_v43 }
 0x84e   : > { %4765 = vpow2.f32 %v2340_v1 }
 0x84f   : > { %v2346_v29 = vmul.f32 1.442695, %v2335_v12 }
 0x850   : > { %v2322_v14 = vpop.xlane.xlu0 %2321  ;;  %v2325_v17 = vpop.xlane.xlu1 %2324 }
 0x851   : > { %4767 = vpow2.f32 %v2346_v29  ;;  %v2336_v24 = vsub.f32 %v2304_v16, %v2322_v14  ;;  %v2337_v28 = vsub.f32 %v2305_v38, %v2325_v17 }
 0x852   : > { %4769 = vpow2.f32 %v2342_v40 }
 0x853   : > { %v2348_v53 = vmul.f32 1.442695, %v2336_v24  ;;  %v4560_v24 = vld [vmem:[#allocation2 + $0x20] ss:$12 sps:$4 sm:$0xff]  }
 0x854   : > { %v2328_v31 = vpop.xlane.xlu0 %2327  ;;  %v2331_v36 = vpop.xlane.xlu1 %2330 }
 0x855   : > { %v2338_v25 = vsub.f32 %v2306_v18, %v2328_v31  ;;  %v2339_v58 = vsub.f32 %v2307_v15, %v2331_v36  ;;  %v2350_v18 = vmul.f32 1.442695, %v2337_v28  ;;  %v4561_v31 = vld [vmem:[#allocation2 + $0x8] ss:$12 sps:$4 sm:$0xff]   ;;  %v4562_v36 = vld [vmem:[#allocation2 + $0x38] ss:$12 sps:$4 sm:$0xff]  }
 0x857   : > { %v2352_v46 = vmul.f32 1.442695, %v2338_v25  ;;  %v2354_v26 = vmul.f32 1.442695, %v2339_v58 }
 0x858   : > { %v2427_v57 = vpop.permute.xlu0 %2426 }
 0x859   : > { %4771 = vpow2.f32 %v2352_v46  ;;  %4326 = vmatprep.subr.bf16.mxu0 %v2427_v57 }
 0x85a   : > { %v5911_v8 = vpop.eup %4763  ;;  %4327 = vmatpush3.bf16.msra.mxu0 %v2427_v57  ;;  %4773 = vpow2.f32 %v2348_v53 }
 0x85b   : > { %v2362_v44 = vsel %vm1169_vm4, %v5911_v8, 0.0  ;;  %v4766_v42 = vpop.eup %4765  ;;  %4775 = vpow2.f32 %v2354_v26 }
 0x85c   : > { %2363 = vadd.xlane.f32.xlu0 %v2362_v44  ;;  %v2356_v15 = vsel %vm1169_vm4, %v4766_v42, 0.0  ;;  %4777 = vpow2.f32 %v2350_v18 }
 0x85e   : > { %v5915_v16 = vpop.eup %4767 }
 0x85f   : > { %v2365_v35 = vsel %vm1169_vm4, %v5915_v16, 0.0  ;;  %v4770_v1 = vpop.eup %4769 }
 0x860   : > { %2357 = vadd.xlane.f32.xlu0 %v2356_v15  ;;  %2366 = vadd.xlane.f32.xlu1 %v2365_v35  ;;  %v2359_v38 = vsel %vm1169_vm4, %v4770_v1, 0.0 }
 0x864   : > { %2360 = vadd.xlane.f32.xlu1 %v2359_v38 }
 0x866   : > { %v5921_v11 = vpop.eup %4771 }
 0x867   : > { %v2374_v30 = vsel %vm1169_vm4, %v5921_v11, 0.0  ;;  %v4774_v43 = vpop.eup %4773 }
 0x868   : > { %2375 = vadd.xlane.f32.xlu1 %v2374_v30  ;;  %v2368_v12 = vsel %vm1169_vm4, %v4774_v43, 0.0  ;;  %v4776_v40 = vpop.eup %4775 }
 0x869   : > { %v2377_v29 = vsel %vm1169_vm4, %v4776_v40, 0.0  ;;  %v4778_v14 = vpop.eup %4777 }
 0x86a   : > { %v2371_v17 = vsel %vm1169_vm4, %v4778_v14, 0.0 }
 0x86c   : > { %2369 = vadd.xlane.f32.xlu1 %v2368_v12 }
 0x870   : > { %2378 = vadd.xlane.f32.xlu1 %v2377_v29 }
 0x874   : > { %2372 = vadd.xlane.f32.xlu1 %v2371_v17 }
 0x876   : > { %2422 = vrot.lane.b32.xlu0 %v4560_v24, %s5041_s23  ;;  %v4563_v24 = vld [vmem:[#allocation8 + $0x38] sm:$0xff]  }
 0x87a   : > { %2420 = vrot.lane.b32.xlu0 %v4561_v31, %s5041_s23  ;;  %v4567_v31 = vld [vmem:[#allocation8 + $0x18] sm:$0xff]  }
 0x87e   : > { %2517 = vrot.lane.b32.xlu0 %v1745_v27, %s5041_s23 }
 0x882   : > { %2529 = vrot.lane.b32.xlu0 %v2127_v13, %s5040_s29 }
 0x885   : > { %2424 = vrot.lane.b32.xlu1 %v4562_v36, %s5041_s23  ;;  %v4570_v36 = vld [vmem:[#allocation8] sm:$0xff]  }
 0x889   : > { %2519 = vrot.lane.b32.xlu1 %v1746_v0, %s5041_s23 }
 0x88d   : > { %2531 = vrot.lane.b32.xlu1 %v2128_v48, %s5040_s29 }
 0x8e5   : > { %v2364_v32 = vpop.xlane.xlu0 %2363 }
 0x8e9   : > { %v2358_v37 = vpop.xlane.xlu0 %2357  ;;  %v2367_v27 = vpop.xlane.xlu1 %2366 }
 0x8ea   : > { %4779 = vrcp.f32 %v2358_v37 }
 0x8ed   : > { %v2361_v25 = vpop.xlane.xlu1 %2360  ;;  %v2423_v51 = vpop.permute.xlu0 %2422 }
 0x8ee   : > { %4781 = vrcp.f32 %v2361_v25 }
 0x8ef   : > { %4783 = vrcp.f32 %v2367_v27 }
 0x8f0   : > { %4785 = vrcp.f32 %v2364_v32 }
 0x8f1   : > { %v2376_v22 = vpop.xlane.xlu1 %2375  ;;  %v2421_v28 = vpop.permute.xlu0 %2420 }
 0x8f5   : > { %v2370_v60 = vpop.xlane.xlu1 %2369  ;;  %v2518_v50 = vpop.permute.xlu0 %2517 }
 0x8f6   : > { %4787 = vrcp.f32 %v2370_v60  ;;  %v2551_v19 = vsel %vm1071_vm0, %v1363_v3, %v2518_v50  ;;  %v4576_v50 = vld [vmem:[#allocation9 + $0xec] ss:$16 sps:$4 sm:$0xff]  }
 0x8f7   : > { %v4780_v13 = vpop.eup %4779 }
 0x8f8   : > { %v2388_v20 = vmul.f32 %v4780_v13, %v4766_v42 }
 0x8f9   : > { %v2379_v53 = vpop.xlane.xlu1 %2378  ;;  %v2530_v10 = vpop.permute.xlu0 %2529 }
 0x8fa   : > { %v2562_v52 = vsel %vm1169_vm4, %v2551_v19, %v2530_v10  ;;  %v4577_v19 = vld [vmem:[#allocation9 + $0xc0] ss:$16 sps:$4 sm:$0xff]  }
 0x8fb   : > { %v4782_v46 = vpop.eup %4781 }
 0x8fc   : > { %v2389_v33 = vmul.f32 %v4782_v46, %v4770_v1  ;;  %v4784_v58 = vpop.eup %4783 }
 0x8fd   : > { %v2373_v0 = vpop.xlane.xlu1 %2372  ;;  %v4786_v57 = vpop.eup %4785  ;;  %v2391_v26 = vmul.f32 %v4784_v58, %v5915_v16 }
 0x8fe   : > { %4789 = vrcp.f32 %v2373_v0  ;;  %v2396_v41 = vpack.c.bf16 %v2389_v33, %v2388_v20  ;;  %v2390_v42 = vmul.f32 %v4786_v57, %v5911_v8  ;;  %v4564_v8 = vld [vmem:[#allocation8 + $0x30] sm:$0xff]  }
 0x8ff   : > { %4791 = vrcp.f32 %v2379_v53 }
 0x900   : > { %4334 = vmatprep.mubr.msk.bf16.mxu0 %vm1169_vm4, %v2396_v41  ;;  %4793 = vrcp.f32 %v2376_v22  ;;  %v2397_v15 = vpack.c.bf16 %v2391_v26, %v2390_v42 }
 0x901   : > { %v2425_v48 = vpop.permute.xlu1 %2424 }
 0x902   : > { %4328 = vmatprep.subr.bf16.mxu0 %v2425_v48 }
 0x903   : > { %4329 = vmatpush3.bf16.msra.mxu0 %v2425_v48  ;;  %v4788_v44 = vpop.eup %4787 }
 0x904   : > { %4330 = vmatprep.subr.bf16.mxu0 %v2423_v51  ;;  %v2392_v35 = vmul.f32 %v4788_v44, %v4774_v43  ;;  %v4565_v43 = vld [vmem:[#allocation8 + $0x28] sm:$0xff]  }
 0x905   : > { %v2520_v55 = vpop.permute.xlu1 %2519 }
 0x906   : > { %v2554_v49 = vsel %vm1071_vm0, %v1364_v63, %v2520_v55  ;;  %v4574_v55 = vld [vmem:[#allocation9 + $0xe8] ss:$16 sps:$4 sm:$0xff]  }
 0x907   : > { %4331 = vmatpush3.bf16.msra.mxu0 %v2423_v51 }
 0x908   : > { %4332 = vmatprep.subr.bf16.mxu0 %v2421_v28 }
 0x90b   : > { %v4790_v18 = vpop.eup %4789  ;;  %4333 = vmatpush3.bf16.msra.mxu0 %v2421_v28  ;;  %v4811_v28 = vld [vmem:[%s5249_s22] sm:$0xff] }
 0x90c   : > { %v2393_v1 = vmul.f32 %v4790_v18, %v4778_v14  ;;  %v4792_v38 = vpop.eup %4791  ;;  %4342 = vmatprep.subr.bf16.mxu0 %v4563_v24  ;;  %v4566_v14 = vld [vmem:[#allocation8 + $0x20] sm:$0xff]  }
 0x90d   : > { %v4794_v12 = vpop.eup %4793  ;;  %v2395_v29 = vmul.f32 %v4792_v38, %v4776_v40  ;;  %v4568_v40 = vld [vmem:[#allocation8 + $0x10] sm:$0xff]  }
 0x90e   : > { %4335 = vmatmul.mubr.msk.bf16.vlgmr.msra.gmra.mxu0 %vm1169_vm4, %v2397_v15  ;;  %v2398_v30 = vpack.c.bf16 %v2393_v1, %v2392_v35  ;;  %v2394_v17 = vmul.f32 %v4794_v12, %v5921_v11  ;;  %v4569_v11 = vld [vmem:[#allocation8 + $0x8] sm:$0xff]   ;;  %v4813_v12 = vld [vmem:[%s5249_s22 + $0x18] sm:$0xff] }
 0x90f   : > { %4343 = vmatpush3.bf16.msra.mxu0 %v4563_v24  ;;  %v4812_v15 = vld [vmem:[%s5249_s22 + $0x8] sm:$0xff] }
 0x910   : > { %4338 = vmatprep.mubr.msk.bf16.mxu0 %vm1169_vm4, %v2398_v30  ;;  %v2399_v16 = vpack.c.bf16 %v2395_v29, %v2394_v17  ;;  %4344 = vmatprep.subr.bf16.mxu0 %v4564_v8 }
 0x913   : > { %4345 = vmatpush3.bf16.msra.mxu0 %v4564_v8  ;;  %v4814_v8 = vld [vmem:[%s5249_s22 + $0x10] sm:$0xff] }
 0x914   : > { %4346 = vmatprep.subr.bf16.mxu0 %v4565_v43 }
 0x916   : > { %4339 = vmatmul.mubr.msk.bf16.gmra.mxu0 %vm1169_vm4, %v2399_v16 }
 0x917   : > { %4347 = vmatpush3.bf16.msra.mxu0 %v4565_v43 }
 0x918   : > { %4348 = vmatprep.subr.bf16.mxu0 %v4566_v14 }
 0x91b   : > { %4349 = vmatpush3.bf16.msra.mxu0 %v4566_v14 }
 0x91c   : > { %4350 = vmatprep.subr.bf16.mxu0 %v4567_v31 }
 0x91f   : > { %4351 = vmatpush3.bf16.msra.mxu0 %v4567_v31 }
 0x920   : > { %4352 = vmatprep.subr.bf16.mxu0 %v4568_v40 }
 0x923   : > { %4353 = vmatpush3.bf16.msra.mxu0 %v4568_v40 }
 0x924   : > { %4354 = vmatprep.subr.bf16.mxu0 %v4569_v11 }
 0x927   : > { %4355 = vmatpush3.bf16.msra.mxu0 %v4569_v11 }
 0x928   : > { %4356 = vmatprep.subr.bf16.mxu0 %v4570_v36 }
 0x92b   : > { %4357 = vmatpush3.bf16.msra.mxu0 %v4570_v36  ;;  %v4815_v36 = vld [vmem:[%s5249_s22 + $0x28] sm:$0xff] }
 0x92c   : > { %3137 = vmatprep.subr.bf16.mxu0 %v4576_v50 }
 0x9ce   : > { %v4336_v32 = vpop.f32.mrf.mxu0 }
 0x9d0   : > { %v2478_v37 = vpop.f32.mrf.mxu0 }
 0x9d2   : > { %v4337_v27 = vpop.f32.mrf.mxu0 }
 0x9d3   : > { %v2510_v25 = vpack.c.bf16 %v4337_v27, %v4336_v32  ;;  %v4816_v27 = vld [vmem:[%s5249_s22 + $0x20] sm:$0xff] }
 0x9d4   : > { %v2481_v22 = vpop.f32.mrf.mxu0 }
 0x9d5   : > { %v2509_v60 = vpack.c.bf16 %v2481_v22, %v2478_v37  ;;  %2543 = vrot.lane.b32.xlu1 %v2510_v25, %s5039_s24 }
 0x9d6   : > { %v4340_v13 = vpop.f32.mrf.mxu0 }
 0x9d7   : > { %2541 = vrot.lane.b32.xlu0 %v2509_v60, %s5039_s24 }
 0x9d8   : > { %v2494_v53 = vpop.f32.mrf.mxu0 }
 0x9d9   : > { %2523 = vrot.lane.b32.xlu1 %v1748_v45, %s5041_s23  ;;  %v2532_v45 = vpop.permute.xlu1 %2531 }
 0x9da   : > { %v4341_v46 = vpop.f32.mrf.mxu0  ;;  %v2564_v23 = vsel %vm1169_vm4, %v2554_v49, %v2532_v45  ;;  %v4818_v45 = vld [vmem:[%s5249_s22 + $0x30] sm:$0xff]  ;;  %v4580_v49 = vld [vmem:[#allocation9 + $0xc8] ss:$16 sps:$4 sm:$0xff]  }
 0x9db   : > { %2521 = vrot.lane.b32.xlu0 %v1747_v21, %s5041_s23  ;;  %v2512_v33 = vpack.c.bf16 %v4341_v46, %v4340_v13  ;;  %s4951_s23 = scalar_lea.vmem %s6150_s19, 1024 }
 0x9dc   : > { %v2497_v20 = vpop.f32.mrf.mxu0  ;;  %p4952_p12 = scmp.ne.s32.totalorder %s6150_s19, %s4951_s23  ;;  %p4959_p10 = scmp.lt.s32.totalorder %s4957_s30, %s4951_s23 }
 0x9dd   : > { %2535 = vrot.lane.b32.xlu1 %v2130_v34, %s5040_s29  ;;  %v2511_v47 = vpack.c.bf16 %v2497_v20, %v2494_v53  ;;  %v4817_v53 = vld [vmem:[%s5249_s22 + $0x38] sm:$0xff] }
 0x9de   : > { %p4953_p9 = pnand %p4952_p12, %p6231_p7  ;;  %p4960_p1 = por %p4959_p10, %p4958_p5 }
 0x9df   : > { %2533 = vrot.lane.b32.xlu0 %v2129_v54, %s5040_s29  ;;  %s3661_s29 = scalar_lea.sflag [#allocation5], %s5243_s8 }
 0x9e0   : > { %p4954_p13 = pneg %p4953_p9 }
 0x9e1   : > { %2547 = vrot.lane.b32.xlu1 %v2512_v33, %s5039_s24  ;;  %v4571_v33 = vld [vmem:[#allocation9 + $0xe0] ss:$16 sps:$4 sm:$0xff]  }
 0x9e2   : > { %p4961_p2 = pnand %p4960_p1, %p4954_p13 }
 0x9e3   : > { %2545 = vrot.lane.b32.xlu0 %v2511_v47, %s5039_s24  ;;  %v4573_v47 = vld [vmem:[#allocation9 + $0xe4] ss:$16 sps:$4 sm:$0xff]   ;;  %s6148_s24 = scalar_lea.hbm %s6205_s10, %s4021_s9 }
 0x9e4   : > { %3064 = vmatprep.subr.bf16.mxu1 %v4573_v47 }
 0x9e5   : > { %3065 = vmatpush1.bf16.msra.mxu1 %v4571_v33 }
 0xa47   : > { %v2544_v21 = vpop.permute.xlu1 %2543 }
 0xa48   : > { %v2574_v0 = vsel %vm2569_vm10, %v2564_v23, %v2544_v21 }
 0xa49   : > { %v2542_v34 = vpop.permute.xlu0 %2541 }
 0xa4a   : > { %v2571_v54 = vsel %vm2569_vm10, %v2562_v52, %v2542_v34  ;;  %v4579_v52 = vld [vmem:[#allocation9 + $0xc4] ss:$16 sps:$4 sm:$0xff]   ;;  %v4582_v34 = vld [vmem:[#allocation9 + $0xcc] ss:$16 sps:$4 sm:$0xff]  }
 0xa4b   : > { %4358 = vmatprep.mubr.bf16.mxu0 %v2571_v54  ;;  %v2524_v41 = vpop.permute.xlu1 %2523  ;;  %3066 = vmatprep.subr.bf16.mxu1 %v4579_v52  ;;  %v4583_v54 = vld [vmem:[#allocation9 + $0xa0] ss:$16 sps:$4 sm:$0xff]  }
 0xa4c   : > { %4359 = vmatmul.mubr.bf16.vlgmr.msra.gmra.mxu0 %v2574_v0  ;;  %v2560_v63 = vsel %vm1071_vm0, %v1366_v4, %v2524_v41  ;;  %3067 = vmatpush1.bf16.msra.mxu1 %v4577_v19  ;;  %v4585_v0 = vld [vmem:[#allocation9 + $0xa4] ss:$16 sps:$4 sm:$0xff]   ;;  %v4586_v41 = vld [vmem:[#allocation9 + $0xa8] ss:$16 sps:$4 sm:$0xff]  }
 0xa4d   : > { %v2522_v61 = vpop.permute.xlu0 %2521  ;;  %3138 = vmatpush1.bf16.msra.mxu0 %v4574_v55  ;;  %3068 = vmatprep.subr.bf16.mxu1 %v4585_v0 }
 0xa4e   : > { %v2557_v59 = vsel %vm1071_vm0, %v1365_v5, %v2522_v61  ;;  %3139 = vmatprep.subr.bf16.mxu0 %v4582_v34  ;;  %v4588_v61 = vld [vmem:[#allocation9 + $0xac] ss:$16 sps:$4 sm:$0xff]  }
 0xa4f   : > { %v2536_v2 = vpop.permute.xlu1 %2535 }
 0xa50   : > { %v2568_v58 = vsel %vm1169_vm4, %v2560_v63, %v2536_v2  ;;  %3069 = vmatpush1.bf16.msra.mxu1 %v4583_v54  ;;  %v4589_v2 = vld [vmem:[#allocation9 + $0x80] ss:$16 sps:$4 sm:$0xff]  }
 0xa51   : > { %v2534_v3 = vpop.permute.xlu0 %2533  ;;  %3140 = vmatpush1.bf16.msra.mxu0 %v4580_v49  ;;  %v4595_v63 = vld [vmem:[#allocation9 + $0x60] ss:$16 sps:$4 sm:$0xff]  }
 0xa52   : > { %v2566_v51 = vsel %vm1169_vm4, %v2557_v59, %v2534_v3  ;;  %3141 = vmatprep.subr.bf16.mxu0 %v4588_v61  ;;  %v4591_v3 = vld [vmem:[#allocation9 + $0x84] ss:$16 sps:$4 sm:$0xff]   ;;  %v4592_v59 = vld [vmem:[#allocation9 + $0x88] ss:$16 sps:$4 sm:$0xff]  }
 0xa53   : > { %v2548_v62 = vpop.permute.xlu1 %2547  ;;  %3070 = vmatprep.subr.bf16.mxu1 %v4591_v3 }
 0xa54   : > { %v2580_v7 = vsel %vm2569_vm10, %v2568_v58, %v2548_v62  ;;  %v4594_v62 = vld [vmem:[#allocation9 + $0x8c] ss:$16 sps:$4 sm:$0xff]   ;;  %3071 = vmatpush1.bf16.msra.mxu1 %v4589_v2 }
 0xa55   : > { %v2546_v48 = vpop.permute.xlu0 %2545  ;;  %3142 = vmatpush1.bf16.msra.mxu0 %v4586_v41  ;;  %v4600_v58 = vld [vmem:[#allocation9 + $0x6c] ss:$16 sps:$4 sm:$0xff]  }
 0xa56   : > { %v2577_v57 = vsel %vm2569_vm10, %v2566_v51, %v2546_v48  ;;  %3143 = vmatprep.subr.bf16.mxu0 %v4594_v62  ;;  %v4597_v51 = vld [vmem:[#allocation9 + $0x64] ss:$16 sps:$4 sm:$0xff]   ;;  %v4598_v48 = vld [vmem:[#allocation9 + $0x68] ss:$16 sps:$4 sm:$0xff]  }
 0xa57   : > { %4362 = vmatprep.mubr.bf16.mxu0 %v2577_v57  ;;  %3072 = vmatprep.subr.bf16.mxu1 %v4597_v51  ;;  %v4601_v57 = vld [vmem:[#allocation9 + $0x40] ss:$16 sps:$4 sm:$0xff]  }
 0xa58   : > { %4363 = vmatmul.mubr.bf16.gmra.mxu0 %v2580_v7  ;;  %3073 = vmatpush1.bf16.msra.mxu1 %v4595_v63  ;;  %v4603_v7 = vld [vmem:[#allocation9 + $0x44] ss:$16 sps:$4 sm:$0xff]  }
 0xa59   : > { %3169 = vmatprep.mubr.bf16.mxu0 %v5038_v39  ;;  %3144 = vmatpush1.bf16.msra.mxu0 %v4592_v59 }
 0xa5a   : > { %3145 = vmatprep.subr.bf16.mxu0 %v4600_v58  ;;  %3074 = vmatprep.subr.bf16.mxu1 %v4603_v7 }
 0xa5c   : > { %3075 = vmatpush1.bf16.msra.mxu1 %v4601_v57 }
 0xa5d   : > { %3146 = vmatpush1.bf16.msra.mxu0 %v4598_v48 }
 0xb0c   : > { %v4360_v56 = vpop.f32.mrf.mxu0 }
 0xb0d   : > { %v2696_v30 = vadd.f32 %v4360_v56, %v3924_v6  ;;  %v4604_v56 = vld [vmem:[#allocation9 + $0x48] ss:$16 sps:$4 sm:$0xff]  }
 0xb0e   : > { %v2687_v9 = vpop.f32.mrf.mxu0 }
 0xb0f   : > { %v2688_v4 = vadd.f32 %v3924_v6, %v2687_v9  ;;  %v6019_v43 = vadd.f32 %v4814_v8, %v2696_v30  ;;  %v4607_v9 = vld [vmem:[#allocation9 + $0x20] ss:$16 sps:$4 sm:$0xff]  }
 0xb10   : > { %v4361_v5 = vpop.f32.mrf.mxu0 }
 0xb11   : > { %v6003_v26 = vadd.f32 %v4811_v28, %v2688_v4  ;;  %v2699_v18 = vadd.f32 %v4361_v5, %v3924_v6  ;;  %v2754_v37 = vmul.f32 %v6019_v43, %v6019_v43  ;;  %v4609_v4 = vld [vmem:[#allocation9 + $0x24] ss:$16 sps:$4 sm:$0xff]   ;;  %v4610_v5 = vld [vmem:[#allocation9 + $0x28] ss:$16 sps:$4 sm:$0xff]   ;;  %v4612_v28 = vld [vmem:[#allocation9 + $0x2c] ss:$16 sps:$4 sm:$0xff]  }
 0xb12   : > { %v2690_v44 = vpop.f32.mrf.mxu0  ;;  %3076 = vmatprep.subr.bf16.mxu1 %v4609_v4 }
 0xb13   : > { %v2691_v42 = vadd.f32 %v3924_v6, %v2690_v44  ;;  %2728 = vadd.xlane.f32.xlu0 %v6003_v26  ;;  %v2752_v1 = vmul.f32 %v6003_v26, %v6003_v26  ;;  %v6013_v29 = vadd.f32 %v4813_v12, %v2699_v18  ;;  %3077 = vmatpush1.bf16.msra.mxu1 %v4607_v9  ;;  %v4613_v44 = vld [vmem:[#allocation9] ss:$16 sps:$4 sm:$0xff]   ;;  %v4616_v18 = vld [vmem:[#allocation9 + $0x8] ss:$16 sps:$4 sm:$0xff]  }
 0xb15   : > { %v6007_v35 = vadd.f32 %v4812_v15, %v2691_v42  ;;  %v2755_v14 = vmul.f32 %v6013_v29, %v6013_v29  ;;  %v4615_v42 = vld [vmem:[#allocation9 + $0x4] ss:$16 sps:$4 sm:$0xff]   ;;  %v4618_v15 = vld [vmem:[#allocation9 + $0xc] ss:$16 sps:$4 sm:$0xff]  }
 0xb16   : > { %3078 = vmatprep.subr.bf16.mxu1 %v4615_v42 }
 0xb17   : > { %2730 = vadd.xlane.f32.xlu1 %v6007_v35  ;;  %2760 = vadd.xlane.f32.xlu0 %v2752_v1  ;;  %v2753_v17 = vmul.f32 %v6007_v35, %v6007_v35  ;;  %v4619_v1 = vld [vmem:[#allocation11 + $0x78] sm:$0xff]  }
 0xb18   : > { %v4364_v38 = vpop.f32.mrf.mxu0  ;;  %3079 = vmatpush1.bf16.msra.mxu1 %v4613_v44 }
 0xb19   : > { %v2712_v13 = vadd.f32 %v4364_v38, %v3924_v6  ;;  %v4620_v38 = vld [vmem:[#allocation11 + $0xf8] sm:$0xff]   ;;  %4110 = vmatprep.subr.bf16.mxu1 %v4619_v1 }
 0xb1a   : > { %v2703_v16 = vpop.f32.mrf.mxu0 }
 0xb1b   : > { %2734 = vadd.xlane.f32.xlu1 %v6013_v29  ;;  %2762 = vadd.xlane.f32.xlu0 %v2753_v17  ;;  %v2704_v11 = vadd.f32 %v3924_v6, %v2703_v16  ;;  %v6043_v10 = vadd.f32 %v4818_v45, %v2712_v13 }
 0xb1c   : > { %v4365_v24 = vpop.f32.mrf.mxu0 }
 0xb1d   : > { %v6031_v25 = vadd.f32 %v4816_v27, %v2704_v11  ;;  %v2715_v22 = vadd.f32 %v4365_v24, %v3924_v6  ;;  %v2758_v23 = vmul.f32 %v6043_v10, %v6043_v10 }
 0xb1e   : > { %v2706_v31 = vpop.f32.mrf.mxu0 }
 0xb1f   : > { %v2707_v40 = vadd.f32 %v3924_v6, %v2706_v31  ;;  %2766 = vadd.xlane.f32.xlu1 %v2755_v14  ;;  %2732 = vadd.xlane.f32.xlu0 %v6019_v43  ;;  %v6037_v46 = vadd.f32 %v4817_v53, %v2715_v22  ;;  %v2756_v20 = vmul.f32 %v6031_v25, %v6031_v25  ;;  %v4606_v6 = vld [vmem:[#allocation9 + $0x4c] ss:$16 sps:$4 sm:$0xff]  }
 0xb20   : > { %3147 = vmatprep.subr.bf16.mxu0 %v4606_v6 }
 0xb21   : > { %v6025_v32 = vadd.f32 %v4815_v36, %v2707_v40  ;;  %v2759_v21 = vmul.f32 %v6037_v46, %v6037_v46  ;;  %3148 = vmatpush1.bf16.msra.mxu0 %v4604_v56 }
 0xb22   : > { %3149 = vmatprep.subr.bf16.mxu0 %v4612_v28 }
 0xb23   : > { %2764 = vadd.xlane.f32.xlu0 %v2754_v37  ;;  %2738 = vadd.xlane.f32.xlu1 %v6025_v32  ;;  %v2757_v60 = vmul.f32 %v6025_v32, %v6025_v32 }
 0xb25   : > { %3150 = vmatpush1.bf16.msra.mxu0 %v4610_v5 }
 0xb26   : > { %3151 = vmatprep.subr.bf16.mxu0 %v4618_v15 }
 0xb27   : > { %2770 = vadd.xlane.f32.xlu1 %v2757_v60  ;;  %2736 = vadd.xlane.f32.xlu0 %v6031_v25 }
 0xb29   : > { %3152 = vmatpush1.bf16.msra.mxu0 %v4616_v18 }
 0xb2a   : > { %4150 = vmatprep.subr.bf16.mxu0 %v4620_v38 }
 0xb2b   : > { %2742 = vadd.xlane.f32.xlu1 %v6037_v46  ;;  %2768 = vadd.xlane.f32.xlu0 %v2756_v20 }
 0xb2f   : > { %2774 = vadd.xlane.f32.xlu1 %v2759_v21  ;;  %2740 = vadd.xlane.f32.xlu0 %v6043_v10 }
 0xb33   : > { %2772 = vadd.xlane.f32.xlu0 %v2758_v23 }
 0xb9c   : > { %v2729_v30 = vpop.xlane.xlu0 %2728 }
 0xb9d   : > { %v2744_v12 = vmul.f32 0.0078125, %v2729_v30 }
 0xb9f   : > { %v2784_v24 = vmul.f32 %v2744_v12, %v2744_v12  ;;  %v2808_v5 = vsub.f32 %v6003_v26, %v2744_v12 }
 0xba0   : > { %v2761_v17 = vpop.xlane.xlu0 %2760  ;;  %v2731_v16 = vpop.xlane.xlu1 %2730 }
 0xba1   : > { %v2776_v8 = vmul.f32 0.0078125, %v2761_v17  ;;  %v6050_v14 = vmul.f32 0.0078125, %v2731_v16  ;;  %v6080_v16 = vld [vmem:[%s6201_s6] ss:$0 sm:$0xff] }
 0xba3   : > { %v2792_v31 = vsub.f32 %v2776_v8, %v2784_v24  ;;  %v2785_v37 = vmul.f32 %v6050_v14, %v6050_v14  ;;  %v2809_v12 = vsub.f32 %v6007_v35, %v6050_v14 }
 0xba4   : > { %v2763_v40 = vpop.xlane.xlu0 %2762  ;;  %v2735_v11 = vpop.xlane.xlu1 %2734 }
 0xba5   : > { %v2800_v36 = vmax.f32 %v2792_v31, 0.0  ;;  %v2777_v27 = vmul.f32 0.0078125, %v2763_v40  ;;  %v6054_v22 = vmul.f32 0.0078125, %v2735_v11 }
 0xba7   : > { %v2816_v60 = vadd.f32 1e-05, %v2800_v36  ;;  %v2793_v13 = vsub.f32 %v2777_v27, %v2785_v37  ;;  %v2787_v53 = vmul.f32 %v6054_v22, %v6054_v22  ;;  %v2811_v40 = vsub.f32 %v6013_v29, %v6054_v22 }
 0xba8   : > { %v2733_v20 = vpop.xlane.xlu0 %2732  ;;  %v2767_v33 = vpop.xlane.xlu1 %2766 }
 0xba9   : > { %4795 = vrsqrt.f32 %v2816_v60  ;;  %v2801_v47 = vmax.f32 %v2793_v13, 0.0  ;;  %v6058_v55 = vmul.f32 0.0078125, %v2733_v20  ;;  %v2779_v50 = vmul.f32 0.0078125, %v2767_v33 }
 0xbab   : > { %v2817_v45 = vadd.f32 1e-05, %v2801_v47  ;;  %v2795_v21 = vsub.f32 %v2779_v50, %v2787_v53  ;;  %v2786_v19 = vmul.f32 %v6058_v55, %v6058_v55  ;;  %v6092_v53 = vld [vmem:[%s6202_s7] ss:$0 sm:$0xff] }
 0xbac   : > { %v2765_v52 = vpop.xlane.xlu0 %2764  ;;  %v2739_v49 = vpop.xlane.xlu1 %2738 }
 0xbad   : > { %4797 = vrsqrt.f32 %v2817_v45  ;;  %v2803_v34 = vmax.f32 %v2795_v21, 0.0  ;;  %v2778_v23 = vmul.f32 0.0078125, %v2765_v52  ;;  %v6062_v54 = vmul.f32 0.0078125, %v2739_v49 }
 0xbae   : > { %v2810_v21 = vsub.f32 %v6019_v43, %v6058_v55 }
 0xbaf   : > { %v2819_v0 = vadd.f32 1e-05, %v2803_v34  ;;  %v2794_v41 = vsub.f32 %v2778_v23, %v2786_v19  ;;  %v2789_v61 = vmul.f32 %v6062_v54, %v6062_v54  ;;  %v4621_v34 = vld [vmem:[#allocation11 + $0x38] sm:$0xff]  }
 0xbb0   : > { %v2737_v2 = vpop.xlane.xlu0 %2736  ;;  %v2771_v3 = vpop.xlane.xlu1 %2770  ;;  %v4622_v23 = vld [vmem:[#allocation11 + $0xb8] sm:$0xff]  }
 0xbb1   : > { %4799 = vrsqrt.f32 %v2819_v0  ;;  %v2802_v59 = vmax.f32 %v2794_v41, 0.0  ;;  %v6066_v62 = vmul.f32 0.0078125, %v2737_v2  ;;  %v2781_v63 = vmul.f32 0.0078125, %v2771_v3  ;;  %v4623_v2 = vld [vmem:[#allocation11 + $0x70] sm:$0xff]  }
 0xbb2   : > { %v4624_v3 = vld [vmem:[#allocation11 + $0xf0] sm:$0xff]  }
 0xbb3   : > { %v2818_v51 = vadd.f32 1e-05, %v2802_v59  ;;  %v2797_v48 = vsub.f32 %v2781_v63, %v2789_v61  ;;  %v2788_v58 = vmul.f32 %v6066_v62, %v6066_v62  ;;  %v2813_v59 = vsub.f32 %v6025_v32, %v6062_v54  ;;  %v4627_v54 = vld [vmem:[#allocation11 + $0x68] sm:$0xff]  }
 0xbb4   : > { %v2769_v57 = vpop.xlane.xlu0 %2768  ;;  %v2743_v7 = vpop.xlane.xlu1 %2742 }
 0xbb5   : > { %4801 = vrsqrt.f32 %v2818_v51  ;;  %v2805_v56 = vmax.f32 %v2797_v48, 0.0  ;;  %v2780_v6 = vmul.f32 0.0078125, %v2769_v57  ;;  %v6070_v9 = vmul.f32 0.0078125, %v2743_v7  ;;  %v4625_v51 = vld [vmem:[#allocation11 + $0x30] sm:$0xff]  }
 0xbb6   : > { %v4796_v4 = vpop.eup %4795  ;;  %v4626_v48 = vld [vmem:[#allocation11 + $0xb0] sm:$0xff]  }
 0xbb7   : > { %v2821_v28 = vadd.f32 1e-05, %v2805_v56  ;;  %v2796_v44 = vsub.f32 %v2780_v6, %v2788_v58  ;;  %v2791_v42 = vmul.f32 %v6070_v9, %v6070_v9  ;;  %v2832_v1 = vmul.f32 %v4796_v4, %v2808_v5  ;;  %v4628_v56 = vld [vmem:[#allocation11 + $0xe8] sm:$0xff]  }
 0xbb8   : > { %v2741_v18 = vpop.xlane.xlu0 %2740  ;;  %v2775_v15 = vpop.xlane.xlu1 %2774  ;;  %v2812_v6 = vsub.f32 %v6031_v25, %v6066_v62 }
 0xbb9   : > { %4803 = vrsqrt.f32 %v2821_v28  ;;  %v2804_v38 = vmax.f32 %v2796_v44, 0.0  ;;  %v6075_v30 = vmul.f32 0.0078125, %v2741_v18  ;;  %v2783_v17 = vmul.f32 0.0078125, %v2775_v15  ;;  %v4629_v28 = vld [vmem:[#allocation11 + $0x28] sm:$0xff]   ;;  %v4631_v15 = vld [vmem:[#allocation11 + $0x60] sm:$0xff]  }
 0xbba   : > { %v4798_v24 = vpop.eup %4797  ;;  %v2846_v37 = vmul.f32 %v6080_v16, %v2832_v1  ;;  %v4630_v44 = vld [vmem:[#allocation11 + $0xa8] sm:$0xff]   ;;  %v4632_v1 = vld [vmem:[#allocation11 + $0xe0] sm:$0xff]  }
 0xbbb   : > { %v2820_v8 = vadd.f32 1e-05, %v2804_v38  ;;  %v2799_v31 = vsub.f32 %v2783_v17, %v2791_v42  ;;  %v2833_v36 = vmul.f32 %v4798_v24, %v2809_v12  ;;  %v2790_v27 = vmul.f32 %v6075_v30, %v6075_v30  ;;  %v4633_v24 = vld [vmem:[#allocation11 + $0x20] sm:$0xff]  }
 0xbbc   : > { %v2773_v11 = vpop.xlane.xlu0 %2772  ;;  %v2860_v50 = vadd.f32 %v6092_v53, %v2846_v37  ;;  %v2815_v38 = vsub.f32 %v6037_v46, %v6070_v9  ;;  %v4634_v12 = vld [vmem:[#allocation11 + $0xa0] sm:$0xff]   ;;  %v4636_v9 = vld [vmem:[#allocation11 + $0xd8] sm:$0xff]  }
 0xbbd   : > { %4805 = vrsqrt.f32 %v2820_v8  ;;  %v2807_v60 = vmax.f32 %v2799_v31, 0.0  ;;  %v2782_v13 = vmul.f32 0.0078125, %v2773_v11  ;;  %v2847_v20 = vmul.f32 %v6080_v16, %v2833_v36  ;;  %v4635_v11 = vld [vmem:[#allocation11 + $0x58] sm:$0xff]  }
 0xbbe   : > { %v4800_v14 = vpop.eup %4799  ;;  %v2814_v36 = vsub.f32 %v6043_v10, %v6075_v30 }
 0xbbf   : > { %v2823_v33 = vadd.f32 1e-05, %v2807_v60  ;;  %v2798_v22 = vsub.f32 %v2782_v13, %v2790_v27  ;;  %v2835_v47 = vmul.f32 %v4800_v14, %v2811_v40  ;;  %v2861_v45 = vadd.f32 %v6092_v53, %v2847_v20  ;;  %v4637_v60 = vld [vmem:[#allocation11 + $0x18] sm:$0xff]  }
 0xbc0   : > { %v4638_v13 = vld [vmem:[#allocation11 + $0x98] sm:$0xff]  }
 0xbc1   : > { %4807 = vrsqrt.f32 %v2823_v33  ;;  %v2806_v19 = vmax.f32 %v2798_v22, 0.0  ;;  %v2868_v49 = vpack.c.bf16 %v2861_v45, %v2860_v50  ;;  %v2849_v61 = vmul.f32 %v6080_v16, %v2835_v47  ;;  %v4639_v50 = vld [vmem:[#allocation11 + $0x50] sm:$0xff]  }
 0xbc2   : > { %v4802_v52 = vpop.eup %4801  ;;  %v4640_v45 = vld [vmem:[#allocation11 + $0xd0] sm:$0xff]  }
 0xbc3   : > { %v2822_v0 = vadd.f32 1e-05, %v2806_v19  ;;  %v2834_v41 = vmul.f32 %v4802_v52, %v2810_v21  ;;  %3097 = vmatmul.mubr.bf16.vlgmr.msra.gmra.mxu1 %v2868_v49  ;;  %3170 = vmatmul.mubr.bf16.vlgmr.msra.gmra.mxu0 %v2868_v49  ;;  %v2863_v57 = vadd.f32 %v6092_v53, %v2849_v61  ;;  %v4641_v21 = vld [vmem:[#allocation11 + $0x10] sm:$0xff]   ;;  %v4644_v52 = vld [vmem:[#allocation11 + $0xc8] sm:$0xff]  }
 0xbc4   : > { %3106 = vmatprep.mubr.bf16.mxu1 %v5038_v39  ;;  %3179 = vmatprep.mubr.bf16.mxu0 %v5038_v39  ;;  %v4642_v19 = vld [vmem:[#allocation11 + $0x90] sm:$0xff]   ;;  %v4646_v49 = vld [vmem:[#allocation11 + $0x88] sm:$0xff]  }
 0xbc5   : > { %4809 = vrsqrt.f32 %v2822_v0  ;;  %v2848_v55 = vmul.f32 %v6080_v16, %v2834_v41  ;;  %4111 = vmatpush3.bf16.msra.mxu1 %v4621_v34  ;;  %4151 = vmatpush3.bf16.msra.mxu0 %v4622_v23  ;;  %v4647_v34 = vld [vmem:[#allocation11 + $0x40] sm:$0xff]  }
 0xbc6   : > { %v4804_v63 = vpop.eup %4803  ;;  %4112 = vmatprep.subr.bf16.mxu1 %v4623_v2  ;;  %4152 = vmatprep.subr.bf16.mxu0 %v4624_v3  ;;  %v4648_v23 = vld [vmem:[#allocation11 + $0xc0] sm:$0xff]  }
 0xbc7   : > { %v2862_v58 = vadd.f32 %v6092_v53, %v2848_v55  ;;  %v2837_v7 = vmul.f32 %v4804_v63, %v2813_v59  ;;  %v4650_v0 = vld [vmem:[#allocation11 + $0x80] sm:$0xff]  }
 0xbc9   : > { %v2869_v4 = vpack.c.bf16 %v2863_v57, %v2862_v58  ;;  %4113 = vmatpush3.bf16.msra.mxu1 %v4625_v51  ;;  %4153 = vmatpush3.bf16.msra.mxu0 %v4626_v48  ;;  %v2851_v18 = vmul.f32 %v6080_v16, %v2837_v7 }
 0xbca   : > { %v4806_v5 = vpop.eup %4805  ;;  %4114 = vmatprep.subr.bf16.mxu1 %v4627_v54  ;;  %4154 = vmatprep.subr.bf16.mxu0 %v4628_v56 }
 0xbcb   : > { %v2836_v42 = vmul.f32 %v4806_v5, %v2812_v6  ;;  %3107 = vmatmul.mubr.bf16.gmra.mxu1 %v2869_v4  ;;  %3180 = vmatmul.mubr.bf16.gmra.mxu0 %v2869_v4  ;;  %v2865_v31 = vadd.f32 %v6092_v53, %v2851_v18 }
 0xbcc   : > { %3116 = vmatprep.mubr.bf16.mxu1 %v5038_v39  ;;  %3189 = vmatprep.mubr.bf16.mxu0 %v5038_v39 }
 0xbcd   : > { %v2850_v62 = vmul.f32 %v6080_v16, %v2836_v42  ;;  %4115 = vmatpush3.bf16.msra.mxu1 %v4629_v28  ;;  %4155 = vmatpush3.bf16.msra.mxu0 %v4630_v44 }
 0xbce   : > { %v4808_v17 = vpop.eup %4807  ;;  %4116 = vmatprep.subr.bf16.mxu1 %v4631_v15  ;;  %4156 = vmatprep.subr.bf16.mxu0 %v4632_v1 }
 0xbcf   : > { %v2864_v8 = vadd.f32 %v6092_v53, %v2850_v62  ;;  %v2839_v40 = vmul.f32 %v4808_v17, %v2815_v38 }
 0xbd1   : > { %v2870_v37 = vpack.c.bf16 %v2865_v31, %v2864_v8  ;;  %4117 = vmatpush3.bf16.msra.mxu1 %v4633_v24  ;;  %4157 = vmatpush3.bf16.msra.mxu0 %v4634_v12  ;;  %v2853_v20 = vmul.f32 %v6080_v16, %v2839_v40 }
 0xbd2   : > { %v4810_v27 = vpop.eup %4809  ;;  %4118 = vmatprep.subr.bf16.mxu1 %v4635_v11  ;;  %4158 = vmatprep.subr.bf16.mxu0 %v4636_v9 }
 0xbd3   : > { %v2838_v14 = vmul.f32 %v4810_v27, %v2814_v36  ;;  %3117 = vmatmul.mubr.bf16.gmra.mxu1 %v2870_v37  ;;  %3190 = vmatmul.mubr.bf16.gmra.mxu0 %v2870_v37  ;;  %v2867_v22 = vadd.f32 %v6092_v53, %v2853_v20 }
 0xbd4   : > { %3126 = vmatprep.mubr.bf16.mxu1 %v5038_v39  ;;  %3199 = vmatprep.mubr.bf16.mxu0 %v5038_v39  ;;  %v4643_v39 = vld [vmem:[#allocation11 + $0x48] sm:$0xff]  }
 0xbd5   : > { %v2852_v33 = vmul.f32 %v6080_v16, %v2838_v14  ;;  %4119 = vmatpush3.bf16.msra.mxu1 %v4637_v60  ;;  %4159 = vmatpush3.bf16.msra.mxu0 %v4638_v13  ;;  %v4645_v16 = vld [vmem:[#allocation11 + $0x8] sm:$0xff]  }
 0xbd6   : > { %4120 = vmatprep.subr.bf16.mxu1 %v4639_v50  ;;  %4160 = vmatprep.subr.bf16.mxu0 %v4640_v45 }
 0xbd7   : > { %v2866_v30 = vadd.f32 %v6092_v53, %v2852_v33  ;;  %v4649_v53 = vld [vmem:[#allocation11] sm:$0xff]  }
 0xbd9   : > { %v2871_v47 = vpack.c.bf16 %v2867_v22, %v2866_v30  ;;  %4121 = vmatpush3.bf16.msra.mxu1 %v4641_v21  ;;  %4161 = vmatpush3.bf16.msra.mxu0 %v4642_v19 }
 0xbda   : > { %4122 = vmatprep.subr.bf16.mxu1 %v4643_v39  ;;  %4162 = vmatprep.subr.bf16.mxu0 %v4644_v52 }
 0xbdb   : > { %3127 = vmatmul.mubr.bf16.gmra.mxu1 %v2871_v47  ;;  %3200 = vmatmul.mubr.bf16.gmra.mxu0 %v2871_v47 }
 0xbdd   : > { %4123 = vmatpush3.bf16.msra.mxu1 %v4645_v16  ;;  %4163 = vmatpush3.bf16.msra.mxu0 %v4646_v49 }
 0xbde   : > { %4124 = vmatprep.subr.bf16.mxu1 %v4647_v34  ;;  %4164 = vmatprep.subr.bf16.mxu0 %v4648_v23 }
 0xbe1   : > { %4125 = vmatpush3.bf16.msra.mxu1 %v4649_v53  ;;  %4165 = vmatpush3.bf16.msra.mxu0 %v4650_v0 }
 0xc83   : > { %v3098_v41 = vpop.f32.mrf.mxu1  ;;  %v3171_v61 = vpop.f32.mrf.mxu0 }
 0xc84   : > { %v3210_v6 = vmax.f32 %v3098_v41, 0.0  ;;  %v3212_v4 = vmax.f32 %v3171_v61, 0.0 }
 0xc85   : > { %v3100_v2 = vpop.f32.mrf.mxu1  ;;  %v3173_v3 = vpop.f32.mrf.mxu0 }
 0xc86   : > { %v3211_v57 = vmax.f32 %v3100_v2, 0.0  ;;  %v3213_v7 = vmax.f32 %v3173_v3, 0.0 }
 0xc87   : > { %v3102_v59 = vpop.f32.mrf.mxu1  ;;  %v3175_v55 = vpop.f32.mrf.mxu0 }
 0xc88   : > { %v3214_v63 = vmax.f32 %v3102_v59, 0.0  ;;  %v3216_v51 = vmax.f32 %v3175_v55, 0.0 }
 0xc89   : > { %v3104_v48 = vpop.f32.mrf.mxu1  ;;  %v3177_v58 = vpop.f32.mrf.mxu0 }
 0xc8a   : > { %v3215_v54 = vmax.f32 %v3104_v48, 0.0  ;;  %v3217_v56 = vmax.f32 %v3177_v58, 0.0  ;;  %v3242_v18 = vpack.c.bf16 %v3214_v63, %v3210_v6  ;;  %v3244_v15 = vpack.c.bf16 %v3216_v51, %v3212_v4 }
 0xc8b   : > { %v3108_v5 = vpop.f32.mrf.mxu1  ;;  %v3181_v28 = vpop.f32.mrf.mxu0 }
 0xc8c   : > { %v3243_v44 = vpack.c.bf16 %v3215_v54, %v3211_v57  ;;  %v3245_v42 = vpack.c.bf16 %v3217_v56, %v3213_v7  ;;  %v3218_v37 = vmax.f32 %v3108_v5, 0.0  ;;  %v3220_v27 = vmax.f32 %v3181_v28, 0.0 }
 0xc8d   : > { %v3110_v1 = vpop.f32.mrf.mxu1  ;;  %v3183_v38 = vpop.f32.mrf.mxu0 }
 0xc8e   : > { %3546 = vmatprep.mubr.bf16.mxu1 %v3243_v44  ;;  %3611 = vmatprep.mubr.bf16.mxu0 %v3245_v42  ;;  %v3219_v40 = vmax.f32 %v3110_v1, 0.0  ;;  %v3221_v11 = vmax.f32 %v3183_v38, 0.0 }
 0xc8f   : > { %v3112_v62 = vpop.f32.mrf.mxu1  ;;  %v3185_v17 = vpop.f32.mrf.mxu0  ;;  %3547 = vmatmul.mubr.bf16.vlgmr.msra.gmra.mxu1 %v3242_v18  ;;  %3612 = vmatmul.mubr.bf16.vlgmr.msra.gmra.mxu0 %v3244_v15 }
 0xc90   : > { %v3222_v24 = vmax.f32 %v3112_v62, 0.0  ;;  %v3224_v12 = vmax.f32 %v3185_v17, 0.0 }
 0xc91   : > { %v3114_v8 = vpop.f32.mrf.mxu1  ;;  %v3187_v31 = vpop.f32.mrf.mxu0 }
 0xc92   : > { %v3223_v9 = vmax.f32 %v3114_v8, 0.0  ;;  %v3225_v36 = vmax.f32 %v3187_v31, 0.0  ;;  %v3246_v33 = vpack.c.bf16 %v3222_v24, %v3218_v37  ;;  %v3248_v30 = vpack.c.bf16 %v3224_v12, %v3220_v27 }
 0xc93   : > { %v3118_v60 = vpop.f32.mrf.mxu1  ;;  %v3191_v13 = vpop.f32.mrf.mxu0 }
 0xc94   : > { %v3247_v14 = vpack.c.bf16 %v3223_v9, %v3219_v40  ;;  %v3249_v20 = vpack.c.bf16 %v3225_v36, %v3221_v11  ;;  %v3226_v53 = vmax.f32 %v3118_v60, 0.0  ;;  %v3228_v0 = vmax.f32 %v3191_v13, 0.0 }
 0xc95   : > { %v3120_v22 = vpop.f32.mrf.mxu1  ;;  %v3193_v47 = vpop.f32.mrf.mxu0 }
 0xc96   : > { %3554 = vmatprep.mubr.bf16.mxu1 %v3247_v14  ;;  %3619 = vmatprep.mubr.bf16.mxu0 %v3249_v20  ;;  %v3227_v16 = vmax.f32 %v3120_v22, 0.0  ;;  %v3229_v49 = vmax.f32 %v3193_v47, 0.0 }
 0xc97   : > { %v3122_v50 = vpop.f32.mrf.mxu1  ;;  %v3195_v45 = vpop.f32.mrf.mxu0  ;;  %3555 = vmatmul.mubr.bf16.gmra.mxu1 %v3246_v33  ;;  %3620 = vmatmul.mubr.bf16.gmra.mxu0 %v3248_v30 }
 0xc98   : > { %v3230_v21 = vmax.f32 %v3122_v50, 0.0  ;;  %v3232_v19 = vmax.f32 %v3195_v45, 0.0 }
 0xc99   : > { %v3124_v39 = vpop.f32.mrf.mxu1  ;;  %v3197_v52 = vpop.f32.mrf.mxu0 }
 0xc9a   : > { %v3231_v34 = vmax.f32 %v3124_v39, 0.0  ;;  %v3233_v23 = vmax.f32 %v3197_v52, 0.0  ;;  %v3250_v59 = vpack.c.bf16 %v3230_v21, %v3226_v53  ;;  %v3252_v55 = vpack.c.bf16 %v3232_v19, %v3228_v0 }
 0xc9b   : > { %v3128_v41 = vpop.f32.mrf.mxu1  ;;  %v3201_v61 = vpop.f32.mrf.mxu0 }
 0xc9c   : > { %v3251_v2 = vpack.c.bf16 %v3231_v34, %v3227_v16  ;;  %v3253_v3 = vpack.c.bf16 %v3233_v23, %v3229_v49  ;;  %v3234_v44 = vmax.f32 %v3128_v41, 0.0  ;;  %v3236_v42 = vmax.f32 %v3201_v61, 0.0 }
 0xc9d   : > { %v3130_v63 = vpop.f32.mrf.mxu1  ;;  %v3203_v51 = vpop.f32.mrf.mxu0 }
 0xc9e   : > { %3562 = vmatprep.mubr.bf16.mxu1 %v3251_v2  ;;  %3627 = vmatprep.mubr.bf16.mxu0 %v3253_v3  ;;  %v3235_v6 = vmax.f32 %v3130_v63, 0.0  ;;  %v3237_v4 = vmax.f32 %v3203_v51, 0.0 }
 0xc9f   : > { %v3132_v48 = vpop.f32.mrf.mxu1  ;;  %v3205_v58 = vpop.f32.mrf.mxu0  ;;  %3563 = vmatmul.mubr.bf16.gmra.mxu1 %v3250_v59  ;;  %3628 = vmatmul.mubr.bf16.gmra.mxu0 %v3252_v55 }
 0xca0   : > { %v3238_v57 = vmax.f32 %v3132_v48, 0.0  ;;  %v3240_v7 = vmax.f32 %v3205_v58, 0.0 }
 0xca1   : > { %v3134_v54 = vpop.f32.mrf.mxu1  ;;  %v3207_v56 = vpop.f32.mrf.mxu0 }
 0xca2   : > { %v3239_v5 = vmax.f32 %v3134_v54, 0.0  ;;  %v3241_v28 = vmax.f32 %v3207_v56, 0.0  ;;  %v3254_v1 = vpack.c.bf16 %v3238_v57, %v3234_v44  ;;  %v3256_v38 = vpack.c.bf16 %v3240_v7, %v3236_v42 }
 0xca4   : > { %v3255_v18 = vpack.c.bf16 %v3239_v5, %v3235_v6  ;;  %v3257_v15 = vpack.c.bf16 %v3241_v28, %v3237_v4 }
 0xca6   : > { %3570 = vmatprep.mubr.bf16.mxu1 %v3255_v18  ;;  %3635 = vmatprep.mubr.bf16.mxu0 %v3257_v15 }
 0xca7   : > { %3571 = vmatmul.mubr.bf16.gmra.mxu1 %v3254_v1  ;;  %3636 = vmatmul.mubr.bf16.gmra.mxu0 %v3256_v38 }
 0xd4f   : > { %v4126_v62 = vpop.f32.mrf.mxu1  ;;  %v4166_v17 = vpop.f32.mrf.mxu0 }
 0xd51   : > { %v4127_v24 = vpop.f32.mrf.mxu1  ;;  %v4167_v12 = vpop.f32.mrf.mxu0 }
 0xd52   : > { %v4128_v8 = vadd.f32 %v4127_v24, %v4126_v62  ;;  %v4168_v31 = vadd.f32 %v4167_v12, %v4166_v17 }
 0xd53   : > { %v4129_v40 = vpop.f32.mrf.mxu1  ;;  %v4169_v11 = vpop.f32.mrf.mxu0 }
 0xd54   : > { %v3614_v9 = vadd.f32 %v4168_v31, %v4128_v8 }
 0xd55   : > { %v4130_v36 = vpop.f32.mrf.mxu1  ;;  %v4170_v37 = vpop.f32.mrf.mxu0 }
 0xd56   : > { %v3644_v27 = vadd.f32 %v3614_v9, %v6003_v26  ;;  %v4131_v60 = vadd.f32 %v4130_v36, %v4129_v40  ;;  %v4171_v13 = vadd.f32 %v4170_v37, %v4169_v11 }
 0xd57   : > { %v4132_v14 = vpop.f32.mrf.mxu1  ;;  %v4172_v20 = vpop.f32.mrf.mxu0 }
 0xd58   : > { %3652 = vst [vmem:[%s6128_s3] sm:$0xff] %v3644_v27  ;;  %v3617_v33 = vadd.f32 %v4171_v13, %v4131_v60 }
 0xd59   : > { %v4133_v30 = vpop.f32.mrf.mxu1  ;;  %v4173_v22 = vpop.f32.mrf.mxu0 }
 0xd5a   : > { %v3645_v47 = vadd.f32 %v3617_v33, %v6007_v35  ;;  %v4134_v50 = vadd.f32 %v4133_v30, %v4132_v14  ;;  %v4174_v45 = vadd.f32 %v4173_v22, %v4172_v20 }
 0xd5b   : > { %v4135_v21 = vpop.f32.mrf.mxu1  ;;  %v4175_v26 = vpop.f32.mrf.mxu0 }
 0xd5c   : > { %3653 = vst [vmem:[%s6128_s3 + $0x8] sm:$0xff] %v3645_v47  ;;  %v3622_v19 = vadd.f32 %v4174_v45, %v4134_v50 }
 0xd5d   : > { %v4136_v39 = vpop.f32.mrf.mxu1  ;;  %v4176_v52 = vpop.f32.mrf.mxu0 }
 0xd5e   : > { %v3646_v16 = vadd.f32 %v3622_v19, %v6019_v43  ;;  %v4137_v49 = vadd.f32 %v4136_v39, %v4135_v21  ;;  %v4177_v34 = vadd.f32 %v4176_v52, %v4175_v26 }
 0xd5f   : > { %v4138_v23 = vpop.f32.mrf.mxu1  ;;  %v4178_v53 = vpop.f32.mrf.mxu0 }
 0xd60   : > { %3654 = vst [vmem:[%s6128_s3 + $0x10] sm:$0xff] %v3646_v16  ;;  %v3625_v0 = vadd.f32 %v4177_v34, %v4137_v49 }
 0xd61   : > { %v4139_v41 = vpop.f32.mrf.mxu1  ;;  %v4179_v35 = vpop.f32.mrf.mxu0 }
 0xd62   : > { %v3647_v61 = vadd.f32 %v3625_v0, %v6013_v29  ;;  %v4140_v2 = vadd.f32 %v4139_v41, %v4138_v23  ;;  %v4180_v3 = vadd.f32 %v4179_v35, %v4178_v53 }
 0xd63   : > { %v4141_v59 = vpop.f32.mrf.mxu1  ;;  %v4181_v55 = vpop.f32.mrf.mxu0 }
 0xd64   : > { %3655 = vst [vmem:[%s6128_s3 + $0x18] sm:$0xff] %v3647_v61  ;;  %v3630_v63 = vadd.f32 %v4180_v3, %v4140_v2 }
 0xd65   : > { %v4142_v51 = vpop.f32.mrf.mxu1  ;;  %v4182_v43 = vpop.f32.mrf.mxu0 }
 0xd66   : > { %v3648_v48 = vadd.f32 %v3630_v63, %v6031_v25  ;;  %v4143_v58 = vadd.f32 %v4142_v51, %v4141_v59  ;;  %v4183_v57 = vadd.f32 %v4182_v43, %v4181_v55 }
 0xd67   : > { %v4144_v7 = vpop.f32.mrf.mxu1  ;;  %v4184_v54 = vpop.f32.mrf.mxu0 }
 0xd68   : > { %3656 = vst [vmem:[%s6128_s3 + $0x20] sm:$0xff] %v3648_v48  ;;  %v3633_v56 = vadd.f32 %v4183_v57, %v4143_v58 }
 0xd69   : > { %v4145_v29 = vpop.f32.mrf.mxu1  ;;  %v4185_v6 = vpop.f32.mrf.mxu0 }
 0xd6a   : > { %v3649_v4 = vadd.f32 %v3633_v56, %v6025_v32  ;;  %v4146_v5 = vadd.f32 %v4145_v29, %v4144_v7  ;;  %v4186_v28 = vadd.f32 %v4185_v6, %v4184_v54 }
 0xd6b   : > { %v4147_v44 = vpop.f32.mrf.mxu1  ;;  %v4187_v42 = vpop.f32.mrf.mxu0 }
 0xd6c   : > { %3657 = vst [vmem:[%s6128_s3 + $0x28] sm:$0xff] %v3649_v4  ;;  %v3638_v25 = vadd.f32 %v4186_v28, %v4146_v5 }
 0xd6d   : > { %v4148_v18 = vpop.f32.mrf.mxu1  ;;  %v4188_v15 = vpop.f32.mrf.mxu0 }
 0xd6e   : > { %v3650_v1 = vadd.f32 %v3638_v25, %v6043_v10  ;;  %v4149_v38 = vadd.f32 %v4148_v18, %v4147_v44  ;;  %v4189_v62 = vadd.f32 %v4188_v15, %v4187_v42 }
 0xd70   : > { %3658 = vst [vmem:[%s6128_s3 + $0x30] sm:$0xff] %v3650_v1  ;;  %v3641_v17 = vadd.f32 %v4189_v62, %v4149_v38 }
 0xd72   : > { %v3651_v32 = vadd.f32 %v3641_v17, %v6037_v46 }
 0xd74   : > { %3659 = vst [vmem:[%s6128_s3 + $0x38] sm:$0xff] %v3651_v32 }
 0xd75   : > { %4964 = shalt.err (!%p4961_p2)
}
 0xd76   : > { %s4965_s4 = scalar_lea.hbm %s6148_s24, 1024  ;;  %s4969_s22 = scalar_lea.hbm %s6205_s10, 2048 }
 0xd77   : > { %p4966_p3 = scmp.ne.s32.totalorder %s6148_s24, %s4965_s4  ;;  %p4970_p0 = scmp.lt.s32.totalorder %s6148_s24, %s6205_s10 }
 0xd78   : > { %p4971_p11 = scmp.lt.s32.totalorder %s4969_s22, %s4965_s4 }
 0xd79   : > { %p4967_p4 = pnand %p4966_p3, %p6231_p7 }
 0xd7a   : > { %p4972_p6 = por %p4971_p11, %p4970_p0 }
 0xd7b   : > { %p4968_p8 = pneg %p4967_p4 }
 0xd7d   : > { %p4973_p12 = pnand %p4972_p6, %p4968_p8 }
 0xd7f   : > { %4976 = shalt.err (!%p4973_p12)
}
 0xd80   : > { %s5043_s21 = smov 128   ;;  %s5044_s27 = smov 8  }
 0xd81   : > { %4400 = dma.vmem_to_hbm [thread:$0]  (%p6231_p7), %s6150_s19, 1024, %s6148_s24, %s3661_s29, %s5043_s21, %s5043_s21, %s5044_s27  }
 0xd82 PF: > { %s3689_s23 = sand.u32 1, %s5011_s13   ;;  %p6232_p9 = scmp.ne.s32.totalorder %s6215_s20, 0 }
 0xd83   : > { %p6233_p13 = scmp.ge.s32.totalorder %s5023_s16, 2  ;;  %s3690_s17 = scalar_lea.sflag [#allocation5], %s3689_s23 }
 0xd85   : > { %p4420_p5 = pnand %p6233_p13, %p6232_p9 }
 0xd87   : > { %p4421_p10 = pneg %p4420_p5 }
 0xd89   : > { %5006 = dma.done.wait (%p4421_p10), %s3690_s17, 1024  }
 0xd8a   : > { %5008 = vsyncadd (%p4421_p10), %s3690_s17, 4294966272  ;;  %p25_p1 = scmp.ge.s32.totalorder %s5188_s28, 4   ;;  %s6234_s13 = smov %s5015_s14 }
 0xd8b   : > { %s6235_s14 = smov %s5019_s15  ;;  %s6236_s15 = smov %s5204_s12 }
 0xd8c   : > { %s6237_s16 = smov %s5188_s28  ;;  %27 = sbr.rel (!%p25_p1) target bundleno = 12 (0xc), region = 121 }
 0xd91   :  { %3695 = vsyncpa [#allocation4], 1 }
 0xd92   :  { %3697 = vsyncpa [#allocation4 + $0x1], 1 }
 0xd93   :  { %3698 = vsyncpa [#allocation7], 1 }
 0xd94   :  { %3699 = vsyncpa [#allocation10], 1 }
 0xd95   :  { %3700 = vsyncpa [#allocation5], 1 }
 0xd96   :  { %3702 = vsyncpa [#allocation5 + $0x1], 1 }

</bundles_post_ra>
